<compile_context>
chip_gen: v7x
topology: tpu7x:2x2x1
jax: 0.10.0
libtpu: 0.0.40
codegen_flags: <defaults>
</compile_context>

<pallas_src>
import functools

import jax
import jax.numpy as jnp
from jax.experimental import pallas as pl
from jax.experimental.pallas import tpu as pltpu

LANE = 128


def _round_up(x, m):
    return ((x + m - 1) // m) * m


@functools.lru_cache(maxsize=1)
def _vmem_limit_bytes():
    """~3/4 of physical VMEM (48 MiB on v7x, 96 MiB on v5e/v6e), else default."""
    try:
        cap = pltpu.get_tpu_info().vmem_capacity_bytes
        return int(min(cap * 3 // 4, 100 * 2 ** 20))
    except Exception:
        return None


def _pick_row_tile(Ho, Wo, max_rows):
    """Largest divisor of Ho whose tile (th*Wo GEMM rows) stays vreg-friendly."""
    best = 1
    for t in range(1, Ho + 1):
        if Ho % t == 0 and t * Wo <= max(max_rows, Wo):
            best = t
    return best


# ----------------------------------------------------------------------------
# Pallas kernel: fused conv (grouped shifted-slice taps) + bias [+res] [relu]
# ----------------------------------------------------------------------------
def _make_conv_kernel(groups, th, Wo, Hph, Cp, relu, has_residual):
    mt = th * Wo

    def kernel(x_ref, w_ref, b_ref, *rest):
        # x_ref: (P*Hph, Wph, Cg) bf16  phase-decomposed padded image (resident)
        # w_ref: (G, Kg, Cp)      bf16  grouped, BN-folded weights (resident)
        # b_ref: (1, Cp)          f32
        # r_ref: (th, Wo, Cp)     bf16  residual (optional)
        # o_ref: (th, Wo, Cp)
        if has_residual:
            r_ref, o_ref = rest
        else:
            (o_ref,) = rest

        row0 = pl.program_id(1) * th                       # output-row tile start
        acc = None
        for g, taps in enumerate(groups):
            # Gather the group's taps as shifted VMEM slices; lane-aligned
            # concat along the contraction dim builds one big-K LHS.
            parts = [x_ref[pl.ds(ph * Hph + row0 + di, th), pl.ds(dj, Wo), :]
                     for (ph, di, dj) in taps]
            lhs = parts[0] if len(parts) == 1 else jnp.concatenate(parts, axis=-1)
            lhs = lhs.reshape(mt, lhs.shape[-1])
            prod = jnp.dot(lhs, w_ref[g], preferred_element_type=jnp.float32)
            acc = prod if acc is None else acc + prod      # traced f32 accumulator

        acc = acc + b_ref[...]
        if has_residual:
            acc = acc + r_ref[...].reshape(mt, Cp).astype(jnp.float32)
        if relu:
            acc = jnp.maximum(acc, 0.0)
        o_ref[...] = acc.reshape(th, Wo, Cp).astype(o_ref.dtype)   # single store

    return kernel


# ----------------------------------------------------------------------------
# Hoisted weight prep: quantize, fold BN, pad, group taps, cast bf16
# ----------------------------------------------------------------------------
def quantize_weight(w, n_bits=7):
    """PyTorch semantics: W_eff = round(W/step)*step, step = max|W|/(2^7-1)."""
    step = jnp.max(jnp.abs(w)) / (2 ** n_bits - 1)
    step = jnp.where(step == 0, jnp.ones_like(step), step)
    return jnp.round(w / step) * step


def fold_bn(gamma, beta, mean, var, eps=1e-5):
    scale = gamma / jnp.sqrt(var + eps)
    bias = beta - mean * scale
    return scale, bias


def prepare_conv(w, gamma, beta, mean, var, *, in_channels, stride):
    """Runs once per block construction (outside the per-forward path)."""
    Cout, Cin, kh, kw = w.shape
    Cx = in_channels                      # channels the activation actually carries
    Cp = _round_up(Cout, LANE)            # lane-dense output channels

    scale, bias = fold_bn(gamma, beta, mean, var)
    w_eff = quantize_weight(w).transpose(2, 3, 1, 0) * scale[None, None, None, :]
    if Cin < Cx:                          # consume zero-padded input channels
        w_eff = jnp.pad(w_eff, ((0, 0), (0, 0), (0, Cx - Cin), (0, 0)))
    if Cout < Cp:
        w_eff = jnp.pad(w_eff, ((0, 0), (0, 0), (0, 0), (0, Cp - Cout)))
        bias = jnp.pad(bias, (0, Cp - Cout))
    bias = bias.reshape(1, Cp).astype(jnp.float32)

    def phase_tap(i, j):
        if stride == 1 or kh == 1:
            return (0, i, j)
        return ((i % stride) * stride + (j % stride), i // stride, j // stride)

    if kh == 1:
        groups = (((0, 0, 0),),)
        w_k = w_eff.reshape(1, Cx, Cp)
    elif Cx % LANE == 0:
        # fuse the kw taps of each kernel row into one K = kw*Cx GEMM
        groups = tuple(tuple(phase_tap(i, j) for j in range(kw)) for i in range(kh))
        w_k = w_eff.reshape(kh, kw * Cx, Cp)
    else:
        groups = tuple((phase_tap(i, j),) for i in range(kh) for j in range(kw))
        w_k = w_eff.reshape(kh * kw, Cx, Cp)

    return dict(w=w_k.astype(jnp.bfloat16), bias=bias, groups=groups,
                k=kh, stride=stride, pad=kh // 2, Cx=Cx, Cp=Cp)


# ----------------------------------------------------------------------------
# One fused conv+BN(+residual)(+ReLU) pallas_call
# ----------------------------------------------------------------------------
def conv_apply(x, conv, *, residual=None, relu=False, out_dtype=jnp.float32,
               row_tile_rows=128):
    """x: (N, H, W, Cx) bf16 NHWC.  residual: optional (N, Ho, Wo, Cp) bf16.
    Returns (N, Ho, Wo, Cp) in out_dtype (padded output channels stay zero).
    row_tile_rows is a sweep parameter (256-512 may amortize per-step overhead
    better on large images)."""
    N, H, W, Cx = x.shape
    assert Cx == conv["Cx"]
    k, s, pad, Cp = conv["k"], conv["stride"], conv["pad"], conv["Cp"]
    x = x.astype(jnp.bfloat16)

    if k == 1:
        x_in = x[:, ::s, ::s, :]                                  # (N, Ho, Wo, Cx)
        Ho, Wo = x_in.shape[1], x_in.shape[2]
        P, Hph, Wph = 1, Ho, Wo
    else:
        xp = jnp.pad(x, ((0, 0), (pad, pad), (pad, pad), (0, 0)))
        Ho = (H + 2 * pad - k) // s + 1
        Wo = (W + 2 * pad - k) // s + 1
        if s == 1:
            x_in = xp
            P, Hph, Wph = 1, xp.shape[1], xp.shape[2]
        else:
            # phase decomposition: ~1x rearrangement instead of a 9x HBM im2col
            Hph, Wph = Ho + (k - 1) // s, Wo + (k - 1) // s
            phases = []
            for pi in range(s):
                for pj in range(s):
                    ph = xp[:, pi::s, pj::s, :]
                    ph = jnp.pad(ph, ((0, 0),
                                      (0, max(0, Hph - ph.shape[1])),
                                      (0, max(0, Wph - ph.shape[2])),
                                      (0, 0)))[:, :Hph, :Wph, :]
                    phases.append(ph)
            P = s * s
            x_in = jnp.concatenate(phases, axis=1)                # (N, P*Hph, Wph, Cx)

    th = _pick_row_tile(Ho, Wo, row_tile_rows)
    w_k, bias, groups = conv["w"], conv["bias"], conv["groups"]
    G, Kg = w_k.shape[0], w_k.shape[1]

    in_specs = [
        pl.BlockSpec((None, P * Hph, Wph, Cx), lambda n, r: (n, 0, 0, 0)),  # resident image
        pl.BlockSpec((G, Kg, Cp), lambda n, r: (0, 0, 0)),                  # resident weights
        pl.BlockSpec((1, Cp), lambda n, r: (0, 0)),
    ]
    args = [x_in, w_k, bias]
    if residual is not None:
        in_specs.append(pl.BlockSpec((None, th, Wo, Cp), lambda n, r: (n, r, 0, 0)))
        args.append(residual.astype(jnp.bfloat16))

    out = pl.pallas_call(
        _make_conv_kernel(groups, th, Wo, Hph, Cp, relu, residual is not None),
        out_shape=jax.ShapeDtypeStruct((N, Ho, Wo, Cp), out_dtype),
        grid=(N, Ho // th),
        in_specs=in_specs,
        out_specs=pl.BlockSpec((None, th, Wo, Cp), lambda n, r: (n, r, 0, 0)),
        compiler_params=pltpu.CompilerParams(
            dimension_semantics=("parallel", "parallel"),
            vmem_limit_bytes=_vmem_limit_bytes()),
    )(*args)
    return out


# ----------------------------------------------------------------------------
# BasicBlock: weight prep hoisted, returns a jitted NCHW -> NCHW forward
# ----------------------------------------------------------------------------
def make_basic_block(params, *, in_planes, planes, stride=1):
    Cp = _round_up(planes, LANE)

    conv1 = prepare_conv(params["w1"], params["g1"], params["be1"],
                         params["m1"], params["v1"],
                         in_channels=in_planes, stride=stride)
    conv2 = prepare_conv(params["w2"], params["g2"], params["be2"],
                         params["m2"], params["v2"],
                         in_channels=Cp, stride=1)
    has_conv_sc = (stride != 1) or (in_planes != planes)
    conv_sc = None
    if has_conv_sc:
        conv_sc = prepare_conv(params["ws"], params["gs"], params["bes"],
                               params["ms"], params["vs"],
                               in_channels=in_planes, stride=stride)

    def forward(x_nchw):
        x = jnp.transpose(x_nchw, (0, 2, 3, 1)).astype(jnp.bfloat16)   # NHWC once

        # conv1 + bn1 + relu  -> bf16, channel-padded intermediate
        out1 = conv_apply(x, conv1, relu=True, out_dtype=jnp.bfloat16)

        # shortcut (bf16 stream)
        if has_conv_sc:
            sc = conv_apply(x, conv_sc, relu=False, out_dtype=jnp.bfloat16)
        else:
            # TODO(synk): zero-extend the identity residual inside the conv2
            # epilogue instead of padding here (this pad is a no-op whenever
            # in_planes is already a multiple of 128, the common ResNet case).
            sc = jnp.pad(x, ((0, 0), (0, 0), (0, 0), (0, Cp - in_planes)))

        # conv2 + bn2 + residual add + relu — one fused kernel
        out = conv_apply(out1, conv2, residual=sc, relu=True,
                         out_dtype=jnp.float32)
        out = out[..., :planes]                         # strip channel padding
        return jnp.transpose(out, (0, 3, 1, 2))         # back to NCHW

    return jax.jit(forward)


# ----------------------------------------------------------------------------
# Pure-JAX reference (f32, lax conv) for correctness
# ----------------------------------------------------------------------------
def ref_forward(x, params, stride=1):
    def conv(x, w, s, pad):
        return jax.lax.conv_general_dilated(
            x, w, (s, s), [(pad, pad), (pad, pad)],
            dimension_numbers=("NCHW", "OIHW", "NCHW"))

    def bn(x, g, be, m, v):
        sc, bi = fold_bn(g, be, m, v)
        return x * sc[None, :, None, None] + bi[None, :, None, None]

    planes, Cin = params["w1"].shape[0], params["w1"].shape[1]
    out = jax.nn.relu(bn(conv(x, quantize_weight(params["w1"]), stride, 1),
                         params["g1"], params["be1"], params["m1"], params["v1"]))
    out = bn(conv(out, quantize_weight(params["w2"]), 1, 1),
             params["g2"], params["be2"], params["m2"], params["v2"])
    if stride != 1 or Cin != planes:
        sc = bn(conv(x, quantize_weight(params["ws"]), stride, 0),
                params["gs"], params["bes"], params["ms"], params["vs"])
    else:
        sc = x
    return jax.nn.relu(out + sc)


def init_params(key, in_planes, planes):
    ks = jax.random.split(key, 16)
    u = lambda k, s: jax.random.uniform(k, s, jnp.float32, 0.5, 1.5)
    n = lambda k, s: jax.random.normal(k, s, jnp.float32) * 0.1
    return {
        "w1": n(ks[0], (planes, in_planes, 3, 3)),
        "g1": u(ks[1], (planes,)), "be1": n(ks[2], (planes,)),
        "m1": n(ks[3], (planes,)), "v1": u(ks[4], (planes,)),
        "w2": n(ks[5], (planes, planes, 3, 3)),
        "g2": u(ks[6], (planes,)), "be2": n(ks[7], (planes,)),
        "m2": n(ks[8], (planes,)), "v2": u(ks[9], (planes,)),
        "ws": n(ks[10], (planes, in_planes, 1, 1)),
        "gs": u(ks[11], (planes,)), "bes": n(ks[12], (planes,)),
        "ms": n(ks[13], (planes,)), "vs": u(ks[14], (planes,)),
    }


if __name__ == "__main__":
    key = jax.random.PRNGKey(0)

    # (in_planes, planes, stride): conv-shortcut, identity-shortcut, downsample
    configs = [(4, 8, 1), (8, 8, 1), (4, 8, 2)]
    N, H, W = 2, 16, 16

    for idx, (in_planes, planes, stride) in enumerate(configs):
        kx, kp = jax.random.split(jax.random.fold_in(key, idx))
        x = jax.random.normal(kx, (N, in_planes, H, W), jnp.float32)
        params = init_params(kp, in_planes, planes)

        fwd = make_basic_block(params, in_planes=in_planes, planes=planes,
                               stride=stride)
        out = fwd(x)
        jax.block_until_ready(out)

        ref = ref_forward(x, params, stride=stride)
        assert out.shape == ref.shape == (N, planes, H // stride, W // stride), \
            (out.shape, ref.shape)
        # bf16 MXU inputs / bf16 residual stream vs f32 reference
        err = float(jnp.max(jnp.abs(out - ref)))
        assert jnp.allclose(out, ref, atol=5e-2, rtol=5e-2), err

    print("KERNEL_OK")
</pallas_src>

<mosaic_0001>
module attributes {stable_mosaic.version = 11 : i64} {
  func.func @kernel(%arg0: i32, %arg1: i32, %arg2: memref<1x16x16x4xbf16, #tpu.memory_space<vmem>>, %arg3: memref<1x4x128xbf16, #tpu.memory_space<vmem>>, %arg4: memref<1x128xf32, #tpu.memory_space<vmem>>, %arg5: memref<1x8x16x128xbf16, #tpu.memory_space<vmem>>) attributes {dimension_semantics = [#tpu.dimension_semantics<parallel>, #tpu.dimension_semantics<parallel>], iteration_bounds = array<i64: 2, 2>, scalar_prefetch = 0 : i64, scratch_operands = 0 : i64, tpu.core_type = #tpu.core_type<tc>, window_params = [{transform_indices = @transform_0, window_bounds = array<i64: 1, 16, 16, 4>}, {pipeline_mode = #tpu.pipeline_mode<synchronous>, transform_indices = @transform_1, window_bounds = array<i64: 1, 4, 128>}, {pipeline_mode = #tpu.pipeline_mode<synchronous>, transform_indices = @transform_2, window_bounds = array<i64: 1, 128>}, {transform_indices = @transform_3, window_bounds = array<i64: 1, 8, 16, 128>}]} {
    %c8_i32 = arith.constant 8 : i32
    %0 = arith.muli %arg1, %c8_i32 : i32
    %c0_i32 = arith.constant 0 : i32
    %1 = arith.addi %c0_i32, %0 : i32
    %c0_i32_0 = arith.constant 0 : i32
    %2 = arith.addi %1, %c0_i32_0 : i32
    %c0 = arith.constant 0 : index
    %3 = arith.index_cast %2 : i32 to index
    %c0_1 = arith.constant 0 : index
    %c0_2 = arith.constant 0 : index
    %4 = vector.load %arg2[%c0, %3, %c0_1, %c0_2] : memref<1x16x16x4xbf16, #tpu.memory_space<vmem>>, vector<1x8x16x4xbf16>
    %5 = vector.shape_cast %4 : vector<1x8x16x4xbf16> to vector<8x16x4xbf16>
    %6 = vector.shape_cast %5 : vector<8x16x4xbf16> to vector<128x4xbf16>
    %c0_3 = arith.constant 0 : index
    %c0_4 = arith.constant 0 : index
    %c0_5 = arith.constant 0 : index
    %7 = vector.load %arg3[%c0_3, %c0_4, %c0_5] : memref<1x4x128xbf16, #tpu.memory_space<vmem>>, vector<1x4x128xbf16>
    %8 = vector.shape_cast %7 : vector<1x4x128xbf16> to vector<4x128xbf16>
    %cst = arith.constant dense<0.000000e+00> : vector<128x128xf32>
    %9 = tpu.matmul %6, %8, %cst {dimension_numbers = #tpu.dot_dimension_numbers<[1], [0], [0], [1], [0, 0, 1, 1], [], []>} : vector<128x4xbf16>, vector<4x128xbf16>, vector<128x128xf32> -> vector<128x128xf32>
    %c0_6 = arith.constant 0 : index
    %c0_7 = arith.constant 0 : index
    %10 = vector.load %arg4[%c0_6, %c0_7] : memref<1x128xf32, #tpu.memory_space<vmem>>, vector<1x128xf32>
    %11 = vector.broadcast %10 : vector<1x128xf32> to vector<128x128xf32>
    %12 = arith.addf %9, %11 : vector<128x128xf32>
    %13 = vector.shape_cast %12 : vector<128x128xf32> to vector<8x16x128xf32>
    %14 = arith.truncf %13 : vector<8x16x128xf32> to vector<8x16x128xbf16>
    %c0_8 = arith.constant 0 : index
    %c0_9 = arith.constant 0 : index
    %c0_10 = arith.constant 0 : index
    %c0_11 = arith.constant 0 : index
    %15 = vector.load %arg5[%c0_8, %c0_9, %c0_10, %c0_11] : memref<1x8x16x128xbf16, #tpu.memory_space<vmem>>, vector<1x8x16x128xbf16>
    %16 = vector.shape_cast %15 : vector<1x8x16x128xbf16> to vector<8x16x128xbf16>
    %17 = vector.shape_cast %14 : vector<8x16x128xbf16> to vector<1x8x16x128xbf16>
    tpu.vector_store %arg5[%c0_8, %c0_9, %c0_10, %c0_11], %17 {strides = array<i32>} : memref<1x8x16x128xbf16, #tpu.memory_space<vmem>>, vector<1x8x16x128xbf16>,
    return
  }
  func.func @transform_0(%arg0: i32, %arg1: i32) -> (i32, i32, i32, i32) {
    %c0_i32 = arith.constant 0 : i32
    %c0_i32_0 = arith.constant 0 : i32
    %c0_i32_1 = arith.constant 0 : i32
    %c0_i32_2 = arith.constant 0 : i32
    return %arg0, %c0_i32, %c0_i32_0, %c0_i32_1 : i32, i32, i32, i32
  }
  func.func @transform_1(%arg0: i32, %arg1: i32) -> (i32, i32, i32) {
    %c0_i32 = arith.constant 0 : i32
    %c0_i32_0 = arith.constant 0 : i32
    %c0_i32_1 = arith.constant 0 : i32
    %c0_i32_2 = arith.constant 0 : i32
    return %c0_i32, %c0_i32_0, %c0_i32_1 : i32, i32, i32
  }
  func.func @transform_2(%arg0: i32, %arg1: i32) -> (i32, i32) {
    %c0_i32 = arith.constant 0 : i32
    %c0_i32_0 = arith.constant 0 : i32
    %c0_i32_1 = arith.constant 0 : i32
    return %c0_i32, %c0_i32_0 : i32, i32
  }
  func.func @transform_3(%arg0: i32, %arg1: i32) -> (i32, i32, i32, i32) {
    %c0_i32 = arith.constant 0 : i32
    %c0_i32_0 = arith.constant 0 : i32
    %c0_i32_1 = arith.constant 0 : i32
    return %arg0, %arg1, %c0_i32, %c0_i32_0 : i32, i32, i32, i32
  }
}

module attributes {stable_mosaic.version = 11 : i64} {
  func.func @kernel(%arg0: i32, %arg1: i32, %arg2: memref<1x18x18x4xbf16, #tpu.memory_space<vmem>>, %arg3: memref<9x4x128xbf16, #tpu.memory_space<vmem>>, %arg4: memref<1x128xf32, #tpu.memory_space<vmem>>, %arg5: memref<1x8x16x128xbf16, #tpu.memory_space<vmem>>) attributes {dimension_semantics = [#tpu.dimension_semantics<parallel>, #tpu.dimension_semantics<parallel>], iteration_bounds = array<i64: 2, 2>, scalar_prefetch = 0 : i64, scratch_operands = 0 : i64, tpu.core_type = #tpu.core_type<tc>, window_params = [{transform_indices = @transform_0, window_bounds = array<i64: 1, 18, 18, 4>}, {pipeline_mode = #tpu.pipeline_mode<synchronous>, transform_indices = @transform_1, window_bounds = array<i64: 9, 4, 128>}, {pipeline_mode = #tpu.pipeline_mode<synchronous>, transform_indices = @transform_2, window_bounds = array<i64: 1, 128>}, {transform_indices = @transform_3, window_bounds = array<i64: 1, 8, 16, 128>}]} {
    %c8_i32 = arith.constant 8 : i32
    %0 = arith.muli %arg1, %c8_i32 : i32
    %c0_i32 = arith.constant 0 : i32
    %1 = arith.addi %c0_i32, %0 : i32
    %c0_i32_0 = arith.constant 0 : i32
    %2 = arith.addi %1, %c0_i32_0 : i32
    %c0 = arith.constant 0 : index
    %3 = arith.index_cast %2 : i32 to index
    %c0_1 = arith.constant 0 : index
    %c0_2 = arith.constant 0 : index
    %4 = vector.load %arg2[%c0, %3, %c0_1, %c0_2] : memref<1x18x18x4xbf16, #tpu.memory_space<vmem>>, vector<1x8x16x4xbf16>
    %5 = vector.shape_cast %4 : vector<1x8x16x4xbf16> to vector<8x16x4xbf16>
    %6 = vector.shape_cast %5 : vector<8x16x4xbf16> to vector<128x4xbf16>
    %c0_3 = arith.constant 0 : index
    %c0_4 = arith.constant 0 : index
    %c0_5 = arith.constant 0 : index
    %7 = vector.load %arg3[%c0_3, %c0_4, %c0_5] : memref<9x4x128xbf16, #tpu.memory_space<vmem>>, vector<1x4x128xbf16>
    %8 = vector.shape_cast %7 : vector<1x4x128xbf16> to vector<4x128xbf16>
    %cst = arith.constant dense<0.000000e+00> : vector<128x128xf32>
    %9 = tpu.matmul %6, %8, %cst {dimension_numbers = #tpu.dot_dimension_numbers<[1], [0], [0], [1], [0, 0, 1, 1], [], []>} : vector<128x4xbf16>, vector<4x128xbf16>, vector<128x128xf32> -> vector<128x128xf32>
    %c0_i32_6 = arith.constant 0 : i32
    %10 = arith.addi %c0_i32_6, %0 : i32
    %c0_i32_7 = arith.constant 0 : i32
    %11 = arith.addi %10, %c0_i32_7 : i32
    %c0_8 = arith.constant 0 : index
    %12 = arith.index_cast %11 : i32 to index
    %c1 = arith.constant 1 : index
    %c0_9 = arith.constant 0 : index
    %13 = vector.load %arg2[%c0_8, %12, %c1, %c0_9] : memref<1x18x18x4xbf16, #tpu.memory_space<vmem>>, vector<1x8x16x4xbf16>
    %14 = vector.shape_cast %13 : vector<1x8x16x4xbf16> to vector<8x16x4xbf16>
    %15 = vector.shape_cast %14 : vector<8x16x4xbf16> to vector<128x4xbf16>
    %c1_10 = arith.constant 1 : index
    %c0_11 = arith.constant 0 : index
    %c0_12 = arith.constant 0 : index
    %16 = vector.load %arg3[%c1_10, %c0_11, %c0_12] : memref<9x4x128xbf16, #tpu.memory_space<vmem>>, vector<1x4x128xbf16>
    %17 = vector.shape_cast %16 : vector<1x4x128xbf16> to vector<4x128xbf16>
    %cst_13 = arith.constant dense<0.000000e+00> : vector<128x128xf32>
    %18 = tpu.matmul %15, %17, %cst_13 {dimension_numbers = #tpu.dot_dimension_numbers<[1], [0], [0], [1], [0, 0, 1, 1], [], []>} : vector<128x4xbf16>, vector<4x128xbf16>, vector<128x128xf32> -> vector<128x128xf32>
    %19 = arith.addf %9, %18 : vector<128x128xf32>
    %c0_i32_14 = arith.constant 0 : i32
    %20 = arith.addi %c0_i32_14, %0 : i32
    %c0_i32_15 = arith.constant 0 : i32
    %21 = arith.addi %20, %c0_i32_15 : i32
    %c0_16 = arith.constant 0 : index
    %22 = arith.index_cast %21 : i32 to index
    %c2 = arith.constant 2 : index
    %c0_17 = arith.constant 0 : index
    %23 = vector.load %arg2[%c0_16, %22, %c2, %c0_17] : memref<1x18x18x4xbf16, #tpu.memory_space<vmem>>, vector<1x8x16x4xbf16>
    %24 = vector.shape_cast %23 : vector<1x8x16x4xbf16> to vector<8x16x4xbf16>
    %25 = vector.shape_cast %24 : vector<8x16x4xbf16> to vector<128x4xbf16>
    %c2_18 = arith.constant 2 : index
    %c0_19 = arith.constant 0 : index
    %c0_20 = arith.constant 0 : index
    %26 = vector.load %arg3[%c2_18, %c0_19, %c0_20] : memref<9x4x128xbf16, #tpu.memory_space<vmem>>, vector<1x4x128xbf16>
    %27 = vector.shape_cast %26 : vector<1x4x128xbf16> to vector<4x128xbf16>
    %cst_21 = arith.constant dense<0.000000e+00> : vector<128x128xf32>
    %28 = tpu.matmul %25, %27, %cst_21 {dimension_numbers = #tpu.dot_dimension_numbers<[1], [0], [0], [1], [0, 0, 1, 1], [], []>} : vector<128x4xbf16>, vector<4x128xbf16>, vector<128x128xf32> -> vector<128x128xf32>
    %29 = arith.addf %19, %28 : vector<128x128xf32>
    %c0_i32_22 = arith.constant 0 : i32
    %30 = arith.addi %c0_i32_22, %0 : i32
    %c1_i32 = arith.constant 1 : i32
    %31 = arith.addi %30, %c1_i32 : i32
    %c0_23 = arith.constant 0 : index
    %32 = arith.index_cast %31 : i32 to index
    %c0_24 = arith.constant 0 : index
    %c0_25 = arith.constant 0 : index
    %33 = vector.load %arg2[%c0_23, %32, %c0_24, %c0_25] : memref<1x18x18x4xbf16, #tpu.memory_space<vmem>>, vector<1x8x16x4xbf16>
    %34 = vector.shape_cast %33 : vector<1x8x16x4xbf16> to vector<8x16x4xbf16>
    %35 = vector.shape_cast %34 : vector<8x16x4xbf16> to vector<128x4xbf16>
    %c3 = arith.constant 3 : index
    %c0_26 = arith.constant 0 : index
    %c0_27 = arith.constant 0 : index
    %36 = vector.load %arg3[%c3, %c0_26, %c0_27] : memref<9x4x128xbf16, #tpu.memory_space<vmem>>, vector<1x4x128xbf16>
    %37 = vector.shape_cast %36 : vector<1x4x128xbf16> to vector<4x128xbf16>
    %cst_28 = arith.constant dense<0.000000e+00> : vector<128x128xf32>
    %38 = tpu.matmul %35, %37, %cst_28 {dimension_numbers = #tpu.dot_dimension_numbers<[1], [0], [0], [1], [0, 0, 1, 1], [], []>} : vector<128x4xbf16>, vector<4x128xbf16>, vector<128x128xf32> -> vector<128x128xf32>
    %39 = arith.addf %29, %38 : vector<128x128xf32>
    %c0_i32_29 = arith.constant 0 : i32
    %40 = arith.addi %c0_i32_29, %0 : i32
    %c1_i32_30 = arith.constant 1 : i32
    %41 = arith.addi %40, %c1_i32_30 : i32
    %c0_31 = arith.constant 0 : index
    %42 = arith.index_cast %41 : i32 to index
    %c1_32 = arith.constant 1 : index
    %c0_33 = arith.constant 0 : index
    %43 = vector.load %arg2[%c0_31, %42, %c1_32, %c0_33] : memref<1x18x18x4xbf16, #tpu.memory_space<vmem>>, vector<1x8x16x4xbf16>
    %44 = vector.shape_cast %43 : vector<1x8x16x4xbf16> to vector<8x16x4xbf16>
    %45 = vector.shape_cast %44 : vector<8x16x4xbf16> to vector<128x4xbf16>
    %c4 = arith.constant 4 : index
    %c0_34 = arith.constant 0 : index
    %c0_35 = arith.constant 0 : index
    %46 = vector.load %arg3[%c4, %c0_34, %c0_35] : memref<9x4x128xbf16, #tpu.memory_space<vmem>>, vector<1x4x128xbf16>
    %47 = vector.shape_cast %46 : vector<1x4x128xbf16> to vector<4x128xbf16>
    %cst_36 = arith.constant dense<0.000000e+00> : vector<128x128xf32>
    %48 = tpu.matmul %45, %47, %cst_36 {dimension_numbers = #tpu.dot_dimension_numbers<[1], [0], [0], [1], [0, 0, 1, 1], [], []>} : vector<128x4xbf16>, vector<4x128xbf16>, vector<128x128xf32> -> vector<128x128xf32>
    %49 = arith.addf %39, %48 : vector<128x128xf32>
    %c0_i32_37 = arith.constant 0 : i32
    %50 = arith.addi %c0_i32_37, %0 : i32
    %c1_i32_38 = arith.constant 1 : i32
    %51 = arith.addi %50, %c1_i32_38 : i32
    %c0_39 = arith.constant 0 : index
    %52 = arith.index_cast %51 : i32 to index
    %c2_40 = arith.constant 2 : index
    %c0_41 = arith.constant 0 : index
    %53 = vector.load %arg2[%c0_39, %52, %c2_40, %c0_41] : memref<1x18x18x4xbf16, #tpu.memory_space<vmem>>, vector<1x8x16x4xbf16>
    %54 = vector.shape_cast %53 : vector<1x8x16x4xbf16> to vector<8x16x4xbf16>
    %55 = vector.shape_cast %54 : vector<8x16x4xbf16> to vector<128x4xbf16>
    %c5 = arith.constant 5 : index
    %c0_42 = arith.constant 0 : index
    %c0_43 = arith.constant 0 : index
    %56 = vector.load %arg3[%c5, %c0_42, %c0_43] : memref<9x4x128xbf16, #tpu.memory_space<vmem>>, vector<1x4x128xbf16>
    %57 = vector.shape_cast %56 : vector<1x4x128xbf16> to vector<4x128xbf16>
    %cst_44 = arith.constant dense<0.000000e+00> : vector<128x128xf32>
    %58 = tpu.matmul %55, %57, %cst_44 {dimension_numbers = #tpu.dot_dimension_numbers<[1], [0], [0], [1], [0, 0, 1, 1], [], []>} : vector<128x4xbf16>, vector<4x128xbf16>, vector<128x128xf32> -> vector<128x128xf32>
    %59 = arith.addf %49, %58 : vector<128x128xf32>
    %c0_i32_45 = arith.constant 0 : i32
    %60 = arith.addi %c0_i32_45, %0 : i32
    %c2_i32 = arith.constant 2 : i32
    %61 = arith.addi %60, %c2_i32 : i32
    %c0_46 = arith.constant 0 : index
    %62 = arith.index_cast %61 : i32 to index
    %c0_47 = arith.constant 0 : index
    %c0_48 = arith.constant 0 : index
    %63 = vector.load %arg2[%c0_46, %62, %c0_47, %c0_48] : memref<1x18x18x4xbf16, #tpu.memory_space<vmem>>, vector<1x8x16x4xbf16>
    %64 = vector.shape_cast %63 : vector<1x8x16x4xbf16> to vector<8x16x4xbf16>
    %65 = vector.shape_cast %64 : vector<8x16x4xbf16> to vector<128x4xbf16>
    %c6 = arith.constant 6 : index
    %c0_49 = arith.constant 0 : index
    %c0_50 = arith.constant 0 : index
    %66 = vector.load %arg3[%c6, %c0_49, %c0_50] : memref<9x4x128xbf16, #tpu.memory_space<vmem>>, vector<1x4x128xbf16>
    %67 = vector.shape_cast %66 : vector<1x4x128xbf16> to vector<4x128xbf16>
    %cst_51 = arith.constant dense<0.000000e+00> : vector<128x128xf32>
    %68 = tpu.matmul %65, %67, %cst_51 {dimension_numbers = #tpu.dot_dimension_numbers<[1], [0], [0], [1], [0, 0, 1, 1], [], []>} : vector<128x4xbf16>, vector<4x128xbf16>, vector<128x128xf32> -> vector<128x128xf32>
    %69 = arith.addf %59, %68 : vector<128x128xf32>
    %c0_i32_52 = arith.constant 0 : i32
    %70 = arith.addi %c0_i32_52, %0 : i32
    %c2_i32_53 = arith.constant 2 : i32
    %71 = arith.addi %70, %c2_i32_53 : i32
    %c0_54 = arith.constant 0 : index
    %72 = arith.index_cast %71 : i32 to index
    %c1_55 = arith.constant 1 : index
    %c0_56 = arith.constant 0 : index
    %73 = vector.load %arg2[%c0_54, %72, %c1_55, %c0_56] : memref<1x18x18x4xbf16, #tpu.memory_space<vmem>>, vector<1x8x16x4xbf16>
    %74 = vector.shape_cast %73 : vector<1x8x16x4xbf16> to vector<8x16x4xbf16>
    %75 = vector.shape_cast %74 : vector<8x16x4xbf16> to vector<128x4xbf16>
    %c7 = arith.constant 7 : index
    %c0_57 = arith.constant 0 : index
    %c0_58 = arith.constant 0 : index
    %76 = vector.load %arg3[%c7, %c0_57, %c0_58] : memref<9x4x128xbf16, #tpu.memory_space<vmem>>, vector<1x4x128xbf16>
    %77 = vector.shape_cast %76 : vector<1x4x128xbf16> to vector<4x128xbf16>
    %cst_59 = arith.constant dense<0.000000e+00> : vector<128x128xf32>
    %78 = tpu.matmul %75, %77, %cst_59 {dimension_numbers = #tpu.dot_dimension_numbers<[1], [0], [0], [1], [0, 0, 1, 1], [], []>} : vector<128x4xbf16>, vector<4x128xbf16>, vector<128x128xf32> -> vector<128x128xf32>
    %79 = arith.addf %69, %78 : vector<128x128xf32>
    %c0_i32_60 = arith.constant 0 : i32
    %80 = arith.addi %c0_i32_60, %0 : i32
    %c2_i32_61 = arith.constant 2 : i32
    %81 = arith.addi %80, %c2_i32_61 : i32
    %c0_62 = arith.constant 0 : index
    %82 = arith.index_cast %81 : i32 to index
    %c2_63 = arith.constant 2 : index
    %c0_64 = arith.constant 0 : index
    %83 = vector.load %arg2[%c0_62, %82, %c2_63, %c0_64] : memref<1x18x18x4xbf16, #tpu.memory_space<vmem>>, vector<1x8x16x4xbf16>
    %84 = vector.shape_cast %83 : vector<1x8x16x4xbf16> to vector<8x16x4xbf16>
    %85 = vector.shape_cast %84 : vector<8x16x4xbf16> to vector<128x4xbf16>
    %c8 = arith.constant 8 : index
    %c0_65 = arith.constant 0 : index
    %c0_66 = arith.constant 0 : index
    %86 = vector.load %arg3[%c8, %c0_65, %c0_66] : memref<9x4x128xbf16, #tpu.memory_space<vmem>>, vector<1x4x128xbf16>
    %87 = vector.shape_cast %86 : vector<1x4x128xbf16> to vector<4x128xbf16>
    %cst_67 = arith.constant dense<0.000000e+00> : vector<128x128xf32>
    %88 = tpu.matmul %85, %87, %cst_67 {dimension_numbers = #tpu.dot_dimension_numbers<[1], [0], [0], [1], [0, 0, 1, 1], [], []>} : vector<128x4xbf16>, vector<4x128xbf16>, vector<128x128xf32> -> vector<128x128xf32>
    %89 = arith.addf %79, %88 : vector<128x128xf32>
    %c0_68 = arith.constant 0 : index
    %c0_69 = arith.constant 0 : index
    %90 = vector.load %arg4[%c0_68, %c0_69] : memref<1x128xf32, #tpu.memory_space<vmem>>, vector<1x128xf32>
    %91 = vector.broadcast %90 : vector<1x128xf32> to vector<128x128xf32>
    %92 = arith.addf %89, %91 : vector<128x128xf32>
    %cst_70 = arith.constant 0.000000e+00 : f32
    %93 = vector.broadcast %cst_70 : f32 to vector<128x128xf32>
    %94 = arith.maximumf %92, %93 : vector<128x128xf32>
    %95 = vector.shape_cast %94 : vector<128x128xf32> to vector<8x16x128xf32>
    %96 = arith.truncf %95 : vector<8x16x128xf32> to vector<8x16x128xbf16>
    %c0_71 = arith.constant 0 : index
    %c0_72 = arith.constant 0 : index
    %c0_73 = arith.constant 0 : index
    %c0_74 = arith.constant 0 : index
    %97 = vector.load %arg5[%c0_71, %c0_72, %c0_73, %c0_74] : memref<1x8x16x128xbf16, #tpu.memory_space<vmem>>, vector<1x8x16x128xbf16>
    %98 = vector.shape_cast %97 : vector<1x8x16x128xbf16> to vector<8x16x128xbf16>
    %99 = vector.shape_cast %96 : vector<8x16x128xbf16> to vector<1x8x16x128xbf16>
    tpu.vector_store %arg5[%c0_71, %c0_72, %c0_73, %c0_74], %99 {strides = array<i32>} : memref<1x8x16x128xbf16, #tpu.memory_space<vmem>>, vector<1x8x16x128xbf16>,
    return
  }
  func.func @transform_0(%arg0: i32, %arg1: i32) -> (i32, i32, i32, i32) {
    %c0_i32 = arith.constant 0 : i32
    %c0_i32_0 = arith.constant 0 : i32
    %c0_i32_1 = arith.constant 0 : i32
    %c0_i32_2 = arith.constant 0 : i32
    return %arg0, %c0_i32, %c0_i32_0, %c0_i32_1 : i32, i32, i32, i32
  }
  func.func @transform_1(%arg0: i32, %arg1: i32) -> (i32, i32, i32) {
    %c0_i32 = arith.constant 0 : i32
    %c0_i32_0 = arith.constant 0 : i32
    %c0_i32_1 = arith.constant 0 : i32
    %c0_i32_2 = arith.constant 0 : i32
    return %c0_i32, %c0_i32_0, %c0_i32_1 : i32, i32, i32
  }
  func.func @transform_2(%arg0: i32, %arg1: i32) -> (i32, i32) {
    %c0_i32 = arith.constant 0 : i32
    %c0_i32_0 = arith.constant 0 : i32
    %c0_i32_1 = arith.constant 0 : i32
    return %c0_i32, %c0_i32_0 : i32, i32
  }
  func.func @transform_3(%arg0: i32, %arg1: i32) -> (i32, i32, i32, i32) {
    %c0_i32 = arith.constant 0 : i32
    %c0_i32_0 = arith.constant 0 : i32
    %c0_i32_1 = arith.constant 0 : i32
    return %arg0, %arg1, %c0_i32, %c0_i32_0 : i32, i32, i32, i32
  }
}

module attributes {stable_mosaic.version = 11 : i64} {
  func.func @kernel(%arg0: i32, %arg1: i32, %arg2: memref<1x18x18x128xbf16, #tpu.memory_space<vmem>>, %arg3: memref<3x384x128xbf16, #tpu.memory_space<vmem>>, %arg4: memref<1x128xf32, #tpu.memory_space<vmem>>, %arg5: memref<1x8x16x128xbf16, #tpu.memory_space<vmem>>, %arg6: memref<1x8x16x128xf32, #tpu.memory_space<vmem>>) attributes {dimension_semantics = [#tpu.dimension_semantics<parallel>, #tpu.dimension_semantics<parallel>], iteration_bounds = array<i64: 2, 2>, scalar_prefetch = 0 : i64, scratch_operands = 0 : i64, tpu.core_type = #tpu.core_type<tc>, window_params = [{transform_indices = @transform_0, window_bounds = array<i64: 1, 18, 18, 128>}, {pipeline_mode = #tpu.pipeline_mode<synchronous>, transform_indices = @transform_1, window_bounds = array<i64: 3, 384, 128>}, {pipeline_mode = #tpu.pipeline_mode<synchronous>, transform_indices = @transform_2, window_bounds = array<i64: 1, 128>}, {transform_indices = @transform_3, window_bounds = array<i64: 1, 8, 16, 128>}, {transform_indices = @transform_4, window_bounds = array<i64: 1, 8, 16, 128>}]} {
    %c8_i32 = arith.constant 8 : i32
    %0 = arith.muli %arg1, %c8_i32 : i32
    %c0_i32 = arith.constant 0 : i32
    %1 = arith.addi %c0_i32, %0 : i32
    %c0_i32_0 = arith.constant 0 : i32
    %2 = arith.addi %1, %c0_i32_0 : i32
    %c0 = arith.constant 0 : index
    %3 = arith.index_cast %2 : i32 to index
    %c0_1 = arith.constant 0 : index
    %c0_2 = arith.constant 0 : index
    %4 = vector.load %arg2[%c0, %3, %c0_1, %c0_2] : memref<1x18x18x128xbf16, #tpu.memory_space<vmem>>, vector<1x8x16x128xbf16>
    %5 = vector.shape_cast %4 : vector<1x8x16x128xbf16> to vector<8x16x128xbf16>
    %c0_i32_3 = arith.constant 0 : i32
    %6 = arith.addi %c0_i32_3, %0 : i32
    %c0_i32_4 = arith.constant 0 : i32
    %7 = arith.addi %6, %c0_i32_4 : i32
    %c0_5 = arith.constant 0 : index
    %8 = arith.index_cast %7 : i32 to index
    %c1 = arith.constant 1 : index
    %c0_6 = arith.constant 0 : index
    %9 = vector.load %arg2[%c0_5, %8, %c1, %c0_6] : memref<1x18x18x128xbf16, #tpu.memory_space<vmem>>, vector<1x8x16x128xbf16>
    %10 = vector.shape_cast %9 : vector<1x8x16x128xbf16> to vector<8x16x128xbf16>
    %c0_i32_7 = arith.constant 0 : i32
    %11 = arith.addi %c0_i32_7, %0 : i32
    %c0_i32_8 = arith.constant 0 : i32
    %12 = arith.addi %11, %c0_i32_8 : i32
    %c0_9 = arith.constant 0 : index
    %13 = arith.index_cast %12 : i32 to index
    %c2 = arith.constant 2 : index
    %c0_10 = arith.constant 0 : index
    %14 = vector.load %arg2[%c0_9, %13, %c2, %c0_10] : memref<1x18x18x128xbf16, #tpu.memory_space<vmem>>, vector<1x8x16x128xbf16>
    %15 = vector.shape_cast %14 : vector<1x8x16x128xbf16> to vector<8x16x128xbf16>
    %16 = tpu.concatenate %5, %10, %15 in 2 : vector<8x16x128xbf16>, vector<8x16x128xbf16>, vector<8x16x128xbf16> -> vector<8x16x384xbf16>
    %17 = vector.shape_cast %16 : vector<8x16x384xbf16> to vector<128x384xbf16>
    %c0_11 = arith.constant 0 : index
    %c0_12 = arith.constant 0 : index
    %c0_13 = arith.constant 0 : index
    %18 = vector.load %arg3[%c0_11, %c0_12, %c0_13] : memref<3x384x128xbf16, #tpu.memory_space<vmem>>, vector<1x384x128xbf16>
    %19 = vector.shape_cast %18 : vector<1x384x128xbf16> to vector<384x128xbf16>
    %cst = arith.constant dense<0.000000e+00> : vector<128x128xf32>
    %20 = tpu.matmul %17, %19, %cst {dimension_numbers = #tpu.dot_dimension_numbers<[1], [0], [0], [1], [0, 0, 1, 1], [], []>} : vector<128x384xbf16>, vector<384x128xbf16>, vector<128x128xf32> -> vector<128x128xf32>
    %c0_i32_14 = arith.constant 0 : i32
    %21 = arith.addi %c0_i32_14, %0 : i32
    %c1_i32 = arith.constant 1 : i32
    %22 = arith.addi %21, %c1_i32 : i32
    %c0_15 = arith.constant 0 : index
    %23 = arith.index_cast %22 : i32 to index
    %c0_16 = arith.constant 0 : index
    %c0_17 = arith.constant 0 : index
    %24 = vector.load %arg2[%c0_15, %23, %c0_16, %c0_17] : memref<1x18x18x128xbf16, #tpu.memory_space<vmem>>, vector<1x8x16x128xbf16>
    %25 = vector.shape_cast %24 : vector<1x8x16x128xbf16> to vector<8x16x128xbf16>
    %c0_i32_18 = arith.constant 0 : i32
    %26 = arith.addi %c0_i32_18, %0 : i32
    %c1_i32_19 = arith.constant 1 : i32
    %27 = arith.addi %26, %c1_i32_19 : i32
    %c0_20 = arith.constant 0 : index
    %28 = arith.index_cast %27 : i32 to index
    %c1_21 = arith.constant 1 : index
    %c0_22 = arith.constant 0 : index
    %29 = vector.load %arg2[%c0_20, %28, %c1_21, %c0_22] : memref<1x18x18x128xbf16, #tpu.memory_space<vmem>>, vector<1x8x16x128xbf16>
    %30 = vector.shape_cast %29 : vector<1x8x16x128xbf16> to vector<8x16x128xbf16>
    %c0_i32_23 = arith.constant 0 : i32
    %31 = arith.addi %c0_i32_23, %0 : i32
    %c1_i32_24 = arith.constant 1 : i32
    %32 = arith.addi %31, %c1_i32_24 : i32
    %c0_25 = arith.constant 0 : index
    %33 = arith.index_cast %32 : i32 to index
    %c2_26 = arith.constant 2 : index
    %c0_27 = arith.constant 0 : index
    %34 = vector.load %arg2[%c0_25, %33, %c2_26, %c0_27] : memref<1x18x18x128xbf16, #tpu.memory_space<vmem>>, vector<1x8x16x128xbf16>
    %35 = vector.shape_cast %34 : vector<1x8x16x128xbf16> to vector<8x16x128xbf16>
    %36 = tpu.concatenate %25, %30, %35 in 2 : vector<8x16x128xbf16>, vector<8x16x128xbf16>, vector<8x16x128xbf16> -> vector<8x16x384xbf16>
    %37 = vector.shape_cast %36 : vector<8x16x384xbf16> to vector<128x384xbf16>
    %c1_28 = arith.constant 1 : index
    %c0_29 = arith.constant 0 : index
    %c0_30 = arith.constant 0 : index
    %38 = vector.load %arg3[%c1_28, %c0_29, %c0_30] : memref<3x384x128xbf16, #tpu.memory_space<vmem>>, vector<1x384x128xbf16>
    %39 = vector.shape_cast %38 : vector<1x384x128xbf16> to vector<384x128xbf16>
    %cst_31 = arith.constant dense<0.000000e+00> : vector<128x128xf32>
    %40 = tpu.matmul %37, %39, %cst_31 {dimension_numbers = #tpu.dot_dimension_numbers<[1], [0], [0], [1], [0, 0, 1, 1], [], []>} : vector<128x384xbf16>, vector<384x128xbf16>, vector<128x128xf32> -> vector<128x128xf32>
    %41 = arith.addf %20, %40 : vector<128x128xf32>
    %c0_i32_32 = arith.constant 0 : i32
    %42 = arith.addi %c0_i32_32, %0 : i32
    %c2_i32 = arith.constant 2 : i32
    %43 = arith.addi %42, %c2_i32 : i32
    %c0_33 = arith.constant 0 : index
    %44 = arith.index_cast %43 : i32 to index
    %c0_34 = arith.constant 0 : index
    %c0_35 = arith.constant 0 : index
    %45 = vector.load %arg2[%c0_33, %44, %c0_34, %c0_35] : memref<1x18x18x128xbf16, #tpu.memory_space<vmem>>, vector<1x8x16x128xbf16>
    %46 = vector.shape_cast %45 : vector<1x8x16x128xbf16> to vector<8x16x128xbf16>
    %c0_i32_36 = arith.constant 0 : i32
    %47 = arith.addi %c0_i32_36, %0 : i32
    %c2_i32_37 = arith.constant 2 : i32
    %48 = arith.addi %47, %c2_i32_37 : i32
    %c0_38 = arith.constant 0 : index
    %49 = arith.index_cast %48 : i32 to index
    %c1_39 = arith.constant 1 : index
    %c0_40 = arith.constant 0 : index
    %50 = vector.load %arg2[%c0_38, %49, %c1_39, %c0_40] : memref<1x18x18x128xbf16, #tpu.memory_space<vmem>>, vector<1x8x16x128xbf16>
    %51 = vector.shape_cast %50 : vector<1x8x16x128xbf16> to vector<8x16x128xbf16>
    %c0_i32_41 = arith.constant 0 : i32
    %52 = arith.addi %c0_i32_41, %0 : i32
    %c2_i32_42 = arith.constant 2 : i32
    %53 = arith.addi %52, %c2_i32_42 : i32
    %c0_43 = arith.constant 0 : index
    %54 = arith.index_cast %53 : i32 to index
    %c2_44 = arith.constant 2 : index
    %c0_45 = arith.constant 0 : index
    %55 = vector.load %arg2[%c0_43, %54, %c2_44, %c0_45] : memref<1x18x18x128xbf16, #tpu.memory_space<vmem>>, vector<1x8x16x128xbf16>
    %56 = vector.shape_cast %55 : vector<1x8x16x128xbf16> to vector<8x16x128xbf16>
    %57 = tpu.concatenate %46, %51, %56 in 2 : vector<8x16x128xbf16>, vector<8x16x128xbf16>, vector<8x16x128xbf16> -> vector<8x16x384xbf16>
    %58 = vector.shape_cast %57 : vector<8x16x384xbf16> to vector<128x384xbf16>
    %c2_46 = arith.constant 2 : index
    %c0_47 = arith.constant 0 : index
    %c0_48 = arith.constant 0 : index
    %59 = vector.load %arg3[%c2_46, %c0_47, %c0_48] : memref<3x384x128xbf16, #tpu.memory_space<vmem>>, vector<1x384x128xbf16>
    %60 = vector.shape_cast %59 : vector<1x384x128xbf16> to vector<384x128xbf16>
    %cst_49 = arith.constant dense<0.000000e+00> : vector<128x128xf32>
    %61 = tpu.matmul %58, %60, %cst_49 {dimension_numbers = #tpu.dot_dimension_numbers<[1], [0], [0], [1], [0, 0, 1, 1], [], []>} : vector<128x384xbf16>, vector<384x128xbf16>, vector<128x128xf32> -> vector<128x128xf32>
    %62 = arith.addf %41, %61 : vector<128x128xf32>
    %c0_50 = arith.constant 0 : index
    %c0_51 = arith.constant 0 : index
    %63 = vector.load %arg4[%c0_50, %c0_51] : memref<1x128xf32, #tpu.memory_space<vmem>>, vector<1x128xf32>
    %64 = vector.broadcast %63 : vector<1x128xf32> to vector<128x128xf32>
    %65 = arith.addf %62, %64 : vector<128x128xf32>
    %c0_52 = arith.constant 0 : index
    %c0_53 = arith.constant 0 : index
    %c0_54 = arith.constant 0 : index
    %c0_55 = arith.constant 0 : index
    %66 = vector.load %arg5[%c0_52, %c0_53, %c0_54, %c0_55] : memref<1x8x16x128xbf16, #tpu.memory_space<vmem>>, vector<1x8x16x128xbf16>
    %67 = vector.shape_cast %66 : vector<1x8x16x128xbf16> to vector<8x16x128xbf16>
    %68 = vector.shape_cast %67 : vector<8x16x128xbf16> to vector<128x128xbf16>
    %69 = arith.extf %68 : vector<128x128xbf16> to vector<128x128xf32>
    %70 = arith.addf %65, %69 : vector<128x128xf32>
    %cst_56 = arith.constant 0.000000e+00 : f32
    %71 = vector.broadcast %cst_56 : f32 to vector<128x128xf32>
    %72 = arith.maximumf %70, %71 : vector<128x128xf32>
    %73 = vector.shape_cast %72 : vector<128x128xf32> to vector<8x16x128xf32>
    %c0_57 = arith.constant 0 : index
    %c0_58 = arith.constant 0 : index
    %c0_59 = arith.constant 0 : index
    %c0_60 = arith.constant 0 : index
    %74 = vector.load %arg6[%c0_57, %c0_58, %c0_59, %c0_60] : memref<1x8x16x128xf32, #tpu.memory_space<vmem>>, vector<1x8x16x128xf32>
    %75 = vector.shape_cast %74 : vector<1x8x16x128xf32> to vector<8x16x128xf32>
    %76 = vector.shape_cast %73 : vector<8x16x128xf32> to vector<1x8x16x128xf32>
    tpu.vector_store %arg6[%c0_57, %c0_58, %c0_59, %c0_60], %76 {strides = array<i32>} : memref<1x8x16x128xf32, #tpu.memory_space<vmem>>, vector<1x8x16x128xf32>,
    return
  }
  func.func @transform_0(%arg0: i32, %arg1: i32) -> (i32, i32, i32, i32) {
    %c0_i32 = arith.constant 0 : i32
    %c0_i32_0 = arith.constant 0 : i32
    %c0_i32_1 = arith.constant 0 : i32
    %c0_i32_2 = arith.constant 0 : i32
    return %arg0, %c0_i32, %c0_i32_0, %c0_i32_1 : i32, i32, i32, i32
  }
  func.func @transform_1(%arg0: i32, %arg1: i32) -> (i32, i32, i32) {
    %c0_i32 = arith.constant 0 : i32
    %c0_i32_0 = arith.constant 0 : i32
    %c0_i32_1 = arith.constant 0 : i32
    %c0_i32_2 = arith.constant 0 : i32
    return %c0_i32, %c0_i32_0, %c0_i32_1 : i32, i32, i32
  }
  func.func @transform_2(%arg0: i32, %arg1: i32) -> (i32, i32) {
    %c0_i32 = arith.constant 0 : i32
    %c0_i32_0 = arith.constant 0 : i32
    %c0_i32_1 = arith.constant 0 : i32
    return %c0_i32, %c0_i32_0 : i32, i32
  }
  func.func @transform_3(%arg0: i32, %arg1: i32) -> (i32, i32, i32, i32) {
    %c0_i32 = arith.constant 0 : i32
    %c0_i32_0 = arith.constant 0 : i32
    %c0_i32_1 = arith.constant 0 : i32
    return %arg0, %arg1, %c0_i32, %c0_i32_0 : i32, i32, i32, i32
  }
  func.func @transform_4(%arg0: i32, %arg1: i32) -> (i32, i32, i32, i32) {
    %c0_i32 = arith.constant 0 : i32
    %c0_i32_0 = arith.constant 0 : i32
    %c0_i32_1 = arith.constant 0 : i32
    return %arg0, %arg1, %c0_i32, %c0_i32_0 : i32, i32, i32, i32
  }
}

</mosaic_0001>

<bundles_post_ra>
// kernel: forward.4
= control target key start
LH: loop header
LB: loop body
LE: loop exit
PB: predicated region body
PF: predicated region fallthrough
CT: control target
= control target key end

     0   :  { %s817_s12 = smov 0   ;;  %s819_s13 = smov 0   ;;  %s896_s0 = inlined_call_operand.vmem [shape: bf16[2,16,16,4], index: 0, kind: input, shape index: {}]   ;;  %s897_s1 = inlined_call_operand.vmem [shape: bf16[1,4,128], index: 1, kind: input, shape index: {}]   ;;  %s898_s2 = inlined_call_operand.vmem [shape: f32[1,128], index: 2, kind: input, shape index: {}]   ;;  %s899_s3 = inlined_call_operand.vmem [shape: bf16[2,16,16,128], index: 3, kind: output, shape index: {}]  }
   0x1   :  { %s821_s14 = smov 0   ;;  %s823_s15 = smov 0  }
   0x2   :  { %s825_s16 = smov 0  }
   0x3 LB: > { %s22_s17 = sadd.s32 1, %s787_s14  ;;  %s25_s18 = sadd.s32 1, %s791_s15  ;;  %s795_s16 = sphi %s825_s16, %s13_s16   ;;  %s791_s15 = sphi %s823_s15, %s903_s15   ;;  %s787_s14 = sphi %s821_s14, %s902_s14   ;;  %s783_s13 = sphi %s819_s13, %s901_s13   ;;  %s779_s12 = sphi %s817_s12, %s900_s12  }
   0x4   : > { %p23_p0 = scmp.ge.s32.totalorder %s22_s17, 2  ;;  %p567_p1 = scmp.ge.s32.totalorder %s795_s16, 1 }
   0x5   : > { %p151_p2 = scmp.lt.s32.totalorder %s795_s16, 5 }
   0x6   : > { %s905_s17 = smov (%p23_p0, %s22_s17), 0  ;;  %s907_s18 = smov (!%p23_p0, %s25_s18), %s791_s15 }
   0x7   : > { %p152_p3 = pnand %p567_p1, %p151_p2  ;;  %p27_p4 = scmp.ge.s32.totalorder %s907_s18, 2 }
   0x8   : > { %v217_v0 = vld [vmem:[%s897_s1] sm:$0x3] (!%p152_p3)  ;;  %vm290_vm0 = vcmask (!%p152_p3), 1041408   ;;  %p180_p5 = scmp.lt.s32.totalorder (!%p152_p3), %s783_s13, 1  ;;  %s614_s21 = sshll.u32 (!%p152_p3), %s779_s12, 6  ;;  %vm265_vm1 = vcmask (!%p152_p3), 31744  }
   0x9   : > { %s909_s18 = smov (%p27_p4, %s907_s18), 0  ;;  %155 = sbr.rel (%p152_p3) target bundleno = 251 (0xfb), region = 32 }
   0xa   : > { %707 = vmatprep.subr.msk.bf16.mxu0 (!%p152_p3), %vm290_vm0, %v217_v0  ;;  %708 = vmatprep.subr.msk.bf16.mxu1 (!%p152_p3), %vm290_vm0, %v217_v0  ;;  %v292_v1 = vsel (!%p152_p3), %vm290_vm0, %v217_v0, 0  ;;  %s570_s27 = sshll.u32 (!%p152_p3), %s779_s12, 3  ;;  %v577_v11 = vld [vmem:[%s898_s2] ss:$0 sm:$0xff] (!%p152_p3) }
   0xb   : > { %688 = vmatpush3.bf16.msra.mxu0 (!%p152_p3), %v292_v1  ;;  %706 = vmatpush3.bf16.msra.mxu1 (!%p152_p3), %v292_v1  ;;  %p188_p6 = scmp.lt.s32.totalorder (!%p152_p3), %s570_s27, 15 }
  0x10   : > { %s911_s13 = smov (!%p180_p5, %s783_s13), 1  ;;  %s913_s27 = smov (!%p188_p6, %s570_s27), 15 }
  0x11   : > { %s612_s22 = sshll.u32 %s911_s13, 7  ;;  %s571_s28 = sshll.u32 %s913_s27, 1 }
  0x12   : > { %s184_s25 = scalar_lea.vmem %s896_s0, %s612_s22  ;;  %s572_s29 = sshll.u32 %s911_s13, 5 }
  0x13   : > { %s200_s26 = scalar_lea.vmem %s184_s25, %s614_s21  ;;  %s192_s30 = sadd.s32 %s572_s29, %s571_s28 }
  0x14   : > { %v749_v2 = vld [vmem:[%s200_s26] sm:$0xff]   ;;  %v751_v4 = vld [vmem:[%s200_s26 + $0x8] sm:$0xff]   ;;  %v753_v6 = vld [vmem:[%s200_s26 + $0x10] sm:$0xff]   ;;  %s573_s6 = sshll.u32 %s192_s30, 2 }
  0x15   : > { %v750_v3 = vld [vmem:[%s200_s26 + $0x20] sm:$0xff]   ;;  %689 = vmatprep.mubr.msk.bf16.mxu0 %vm265_vm1, %v749_v2  ;;  %v752_v5 = vld [vmem:[%s200_s26 + $0x28] sm:$0xff]   ;;  %v754_v7 = vld [vmem:[%s200_s26 + $0x30] sm:$0xff]   ;;  %s871_s9 = scalar_lea.vmem %s899_s3, %s573_s6 }
  0x16   : > { %697 = vmatprep.mubr.msk.bf16.mxu1 %vm265_vm1, %v750_v3  ;;  %690 = vmatmul.mubr.msk.bf16.vlgmr.msra.gmra.mrb[0].mxu0 %vm265_vm1, %v751_v4  ;;  %v755_v8 = vld [vmem:[%s200_s26 + $0x18] sm:$0xff]  }
  0x17   : > { %698 = vmatmul.mubr.msk.bf16.vlgmr.msra.gmra.mrb[0].mxu1 %vm265_vm1, %v752_v5  ;;  %693 = vmatprep.mubr.msk.bf16.mxu0 %vm265_vm1, %v753_v6  ;;  %v756_v9 = vld [vmem:[%s200_s26 + $0x38] sm:$0xff]  }
  0x18   : > { %701 = vmatprep.mubr.msk.bf16.mxu1 %vm265_vm1, %v754_v7 }
  0x1e   : > { %694 = vmatmul.mubr.msk.bf16.gmra.mrb[4].mxu0 %vm265_vm1, %v755_v8 }
  0x1f   : > { %702 = vmatmul.mubr.msk.bf16.gmra.mrb[4].mxu1 %vm265_vm1, %v756_v9 }
  0xe9   : > { %v691_v10 = vpop.f32.mrb[0].mxu0 }
  0xea   : > { %v699_v12 = vpop.f32.mrb[0].mxu1  ;;  %v328_v13 = vpop.f32.mrb[1].mxu0  ;;  %v337_v16 = vadd.f32 %v691_v10, %v577_v11 }
  0xeb   : > { %v360_v14 = vpop.f32.mrb[1].mxu1  ;;  %v692_v15 = vpop.f32.mrb[2].mxu0  ;;  %v369_v20 = vadd.f32 %v699_v12, %v577_v11  ;;  %v329_v21 = vadd.f32 %v577_v11, %v328_v13 }
  0xec   : > { %v340_v17 = vadd.f32 %v692_v15, %v577_v11  ;;  %v700_v18 = vpop.f32.mrb[2].mxu1  ;;  %v331_v19 = vpop.f32.mrb[3].mxu0  ;;  %v361_v25 = vadd.f32 %v577_v11, %v360_v14 }
  0xed   : > { %v372_v22 = vadd.f32 %v700_v18, %v577_v11  ;;  %v332_v23 = vadd.f32 %v577_v11, %v331_v19  ;;  %v363_v24 = vpop.f32.mrb[3].mxu1 }
  0xee   : > { %v639_v26 = vpack.c.bf16 %v340_v17, %v337_v16  ;;  %v364_v27 = vadd.f32 %v577_v11, %v363_v24 }
  0xef   : > { %v659_v28 = vpack.c.bf16 %v372_v22, %v369_v20  ;;  %v634_v29 = vpack.c.bf16 %v332_v23, %v329_v21 }
  0xf0   : > { %671 = vst [vmem:[%s871_s9 + $0x8] sm:$0xff] %v639_v26   ;;  %v654_v30 = vpack.c.bf16 %v364_v27, %v361_v25 }
  0xf1   : > { %675 = vst [vmem:[%s871_s9 + $0x28] sm:$0xff] %v659_v28   ;;  %635 = vst [vmem:[%s871_s9] sm:$0xff] %v634_v29   ;;  %v695_v31 = vpop.f32.mrb[4].mxu0 }
  0xf2   : > { %674 = vst [vmem:[%s871_s9 + $0x20] sm:$0xff] %v654_v30   ;;  %v703_v32 = vpop.f32.mrb[4].mxu1  ;;  %v344_v33 = vpop.f32.mrb[5].mxu0  ;;  %v353_v36 = vadd.f32 %v695_v31, %v577_v11 }
  0xf3   : > { %v376_v34 = vpop.f32.mrb[5].mxu1  ;;  %v696_v35 = vpop.f32.mrb[6].mxu0  ;;  %v385_v40 = vadd.f32 %v703_v32, %v577_v11  ;;  %v345_v41 = vadd.f32 %v577_v11, %v344_v33 }
  0xf4   : > { %v356_v37 = vadd.f32 %v696_v35, %v577_v11  ;;  %v704_v38 = vpop.f32.mrb[6].mxu1  ;;  %v347_v39 = vpop.f32.mrb[7].mxu0  ;;  %v377_v45 = vadd.f32 %v577_v11, %v376_v34 }
  0xf5   : > { %v388_v42 = vadd.f32 %v704_v38, %v577_v11  ;;  %v348_v43 = vadd.f32 %v577_v11, %v347_v39  ;;  %v379_v44 = vpop.f32.mrb[7].mxu1 }
  0xf6   : > { %v649_v46 = vpack.c.bf16 %v356_v37, %v353_v36  ;;  %v380_v47 = vadd.f32 %v577_v11, %v379_v44 }
  0xf7   : > { %v669_v48 = vpack.c.bf16 %v388_v42, %v385_v40  ;;  %v644_v49 = vpack.c.bf16 %v348_v43, %v345_v41 }
  0xf8   : > { %673 = vst [vmem:[%s871_s9 + $0x18] sm:$0xff] %v649_v46   ;;  %v664_v50 = vpack.c.bf16 %v380_v47, %v377_v45 }
  0xf9   : > { %677 = vst [vmem:[%s871_s9 + $0x38] sm:$0xff] %v669_v48   ;;  %672 = vst [vmem:[%s871_s9 + $0x10] sm:$0xff] %v644_v49  }
  0xfa   : > { %676 = vst [vmem:[%s871_s9 + $0x30] sm:$0xff] %v664_v50  }
  0xfb PF: > { %s13_s16 = sadd.s32 1, %s795_s16   ;;  %s900_s12 = smov %s787_s14 }
  0xfc   : > { %p10_p7 = scmp.ge.s32.totalorder %s13_s16, 6   ;;  %s901_s13 = smov %s791_s15 }
  0xfd   : > { %s902_s14 = smov %s905_s17  ;;  %s903_s15 = smov %s909_s18 }
  0xfe   :  { %12 = sbr.rel (!%p10_p7) target bundleno = 3 (0x3), region = 63 }

// kernel: forward.3
= control target key start
LH: loop header
LB: loop body
LE: loop exit
PB: predicated region body
PF: predicated region fallthrough
CT: control target
= control target key end

     0   :  { %s3762_s12 = smov 0   ;;  %s3764_s13 = smov 0   ;;  %s4709_s0 = inlined_call_operand.vmem [shape: bf16[2,18,18,4], index: 0, kind: input, shape index: {}]   ;;  %s4710_s1 = inlined_call_operand.vmem [shape: bf16[9,4,128], index: 1, kind: input, shape index: {}]   ;;  %s4711_s2 = inlined_call_operand.vmem [shape: f32[1,128], index: 2, kind: input, shape index: {}]   ;;  %s4712_s3 = inlined_call_operand.vmem [shape: bf16[2,16,16,128], index: 3, kind: output, shape index: {}]  }
   0x1   :  { %s3766_s14 = smov 0   ;;  %s3768_s15 = smov 0  }
   0x2   :  { %s3770_s16 = smov 0  }
   0x3 LB: > { %s22_s17 = sadd.s32 1, %s3732_s14  ;;  %s25_s18 = sadd.s32 1, %s3736_s15  ;;  %s3740_s16 = sphi %s3770_s16, %s13_s16   ;;  %s3736_s15 = sphi %s3768_s15, %s4738_s15   ;;  %s3732_s14 = sphi %s3766_s14, %s4737_s14   ;;  %s3728_s13 = sphi %s3764_s13, %s4736_s13   ;;  %s3724_s12 = sphi %s3762_s12, %s4735_s12  }
   0x4   : > { %p23_p0 = scmp.ge.s32.totalorder %s22_s17, 2  ;;  %p2885_p1 = scmp.ge.s32.totalorder %s3740_s16, 1 }
   0x5   : > { %p151_p2 = scmp.lt.s32.totalorder %s3740_s16, 5 }
   0x6   : > { %s4740_s17 = smov (%p23_p0, %s22_s17), 0  ;;  %s4742_s18 = smov (!%p23_p0, %s25_s18), %s3736_s15 }
   0x7   : > { %p152_p3 = pnand %p2885_p1, %p151_p2  ;;  %p27_p4 = scmp.ge.s32.totalorder %s4742_s18, 2 }
   0x9   : > { %s4744_s18 = smov (%p27_p4, %s4742_s18), 0  ;;  %155 = sbr.rel (%p152_p3) target bundleno = 423 (0x1a7), region = 32 }
  0x10   : > { %v2894_v0 = vld [vmem:[%s4710_s1 + $0x2] sm:$0x3]  ;;  %vm472_vm0 = vcmask 1041408   ;;  %v3011_v1 = vld [vmem:[%s4710_s1 + $0x8] sm:$0x3]  ;;  %p180_p5 = scmp.lt.s32.totalorder %s3728_s13, 1 }
  0x11   : > { %3626 = vmatprep.subr.msk.bf16.mxu1 %vm472_vm0, %v2894_v0  ;;  %3630 = vmatprep.subr.msk.bf16.mxu0 %vm472_vm0, %v3011_v1  ;;  %v474_v2 = vsel %vm472_vm0, %v2894_v0, 0  ;;  %v3804_v3 = vsel %vm472_vm0, %v3011_v1, 0  ;;  %v217_v4 = vld [vmem:[%s4710_s1] sm:$0x3]  ;;  %s3189_s25 = smul.u32 96, %s3724_s12  ;;  %vm447_vm3 = vcmask 31744  }
  0x12   : > { %3335 = vmatpush3.bf16.msra.mxu1 %v474_v2  ;;  %3407 = vmatpush3.bf16.msra.mxu0 %v3804_v3  ;;  %s4746_s13 = smov (!%p180_p5, %s3728_s13), 1  ;;  %v3044_v5 = vld [vmem:[%s4710_s1 + $0xa] sm:$0x3]  ;;  %vm226_vm1 = vsmask.f32 3328  ;;  %v3846_v17 = vsel %vm472_vm0, %v217_v4, 0 }
  0x13   : > { %3627 = vmatprep.subr.msk.bf16.mxu1 %vm472_vm0, %v217_v4  ;;  %s3636_s28 = smul.u32 216, %s4746_s13  ;;  %3632 = vmatprep.subr.msk.bf16.mxu0 %vm472_vm0, %v3044_v5  ;;  %vm227_vm2 = vsmask.f32 7440  ;;  %v3852_v26 = vld [vmem:[%s4710_s1 + $0xc] sm:$0x3]  ;;  %v3869_v37 = vsel %vm472_vm0, %v3044_v5, 0 }
  0x14   : > { %vm3861_vm4 = vmor %vm226_vm1, %vm227_vm2  ;;  %v3873_v41 = vsel %vm472_vm0, %v3852_v26, 0  ;;  %vm761_vm5 = vcmask 1042432   ;;  %vm762_vm6 = vcmask 1046532   ;;  %s2889_s27 = sshll.u32 %s4746_s13, 5 }
  0x15   : > { %s184_s4 = scalar_lea.vmem %s4709_s0, %s3636_s28  ;;  %vm4016_vm7 = vmor %vm761_vm5, %vm762_vm6 }
  0x16   : > { %s3822_s5 = scalar_lea.vmem %s184_s4, %s3189_s25  ;;  %s2887_s25 = sshll.u32 %s3724_s12, 3 }
  0x17   : > { %v3825_v6 = vld [vmem:[%s3822_s5] sm:$0xf]  ;;  %v3828_v7 = vld [vmem:[%s3822_s5 + $0x4] sm:$0xf]  ;;  %v3831_v8 = vld [vmem:[%s3822_s5 + $0x8] sm:$0x1] }
  0x18   : > { %v230_v9 = vshrl.u32 %v3825_v6, 16  ;;  %v233_v10 = vshll.u32 %v3825_v6, 16  ;;  %v239_v11 = vshll.u32 %v3828_v7, 16  ;;  %v243_v12 = vshrl.u32 %v3828_v7, 16  ;;  %v2987_v13 = vld [vmem:[%s3822_s5 + $0xc] sm:$0xf] }
  0x19   : > { %v249_v14 = vshll.u32 %v3831_v8, 16  ;;  %v3840_v15 = vld [vmem:[%s3822_s5 + $0x10] sm:$0xf]  ;;  %v3843_v16 = vld [vmem:[%s3822_s5 + $0x14] sm:$0x1]  ;;  %v1213_v23 = vshrl.u32 %v2987_v13, 16 }
  0x1a   : > { %v232_v18 = vrot.slane %v230_v9, 4  ;;  %v235_v19 = vrot.slane %v233_v10, 5  ;;  %v241_v20 = vrot.slane %v239_v11, 5  ;;  %v245_v21 = vrot.slane %v243_v12, 4  ;;  %v3857_v31 = vld [vmem:[%s3822_s5 + $0xc] sm:$0xf] }
  0x1b   : > { %v251_v22 = vrot.slane %v249_v14, 5  ;;  %v1216_v24 = vshll.u32 %v2987_v13, 16  ;;  %v1222_v25 = vshll.u32 %v3840_v15, 16  ;;  %v1226_v29 = vshrl.u32 %v3840_v15, 16  ;;  %v3866_v36 = vld [vmem:[%s3822_s5 + $0x10] sm:$0xf] }
  0x1c   : > { %v236_v27 = vor.u32 %v235_v19, %v232_v18  ;;  %v246_v28 = vor.u32 %v245_v21, %v241_v20  ;;  %v1232_v30 = vshll.u32 %v3843_v16, 16  ;;  %v1215_v33 = vrot.slane %v1213_v23, 4  ;;  %v3876_v44 = vld [vmem:[%s3822_s5 + $0x14] sm:$0x1]  ;;  %v2990_v55 = vld [vmem:[%s3822_s5 + $0x18] sm:$0xf] }
  0x1d   : > { %v1218_v34 = vrot.slane %v1216_v24, 5  ;;  %v1224_v35 = vrot.slane %v1222_v25, 5  ;;  %v1228_v40 = vrot.slane %v1226_v29, 4  ;;  %v254_v45 = vshrl.u32 %v3857_v31, 16  ;;  %v3889_v60 = vld [vmem:[%s3822_s5 + $0x1c] sm:$0xf] }
  0x1e   : > { %v237_v38 = vrot.slane %v236_v27, 4  ;;  %v247_v39 = vrot.slane %v246_v28, 4  ;;  %v1234_v43 = vrot.slane %v1232_v30, 5  ;;  %v257_v46 = vshll.u32 %v3857_v31, 16  ;;  %v3897_v1 = vld [vmem:[%s3822_s5 + $0x20] sm:$0x1] }
  0x1f   : > { %v1219_v42 = vor.u32 %v1218_v34, %v1215_v33  ;;  %v1229_v49 = vor.u32 %v1228_v40, %v1224_v35  ;;  %v263_v50 = vshll.u32 %v3866_v36, 16  ;;  %v256_v53 = vrot.slane %v254_v45, 4  ;;  %v3905_v21 = vld [vmem:[%s3822_s5 + $0x18] sm:$0xf]  ;;  %v3912_v27 = vld [vmem:[%s3822_s5 + $0x1c] sm:$0xf] }
  0x20   : > { %v242_v47 = vsel %vm3861_vm4, %v237_v38, %v241_v20  ;;  %v252_v48 = vsel %vm3861_vm4, %v247_v39, %v251_v22  ;;  %v259_v54 = vrot.slane %v257_v46, 5  ;;  %v267_v58 = vshrl.u32 %v3866_v36, 16  ;;  %v3920_v38 = vld [vmem:[%s3822_s5 + $0x20] sm:$0x1]  ;;  %p188_p6 = scmp.lt.s32.totalorder %s2887_s25, 15 }
  0x21   : > { %v2895_v51 = vcombine.low %v242_v47, %v252_v48  ;;  %v1220_v52 = vrot.slane %v1219_v42, 4  ;;  %v1230_v56 = vrot.slane %v1229_v49, 4  ;;  %v265_v57 = vrot.slane %v263_v50, 5  ;;  %v2993_v47 = vld [vmem:[%s3822_s5 + $0x24] sm:$0xf] }
  0x22   : > { %v273_v59 = vshll.u32 %v3876_v44, 16  ;;  %v1604_v62 = vrot.slane %v3840_v15, 5  ;;  %v1607_v63 = vrot.slane %v3843_v16, 5  ;;  %v260_v0 = vor.u32 %v259_v54, %v256_v53  ;;  %s4748_s25 = smov (!%p188_p6, %s2887_s25), 15 }
  0x23   : > { %3336 = vmatprep.mubr.msk.bf16.mxu1 %vm447_vm3, %v2895_v51  ;;  %v1225_v61 = vsel %vm3861_vm4, %v1220_v52, %v1224_v35  ;;  %v1235_v2 = vsel %vm3861_vm4, %v1230_v56, %v1234_v43  ;;  %v269_v4 = vrot.slane %v267_v58, 4  ;;  %v1237_v9 = vshrl.u32 %v2990_v55, 16  ;;  %v3930_v52 = vld [vmem:[%s3822_s5 + $0x28] sm:$0xf]  ;;  %s2888_s26 = sshll.u32 %s4748_s25, 1 }
  0x24   : > { %v275_v5 = vrot.slane %v273_v59, 5  ;;  %v3012_v10 = vcombine.low %v1225_v61, %v1235_v2  ;;  %v261_v11 = vrot.slane %v260_v0, 4  ;;  %v1240_v12 = vshll.u32 %v2990_v55, 16  ;;  %v3942_v61 = vld [vmem:[%s3822_s5 + $0x2c] sm:$0x1]  ;;  %s192_s30 = sadd.s32 %s2889_s27, %s2888_s26 }
  0x25   : > { %v1246_v13 = vshll.u32 %v3889_v60, 16  ;;  %v270_v14 = vor.u32 %v269_v4, %v265_v57  ;;  %v1239_v18 = vrot.slane %v1237_v9, 4  ;;  %v1250_v19 = vshrl.u32 %v3889_v60, 16  ;;  %s2890_s12 = sshll.u32 %s192_s30, 2 }
  0x26   : > { %v1256_v20 = vshll.u32 %v3897_v1, 16  ;;  %3408 = vmatprep.mubr.msk.bf16.mxu0 %vm447_vm3, %v3012_v10  ;;  %v266_v22 = vsel %vm3861_vm4, %v261_v11, %v265_v57  ;;  %v1242_v23 = vrot.slane %v1240_v12, 5  ;;  %v1611_v25 = vrot.slane %v3889_v60, 5  ;;  %v3936_v57 = vld [vmem:[%s4710_s1 + $0x4] sm:$0x3] }
  0x27   : > { %v1248_v24 = vrot.slane %v1246_v13, 5  ;;  %v271_v28 = vrot.slane %v270_v14, 4  ;;  %v1252_v29 = vrot.slane %v1250_v19, 4  ;;  %v1614_v33 = vrot.slane %v3897_v1, 5  ;;  %v3949_v11 = vld [vmem:[%s3822_s5 + $0x24] sm:$0xf] }
  0x28   : > { %v1258_v30 = vrot.slane %v1256_v20, 5  ;;  %v1243_v34 = vor.u32 %v1242_v23, %v1239_v18  ;;  %v3917_v35 = vrot.slane %v1611_v25, 4  ;;  %v278_v39 = vshrl.u32 %v3905_v21, 16  ;;  %v3952_v19 = vld [vmem:[%s3822_s5 + $0x28] sm:$0xf] }
  0x29   : > { %v281_v40 = vshll.u32 %v3905_v21, 16  ;;  %v276_v42 = vsel %vm3861_vm4, %v271_v28, %v275_v5  ;;  %v1253_v43 = vor.u32 %v1252_v29, %v1248_v24  ;;  %v287_v45 = vshll.u32 %v3912_v27, 16  ;;  %v3962_v29 = vld [vmem:[%s3822_s5 + $0x2c] sm:$0x1] }
  0x2a   : > { %v291_v46 = vshrl.u32 %v3912_v27, 16  ;;  %v2896_v48 = vcombine.low %v266_v22, %v276_v42  ;;  %v1244_v49 = vrot.slane %v1243_v34, 4  ;;  %v280_v50 = vrot.slane %v278_v39, 4 }
  0x2b   : > { %v283_v51 = vrot.slane %v281_v40, 5  ;;  %v1254_v53 = vrot.slane %v1253_v43, 4  ;;  %v289_v54 = vrot.slane %v287_v45, 5  ;;  %v297_v56 = vshll.u32 %v3920_v38, 16  ;;  %v2996_v45 = vld [vmem:[%s3822_s5 + $0x30] sm:$0xf] }
  0x2c   : > { %v293_v55 = vrot.slane %v291_v46, 4  ;;  %3337 = vmatmul.mubr.msk.bf16.vlgmr.msra.gmra.mrb[0].mxu1 %vm447_vm3, %v2896_v48  ;;  %v1249_v58 = vsel %vm3861_vm4, %v1244_v49, %v1248_v24  ;;  %v1261_v0 = vshrl.u32 %v2993_v47, 16  ;;  %v1264_v2 = vshll.u32 %v2993_v47, 16 }
  0x2d   : > { %v284_v59 = vor.u32 %v283_v51, %v280_v50  ;;  %3353 = vmatpush3.bf16.msra.mxu1 %v3846_v17  ;;  %v1259_v4 = vsel %vm3861_vm4, %v1254_v53, %v1258_v30  ;;  %v299_v9 = vrot.slane %v297_v56, 5  ;;  %v1270_v10 = vshll.u32 %v3930_v52, 16  ;;  %v3972_v50 = vld [vmem:[%s3822_s5 + $0x34] sm:$0xf] }
  0x2e   : > { %v294_v5 = vor.u32 %v293_v55, %v289_v54  ;;  %v3013_v12 = vcombine.low %v1249_v58, %v1259_v4  ;;  %v1263_v14 = vrot.slane %v1261_v0, 4  ;;  %v1266_v18 = vrot.slane %v1264_v2, 5  ;;  %3628 = vmatprep.subr.msk.bf16.mxu1 %vm472_vm0, %v3936_v57  ;;  %v3982_v58 = vld [vmem:[%s3822_s5 + $0x38] sm:$0x1] }
  0x2f   : > { %v285_v13 = vrot.slane %v284_v59, 4  ;;  %v1272_v20 = vrot.slane %v1270_v10, 5  ;;  %v1274_v22 = vshrl.u32 %v3930_v52, 16  ;;  %v1280_v23 = vshll.u32 %v3942_v61, 16 }
  0x30   : > { %v295_v17 = vrot.slane %v294_v5, 4  ;;  %3409 = vmatmul.mubr.msk.bf16.vlgmr.msra.gmra.mrb[0].mxu0 %vm447_vm3, %v3013_v12  ;;  %v1267_v28 = vor.u32 %v1266_v18, %v1263_v14  ;;  %v302_v30 = vshrl.u32 %v3949_v11, 16  ;;  %v305_v34 = vshll.u32 %v3949_v11, 16  ;;  %v3987_v14 = vld [vmem:[%s3822_s5 + $0x30] sm:$0xf] }
  0x31   : > { %v290_v24 = vsel %vm3861_vm4, %v285_v13, %v289_v54  ;;  %3425 = vmatpush3.bf16.msra.mxu0 %v3869_v37  ;;  %v1276_v40 = vrot.slane %v1274_v22, 4  ;;  %v1282_v42 = vrot.slane %v1280_v23, 5  ;;  %v311_v43 = vshll.u32 %v3952_v19, 16  ;;  %v3993_v23 = vld [vmem:[%s3822_s5 + $0x34] sm:$0xf] }
  0x32   : > { %v300_v39 = vsel %vm3861_vm4, %v295_v17, %v299_v9  ;;  %v1268_v47 = vrot.slane %v1267_v28, 4  ;;  %v304_v48 = vrot.slane %v302_v30, 4  ;;  %v307_v49 = vrot.slane %v305_v34, 5  ;;  %3633 = vmatprep.subr.msk.bf16.mxu0 %vm472_vm0, %v3852_v26 }
  0x33   : > { %v2897_v46 = vcombine.low %v290_v24, %v300_v39  ;;  %v1277_v37 = vor.u32 %v1276_v40, %v1272_v20  ;;  %v313_v51 = vrot.slane %v311_v43, 5  ;;  %v315_v53 = vshrl.u32 %v3952_v19, 16  ;;  %v3998_v39 = vld [vmem:[%s3822_s5 + $0x38] sm:$0x1] }
  0x34   : > { %v321_v54 = vshll.u32 %v3962_v29, 16  ;;  %v1273_v55 = vsel %vm3861_vm4, %v1268_v47, %v1272_v20  ;;  %v308_v56 = vor.u32 %v307_v49, %v304_v48  ;;  %v1285_v59 = vshrl.u32 %v2996_v45, 16 }
  0x35   : > { %3340 = vmatprep.mubr.msk.bf16.mxu1 %vm447_vm3, %v2897_v46  ;;  %v1288_v0 = vshll.u32 %v2996_v45, 16  ;;  %v1278_v2 = vrot.slane %v1277_v37, 4  ;;  %v317_v26 = vrot.slane %v315_v53, 4  ;;  %v1294_v5 = vshll.u32 %v3972_v50, 16  ;;  %v3028_v37 = vld [vmem:[%s3822_s5 + $0xc] sm:$0xe] }
  0x36   : > { %v323_v4 = vrot.slane %v321_v54, 5  ;;  %v309_v9 = vrot.slane %v308_v56, 4  ;;  %v1287_v10 = vrot.slane %v1285_v59, 4  ;;  %v1298_v13 = vshrl.u32 %v3972_v50, 16  ;;  %v4010_v56 = vld [vmem:[%s3822_s5 + $0x3c] sm:$0xf] }
  0x37   : > { %v1290_v12 = vrot.slane %v1288_v0, 5  ;;  %v1283_v18 = vsel %vm3861_vm4, %v1278_v2, %v1282_v42  ;;  %v318_v17 = vor.u32 %v317_v26, %v313_v51  ;;  %v1296_v20 = vrot.slane %v1294_v5, 5 }
  0x38   : > { %v1304_v22 = vshll.u32 %v3982_v58, 16  ;;  %v3014_v24 = vcombine.low %v1273_v55, %v1283_v18  ;;  %v314_v28 = vsel %vm3861_vm4, %v309_v9, %v313_v51  ;;  %v1300_v34 = vrot.slane %v1298_v13, 4  ;;  %v4024_v18 = vld [vmem:[%s3822_s5 + $0x44] sm:$0x1] }
  0x39   : > { %v1291_v30 = vor.u32 %v1290_v12, %v1287_v10  ;;  %v319_v40 = vrot.slane %v318_v17, 4  ;;  %v326_v42 = vshrl.u32 %v3987_v14, 16  ;;  %v329_v45 = vshll.u32 %v3987_v14, 16  ;;  %v3029_v17 = vld [vmem:[%s3822_s5 + $0x18] sm:$0xe] }
  0x3a   : > { %v1306_v43 = vrot.slane %v1304_v22, 5  ;;  %3412 = vmatprep.mubr.msk.bf16.mxu0 %vm447_vm3, %v3014_v24  ;;  %v1301_v47 = vor.u32 %v1300_v34, %v1296_v20  ;;  %v335_v48 = vshll.u32 %v3993_v23, 16  ;;  %v339_v49 = vshrl.u32 %v3993_v23, 16 }
  0x3b   : > { %v1292_v46 = vrot.slane %v1291_v30, 4  ;;  %v324_v51 = vsel %vm3861_vm4, %v319_v40, %v323_v4  ;;  %v328_v53 = vrot.slane %v326_v42, 4  ;;  %v331_v54 = vrot.slane %v329_v45, 5  ;;  %v4021_v4 = vld [vmem:[%s3822_s5 + $0x40] sm:$0xf] }
  0x3c   : > { %v345_v55 = vshll.u32 %v3998_v39, 16  ;;  %v2898_v59 = vcombine.low %v314_v28, %v324_v51  ;;  %v1302_v2 = vrot.slane %v1301_v47, 4  ;;  %v337_v26 = vrot.slane %v335_v48, 5  ;;  %v4035_v30 = vld [vmem:[%s3822_s5 + $0x48] sm:$0xf] }
  0x3d   : > { %v1297_v0 = vsel %vm3861_vm4, %v1292_v46, %v1296_v20  ;;  %v332_v9 = vor.u32 %v331_v54, %v328_v53  ;;  %v341_v10 = vrot.slane %v339_v49, 4  ;;  %v3036_v13 = vrot.slane %v3028_v37, 9 }
  0x3e   : > { %v347_v12 = vrot.slane %v345_v55, 5  ;;  %3341 = vmatmul.mubr.msk.bf16.gmra.mrb[4].mxu1 %vm447_vm3, %v2898_v59  ;;  %v1307_v20 = vsel %vm3861_vm4, %v1302_v2, %v1306_v43  ;;  %v1606_v22 = vrot.slane %v1604_v62, 4  ;;  %v350_v24 = vshrl.u32 %v4010_v56, 16  ;;  %v4055_v55 = vld [vmem:[%s3822_s5 + $0x50] sm:$0x1] }
  0x3f   : > { %v353_v28 = vshll.u32 %v4010_v56, 16  ;;  %v3015_v34 = vcombine.low %v1297_v0, %v1307_v20  ;;  %v333_v40 = vrot.slane %v332_v9, 4  ;;  %v342_v42 = vor.u32 %v341_v10, %v337_v26 }
  0x40   : > { %v1605_v45 = vsel %vm4016_vm7, %v3036_v13, %v1604_v62  ;;  %v1608_v43 = vsel %vm4016_vm7, %v1606_v22, %v1607_v63  ;;  %v352_v46 = vrot.slane %v350_v24, 4  ;;  %v359_v48 = vshll.u32 %v4021_v4, 16  ;;  %v4051_v62 = vld [vmem:[%s3822_s5 + $0x4c] sm:$0xf] }
  0x41   : > { %v355_v47 = vrot.slane %v353_v28, 5  ;;  %3413 = vmatmul.mubr.msk.bf16.gmra.mrb[4].mxu0 %vm447_vm3, %v3015_v34  ;;  %v338_v49 = vsel %vm3861_vm4, %v333_v40, %v337_v26  ;;  %v343_v37 = vrot.slane %v342_v42, 4  ;;  %v3045_v15 = vcombine.low %v1605_v45, %v1608_v43  ;;  %v4073_v28 = vld [vmem:[%s3822_s5 + $0x54] sm:$0xf]  ;;  %v4084_v34 = vld [vmem:[%s4710_s1 + $0xe] sm:$0x3] }
  0x42   : > { %v363_v51 = vshrl.u32 %v4021_v4, 16  ;;  %v361_v53 = vrot.slane %v359_v48, 5  ;;  %v369_v63 = vshll.u32 %v4024_v18, 16  ;;  %v3037_v54 = vrot.slane %v3029_v17, 9 }
  0x43   : > { %v356_v16 = vor.u32 %v355_v47, %v352_v46  ;;  %v348_v59 = vsel %vm3861_vm4, %v343_v37, %v347_v12  ;;  %3426 = vmatprep.mubr.msk.bf16.mxu0 %vm447_vm3, %v3045_v15  ;;  %v1615_v2 = vsel %vm4016_vm7, %v3917_v35, %v1614_v33  ;;  %v374_v26 = vshrl.u32 %v4035_v30, 16  ;;  %v3030_v12 = vld [vmem:[%s3822_s5 + $0x24] sm:$0xe]  ;;  %v4089_v37 = vld [vmem:[%s3822_s5 + $0x58] sm:$0xf] }
  0x44   : > { %v365_v0 = vrot.slane %v363_v51, 4  ;;  %v2899_v9 = vcombine.low %v338_v49, %v348_v59  ;;  %v371_v13 = vrot.slane %v369_v63, 5  ;;  %v1612_v17 = vsel %vm4016_vm7, %v3037_v54, %v1611_v25  ;;  %v4098_v54 = vld [vmem:[%s3822_s5 + $0x5c] sm:$0x1] }
  0x45   : > { %v357_v10 = vrot.slane %v356_v16, 4  ;;  %v3046_v22 = vcombine.low %v1612_v17, %v1615_v2  ;;  %v376_v24 = vrot.slane %v374_v26, 4  ;;  %v377_v1 = vshll.u32 %v4035_v30, 16 }
  0x46   : > { %v366_v20 = vor.u32 %v365_v0, %v361_v53  ;;  %3344 = vmatprep.mubr.msk.bf16.mxu1 %vm447_vm3, %v2899_v9  ;;  %v383_v35 = vshll.u32 %v4051_v62, 16  ;;  %v387_v60 = vshrl.u32 %v4051_v62, 16  ;;  %v393_v25 = vshll.u32 %v4055_v55, 16 }
  0x47   : > { %v362_v33 = vsel %vm3861_vm4, %v357_v10, %v361_v53  ;;  %v379_v42 = vrot.slane %v377_v1, 5  ;;  %v3038_v45 = vrot.slane %v3030_v12, 9  ;;  %v1618_v43 = vrot.slane %v3930_v52, 5  ;;  %v3031_v10 = vld [vmem:[%s3822_s5 + $0x30] sm:$0xe] }
  0x48   : > { %v367_v40 = vrot.slane %v366_v20, 4  ;;  %v385_v46 = vrot.slane %v383_v35, 5  ;;  %v389_v47 = vrot.slane %v387_v60, 4  ;;  %v395_v48 = vrot.slane %v393_v25, 5 }
  0x49   : > { %v1621_v49 = vrot.slane %v3942_v61, 5  ;;  %3427 = vmatmul.mubr.msk.bf16.vlgmr.msra.gmra.mrb[0].mxu0 %vm447_vm3, %v3046_v22  ;;  %v380_v51 = vor.u32 %v379_v42, %v376_v24  ;;  %v1619_v16 = vsel %vm4016_vm7, %v3038_v45, %v1618_v43  ;;  %v1620_v53 = vrot.slane %v1618_v43, 4  ;;  %v4119_v42 = vld [vmem:[%s3822_s5 + $0x40] sm:$0xf]  ;;  %v4122_v45 = vld [vmem:[%s3822_s5 + $0x44] sm:$0x1] }
  0x4a   : > { %v372_v15 = vsel %vm3861_vm4, %v367_v40, %v371_v13  ;;  %3443 = vmatpush3.bf16.msra.mxu0 %v3873_v41  ;;  %v390_v52 = vor.u32 %v389_v47, %v385_v46  ;;  %v398_v61 = vshrl.u32 %v4073_v28, 16  ;;  %v401_v59 = vshll.u32 %v4073_v28, 16 }
  0x4b   : > { %v2900_v63 = vcombine.low %v362_v33, %v372_v15  ;;  %v381_v0 = vrot.slane %v380_v51, 4  ;;  %v1622_v2 = vsel %vm4016_vm7, %v1620_v53, %v1621_v49  ;;  %v407_v26 = vshll.u32 %v4089_v37, 16  ;;  %3634 = vmatprep.subr.msk.bf16.mxu0 %vm472_vm0, %v4084_v34  ;;  %v3032_v33 = vld [vmem:[%s3822_s5 + $0x3c] sm:$0xe] }
  0x4c   : > { %v411_v9 = vshrl.u32 %v4089_v37, 16  ;;  %v391_v41 = vrot.slane %v390_v52, 4  ;;  %v3047_v13 = vcombine.low %v1619_v16, %v1622_v2  ;;  %v400_v17 = vrot.slane %v398_v61, 4  ;;  %v3033_v2 = vld [vmem:[%s3822_s5 + $0x48] sm:$0xe] }
  0x4d   : > { %3345 = vmatmul.mubr.msk.bf16.gmra.mrb[8].mxu1 %vm447_vm3, %v2900_v63  ;;  %v403_v12 = vrot.slane %v401_v59, 5  ;;  %v386_v20 = vsel %vm3861_vm4, %v381_v0, %v385_v46  ;;  %v409_v22 = vrot.slane %v407_v26, 5  ;;  %v417_v1 = vshll.u32 %v4098_v54, 16  ;;  %v4137_v59 = vld [vmem:[%s3822_s5 + $0x4c] sm:$0xf] }
  0x4e   : > { %v413_v24 = vrot.slane %v411_v9, 4  ;;  %v396_v35 = vsel %vm3861_vm4, %v391_v41, %v395_v48  ;;  %3430 = vmatprep.mubr.msk.bf16.mxu0 %vm447_vm3, %v3047_v13  ;;  %v3039_v25 = vrot.slane %v3031_v10, 9  ;;  %v1625_v40 = vrot.slane %v3972_v50, 5  ;;  %v4140_v0 = vld [vmem:[%s3822_s5 + $0x50] sm:$0x1] }
  0x4f   : > { %v404_v60 = vor.u32 %v403_v12, %v400_v17  ;;  %v2901_v43 = vcombine.low %v386_v20, %v396_v35  ;;  %v419_v47 = vrot.slane %v417_v1, 5  ;;  %v1628_v49 = vrot.slane %v3982_v58, 5  ;;  %v4148_v17 = vld [vmem:[%s3822_s5 + $0x58] sm:$0xf]  ;;  %v4151_v12 = vld [vmem:[%s3822_s5 + $0x5c] sm:$0x1] }
  0x50   : > { %v414_v46 = vor.u32 %v413_v24, %v409_v22  ;;  %v1626_v48 = vsel %vm4016_vm7, %v3039_v25, %v1625_v40  ;;  %v1627_v51 = vrot.slane %v1625_v40, 4  ;;  %v3040_v16 = vrot.slane %v3032_v33, 9  ;;  %4722 = vst [vmem:[#allocation2_spill] sm:$0xff] %v4151_v12  ;;  %v4161_v35 = vld [vmem:[%s3822_s5 + $0x64] sm:$0xf] }
  0x51   : > { %v405_v15 = vrot.slane %v404_v60, 4  ;;  %3348 = vmatprep.mubr.msk.bf16.mxu1 %vm447_vm3, %v2901_v43  ;;  %v1632_v53 = vrot.slane %v4119_v42, 5  ;;  %v1635_v63 = vrot.slane %v4122_v45, 5  ;;  %v2911_v61 = vcombine.low %v3825_v6, %v3828_v7  ;;  %v3034_v6 = vld [vmem:[%s3822_s5 + $0x54] sm:$0xe]  ;;  %4723 = vst [vmem:[#allocation3_spill] sm:$0xff] %v4161_v35 }
  0x52   : > { %v415_v50 = vrot.slane %v414_v46, 4  ;;  %v1629_v58 = vsel %vm4016_vm7, %v1627_v51, %v1628_v49  ;;  %v1639_v24 = vrot.slane %v4137_v59, 5  ;;  %v1642_v1 = vrot.slane %v4140_v0, 5  ;;  %v4164_v60 = vld [vmem:[%s3822_s5 + $0x68] sm:$0x1] }
  0x53   : > { %v410_v52 = vsel %vm3861_vm4, %v405_v15, %v409_v22  ;;  %v3048_v9 = vcombine.low %v1626_v48, %v1629_v58  ;;  %v1633_v10 = vsel %vm4016_vm7, %v3040_v16, %v1632_v53  ;;  %v1634_v41 = vrot.slane %v1632_v53, 4  ;;  %4724 = vst [vmem:[#allocation4_spill] sm:$0xff] %v4164_v60 }
  0x54   : > { %v420_v26 = vsel %vm3861_vm4, %v415_v50, %v419_v47  ;;  %v3041_v22 = vrot.slane %v3033_v2, 9  ;;  %v1641_v40 = vrot.slane %v1639_v24, 4  ;;  %v3042_v43 = vrot.slane %v3034_v6, 9  ;;  %v3035_v47 = vld [vmem:[%s3822_s5 + $0x60] sm:$0xe] }
  0x55   : > { %v2902_v13 = vcombine.low %v410_v52, %v420_v26  ;;  %3431 = vmatmul.mubr.msk.bf16.gmra.mrb[4].mxu0 %vm447_vm3, %v3048_v9  ;;  %v1636_v20 = vsel %vm4016_vm7, %v1634_v41, %v1635_v63  ;;  %v1646_v46 = vrot.slane %v4148_v17, 5  ;;  %v773_v49 = vrot.slane %v3866_v36, 5  ;;  %v739_v2 = vld [vmem:[%s3822_s5 + $0x18] sm:$0xe]  ;;  %v4196_v6 = vld [vmem:[%s4710_s1 + $0x6] sm:$0x3] }
  0x56   : > { %v3049_v33 = vcombine.low %v1633_v10, %v1636_v20  ;;  %v1640_v25 = vsel %vm4016_vm7, %v3041_v22, %v1639_v24  ;;  %v1649_v15 = vrot.slane %v4151_v12, 5  ;;  %v1643_v48 = vsel %vm4016_vm7, %v1641_v40, %v1642_v1  ;;  %v741_v1 = vld [vmem:[%s3822_s5 + $0x30] sm:$0xe] }
  0x57   : > { %3349 = vmatmul.mubr.msk.bf16.gmra.mrb[12].mxu1 %vm447_vm3, %v2902_v13  ;;  %v1647_v51 = vsel %vm4016_vm7, %v3042_v43, %v1646_v46  ;;  %v1648_v16 = vrot.slane %v1646_v46, 4  ;;  %v1653_v50 = vrot.slane %v4161_v35, 5  ;;  %v2912_v53 = vcombine.low %v3857_v31, %v3866_v36  ;;  %v740_v36 = vld [vmem:[%s3822_s5 + $0x24] sm:$0xe]  ;;  %v4470_v12 = vld [vmem:[%s3822_s5 + $0x70] sm:$0xf] }
  0x58   : > { %3354 = vmatprep.mubr.msk.bf16.mxu1 %vm447_vm3, %v2911_v61  ;;  %3434 = vmatprep.mubr.msk.bf16.mxu0 %vm447_vm3, %v3049_v33  ;;  %v3050_v63 = vcombine.low %v1640_v25, %v1643_v48  ;;  %v3043_v52 = vrot.slane %v3035_v47, 9  ;;  %v1656_v58 = vrot.slane %v4164_v60, 5  ;;  %v738_v61 = vld [vmem:[%s3822_s5 + $0xc] sm:$0xe]  ;;  %v776_v26 = vrot.slane %v3876_v44, 5 }
  0x59   : > { %v2913_v9 = vcombine.low %v3905_v21, %v3912_v27  ;;  %v1650_v10 = vsel %vm4016_vm7, %v1648_v16, %v1649_v15  ;;  %v1655_v41 = vrot.slane %v1653_v50, 4  ;;  %v871_v13 = vsel %vm472_vm0, %v3936_v57, 0  ;;  %v3682_v16 = vld [vmem:[%s3822_s5 + $0x18] sm:$0xff]   ;;  %v4442_v60 = vld [vmem:[%s3822_s5 + $0x64] sm:$0xf] }
  0x5a   : > { %v3051_v31 = vcombine.low %v1647_v51, %v1650_v10  ;;  %v2928_v44 = vrot.slane %v738_v61, 9  ;;  %v775_v20 = vrot.slane %v773_v49, 4  ;;  %v2929_v21 = vrot.slane %v739_v2, 9  ;;  %4725 = vst [vmem:[#allocation5_spill] sm:$0xff] %v4442_v60 }
  0x5b   : > { %v1654_v22 = vsel %vm4016_vm7, %v3043_v52, %v1653_v50  ;;  %v1657_v57 = vsel %vm4016_vm7, %v1655_v41, %v1656_v58  ;;  %v780_v24 = vrot.slane %v3912_v27, 5  ;;  %v783_v40 = vrot.slane %v3920_v38, 5 }
  0x5c   : > { %v4209_v33 = vsel %vm4016_vm7, %v2928_v44, %v773_v49  ;;  %v4213_v25 = vsel %vm4016_vm7, %v775_v20, %v776_v26  ;;  %v2930_v43 = vrot.slane %v740_v36, 9  ;;  %v3052_v49 = vcombine.low %v1654_v22, %v1657_v57  ;;  %v3096_v26 = vld [vmem:[%s3822_s5 + $0x18] sm:$0xf]  ;;  %v3684_v57 = vld [vmem:[%s3822_s5 + $0x24] sm:$0xff]  }
  0x5d   : > { %3435 = vmatmul.mubr.msk.bf16.gmra.mrb[8].mxu0 %vm447_vm3, %v3050_v63  ;;  %v2937_v27 = vcombine.low %v4209_v33, %v4213_v25  ;;  %v4222_v46 = vsel %vm4016_vm7, %v2929_v21, %v780_v24  ;;  %v782_v47 = vrot.slane %v780_v24, 4  ;;  %v787_v15 = vrot.slane %v3952_v19, 5 }
  0x5e   : > { %3438 = vmatprep.mubr.msk.bf16.mxu0 %vm447_vm3, %v3051_v31  ;;  %v790_v48 = vrot.slane %v3962_v29, 5  ;;  %v2931_v38 = vrot.slane %v741_v1, 9  ;;  %v2914_v51 = vcombine.low %v3949_v11, %v3952_v19  ;;  %v797_v63 = vrot.slane %v3998_v39, 5  ;;  %v742_v19 = vld [vmem:[%s3822_s5 + $0x3c] sm:$0xe] }
  0x5f   : > { %3355 = vmatmul.mubr.msk.bf16.vlgmr.msra.gmra.mrb[0].mxu1 %vm447_vm3, %v2912_v53  ;;  %v4231_v50 = vsel %vm4016_vm7, %v782_v47, %v783_v40  ;;  %v794_v53 = vrot.slane %v3993_v23, 5  ;;  %v2915_v52 = vcombine.low %v3987_v14, %v3993_v23  ;;  %v4241_v58 = vsel %vm4016_vm7, %v2930_v43, %v787_v15  ;;  %v737_v14 = vld [vmem:[%s3822_s5] sm:$0xe]  ;;  %v4269_v31 = vld [vmem:[%s3822_s5 + $0x1c] sm:$0xf] }
  0x60   : > { %3371 = vmatpush3.bf16.msra.mxu1 %v871_v13  ;;  %3358 = vmatprep.mubr.msk.bf16.mxu1 %vm447_vm3, %v2913_v9  ;;  %v2938_v29 = vcombine.low %v4222_v46, %v4231_v50  ;;  %v789_v11 = vrot.slane %v787_v15, 4  ;;  %v766_v61 = vrot.slane %v3828_v7, 5  ;;  %v2932_v10 = vrot.slane %v742_v19, 9  ;;  %v743_v1 = vld [vmem:[%s3822_s5 + $0x48] sm:$0xe] }
  0x61   : > { %3629 = vmatprep.subr.msk.bf16.mxu1 %vm472_vm0, %v4196_v6  ;;  %v4247_v2 = vsel %vm4016_vm7, %v2931_v38, %v794_v53  ;;  %v796_v39 = vrot.slane %v794_v53, 4  ;;  %v769_v41 = vrot.slane %v3831_v8, 5  ;;  %v2927_v36 = vrot.slane %v737_v14, 9  ;;  %v4295_v38 = vld [vmem:[%s4710_s1 + $0x10] sm:$0x3] }
  0x62   : > { %v4253_v23 = vsel %vm4016_vm7, %v789_v11, %v790_v48  ;;  %v768_v44 = vrot.slane %v766_v61, 4  ;;  %v801_v20 = vrot.slane %v4021_v4, 5  ;;  %v804_v21 = vrot.slane %v4024_v18, 5  ;;  %v4316_v14 = vld [vmem:[%s3822_s5 + $0x28] sm:$0xf] }
  0x63   : > { %v4262_v9 = vsel %vm4016_vm7, %v796_v39, %v797_v63  ;;  %v2916_v22 = vcombine.low %v4010_v56, %v4021_v4  ;;  %v2051_v24 = vshrl.u32 %v3096_v26, 16  ;;  %v2054_v8 = vshll.u32 %v3096_v26, 16  ;;  %v3686_v4 = vld [vmem:[%s3822_s5 + $0x30] sm:$0xff]   ;;  %v4418_v46 = vld [vmem:[%s3822_s5 + $0x44] sm:$0x1] }
  0x64   : > { %v2060_v40 = vshll.u32 %v4269_v31, 16  ;;  %v2064_v43 = vshrl.u32 %v4269_v31, 16  ;;  %v4281_v47 = vsel %vm4016_vm7, %v2932_v10, %v801_v20  ;;  %v2293_v18 = vsel %vm472_vm0, %v4084_v34, 0  ;;  %v3114_v7 = vld [vmem:[%s3822_s5 + $0x60] sm:$0xf] }
  0x65   : > { %3439 = vmatmul.mubr.msk.bf16.gmra.mrb[12].mxu0 %vm447_vm3, %v3052_v49  ;;  %v803_v49 = vrot.slane %v801_v20, 4  ;;  %v2917_v56 = vcombine.low %v4035_v30, %v4051_v62  ;;  %v767_v15 = vsel %vm4016_vm7, %v2927_v36, %v766_v61  ;;  %v770_v48 = vsel %vm4016_vm7, %v768_v44, %v769_v41  ;;  %v4303_v30 = vld [vmem:[%s3822_s5 + $0x20] sm:$0x1]  ;;  %v3099_v61 = vld [vmem:[%s3822_s5 + $0x24] sm:$0xf] }
  0x66   : > { %3444 = vmatprep.mubr.msk.bf16.mxu0 %vm447_vm3, %v3682_v16  ;;  %v2933_v34 = vrot.slane %v743_v1, 9  ;;  %v2053_v16 = vrot.slane %v2051_v24, 4  ;;  %v2056_v53 = vrot.slane %v2054_v8, 5  ;;  %v4309_v11 = vrot.slane %v2060_v40, 5  ;;  %v744_v44 = vld [vmem:[%s3822_s5 + $0x54] sm:$0xe] }
  0x67   : > { %3359 = vmatmul.mubr.msk.bf16.gmra.mrb[4].mxu1 %vm447_vm3, %v2914_v51  ;;  %v4299_v51 = vsel %vm4016_vm7, %v803_v49, %v804_v21  ;;  %v2066_v19 = vrot.slane %v2064_v43, 4  ;;  %v811_v39 = vrot.slane %v4055_v55, 5  ;;  %v2918_v10 = vcombine.low %v4073_v28, %v4089_v37  ;;  %v3102_v55 = vld [vmem:[%s3822_s5 + $0x30] sm:$0xf]  ;;  %v3688_v20 = vld [vmem:[%s3822_s5 + $0x3c] sm:$0xff]   ;;  %v3689_v1 = vld [vmem:[%s3822_s5 + $0x48] sm:$0xff]  }
  0x68   : > { %3362 = vmatprep.mubr.msk.bf16.mxu1 %vm447_vm3, %v2915_v52  ;;  %v808_v52 = vrot.slane %v4051_v62, 5  ;;  %v2936_v41 = vcombine.low %v767_v15, %v770_v48  ;;  %v2070_v36 = vshll.u32 %v4303_v30, 16  ;;  %v2057_v21 = vor.u32 %v2056_v53, %v2053_v16  ;;  %v4335_v8 = vld [vmem:[%s3822_s5 + $0x34] sm:$0xf] }
  0x69   : > { %v2067_v28 = vor.u32 %v2066_v19, %v4309_v11  ;;  %v2084_v40 = vshll.u32 %v4316_v14, 16  ;;  %v2088_v43 = vshrl.u32 %v4316_v14, 16  ;;  %v815_v15 = vrot.slane %v4089_v37, 5 }
  0x6a   : > { %v4320_v62 = vsel %vm4016_vm7, %v2933_v34, %v808_v52  ;;  %v810_v26 = vrot.slane %v808_v52, 4  ;;  %v2108_v48 = vshll.u32 %v4335_v8, 16  ;;  %v2112_v34 = vshrl.u32 %v4335_v8, 16 }
  0x6b   : > { %v818_v16 = vrot.slane %v4098_v54, 5  ;;  %v2058_v53 = vrot.slane %v2057_v21, 4  ;;  %v2072_v52 = vrot.slane %v2070_v36, 5  ;;  %v2068_v37 = vrot.slane %v2067_v28, 4  ;;  %v4358_v36 = vld [vmem:[%s3822_s5 + $0x2c] sm:$0x1] }
  0x6c   : > { %v4332_v24 = vsel %vm4016_vm7, %v810_v26, %v811_v39  ;;  %v4354_v26 = vrot.slane %v2084_v40, 5  ;;  %v4365_v21 = vld [vmem:[%s3822_s5 + $0x38] sm:$0x1]  ;;  %v1073_v28 = vsel %vm472_vm0, %v4196_v6, 0 }
  0x6d   : > { %3445 = vmatmul.mubr.msk.bf16.vlgmr.msra.gmra.mrb[0].mxu0 %vm447_vm3, %v3684_v57  ;;  %v2078_v57 = vshll.u32 %v3099_v61, 16  ;;  %v3690_v40 = vld [vmem:[%s3822_s5 + $0x54] sm:$0xff]  }
  0x6e   : > { %3461 = vmatpush3.bf16.msra.mxu0 %v2293_v18  ;;  %3448 = vmatprep.mubr.msk.bf16.mxu0 %vm447_vm3, %v3686_v4  ;;  %v2099_v18 = vshrl.u32 %v3102_v55, 16  ;;  %v2934_v4 = vrot.slane %v744_v44, 9 }
  0x6f   : > { %3363 = vmatmul.mubr.msk.bf16.gmra.mrb[8].mxu1 %vm447_vm3, %v2916_v22  ;;  %3635 = vmatprep.subr.msk.bf16.mxu0 %vm472_vm0, %v4295_v38  ;;  %v2075_v22 = vshrl.u32 %v3099_v61, 16  ;;  %v817_v61 = vrot.slane %v815_v15, 4  ;;  %v2080_v54 = vrot.slane %v2078_v57, 5  ;;  %v2114_v57 = vrot.slane %v2112_v34, 4  ;;  %v3108_v34 = vld [vmem:[%s3822_s5 + $0x48] sm:$0xf] }
  0x70   : > { %3366 = vmatprep.mubr.msk.bf16.mxu1 %vm447_vm3, %v2917_v56  ;;  %v2102_v56 = vshll.u32 %v3102_v55, 16  ;;  %v4350_v19 = vsel %vm4016_vm7, %v2934_v4, %v815_v15  ;;  %v2090_v55 = vrot.slane %v2088_v43, 4  ;;  %v2101_v44 = vrot.slane %v2099_v18, 4  ;;  %v4376_v43 = vld [vmem:[%s3822_s5 + $0x40] sm:$0xf] }
  0x71   : > { %v2077_v39 = vrot.slane %v2075_v22, 4  ;;  %v4367_v22 = vrot.slane %v2108_v48, 5  ;;  %v3691_v18 = vld [vmem:[%s3822_s5 + $0x60] sm:$0xff]   ;;  %v2073_v4 = vsel %vm3861_vm4, %v2068_v37, %v2072_v52  ;;  %v2094_v48 = vshll.u32 %v4358_v36, 16 }
  0x72   : > { %v2147_v52 = vshrl.u32 %v3108_v34, 16  ;;  %v2150_v37 = vshll.u32 %v3108_v34, 16 }
  0x73   : > { %v2081_v15 = vor.u32 %v2080_v54, %v2077_v39  ;;  %v2115_v63 = vor.u32 %v2114_v57, %v4367_v22  ;;  %v3111_v57 = vld [vmem:[%s3822_s5 + $0x54] sm:$0xf] }
  0x74   : > { %v2149_v50 = vrot.slane %v2147_v52, 4  ;;  %v2174_v34 = vshll.u32 %v3111_v57, 16 }
  0x75   : > { %3449 = vmatmul.mubr.msk.bf16.gmra.mrb[4].mxu0 %vm447_vm3, %v3688_v20  ;;  %v2104_v20 = vrot.slane %v2102_v56, 5  ;;  %v2063_v56 = vsel %vm3861_vm4, %v2058_v53, %v4309_v11  ;;  %v2132_v11 = vshll.u32 %v4376_v43, 16  ;;  %v2136_v53 = vshrl.u32 %v4376_v43, 16 }
  0x76   : > { %3452 = vmatprep.mubr.msk.bf16.mxu0 %vm447_vm3, %v3689_v1  ;;  %v2118_v1 = vshll.u32 %v4365_v21, 16  ;;  %v3121_v54 = vcombine.low %v2063_v56, %v2073_v4  ;;  %v2116_v56 = vrot.slane %v2115_v63, 4  ;;  %v4423_v63 = vld [vmem:[%s3822_s5 + $0x50] sm:$0x1] }
  0x77   : > { %3367 = vmatmul.mubr.msk.bf16.gmra.mrb[12].mxu1 %vm447_vm3, %v2918_v10  ;;  %v4362_v10 = vsel %vm4016_vm7, %v817_v61, %v818_v16  ;;  %v4387_v16 = vld [vmem:[%s3822_s5 + $0x4c] sm:$0xf]  ;;  %v2091_v61 = vor.u32 %v2090_v55, %v4354_v26  ;;  %v2105_v6 = vor.u32 %v2104_v20, %v2101_v44  ;;  %v2082_v55 = vrot.slane %v2081_v15, 4 }
  0x78   : > { %3372 = vmatprep.mubr.msk.bf16.mxu1 %vm447_vm3, %v2936_v41  ;;  %v3105_v41 = vld [vmem:[%s3822_s5 + $0x3c] sm:$0xf]  ;;  %v2156_v39 = vshll.u32 %v4387_v16, 16  ;;  %v2096_v44 = vrot.slane %v2094_v48, 5  ;;  %v2160_v20 = vshrl.u32 %v4387_v16, 16  ;;  %v2120_v33 = vrot.slane %v2118_v1, 5 }
  0x79   : > { %v2123_v49 = vshrl.u32 %v3105_v41, 16  ;;  %v2126_v13 = vshll.u32 %v3105_v41, 16  ;;  %v2092_v41 = vrot.slane %v2091_v61, 4  ;;  %v4411_v15 = vrot.slane %v2132_v11, 5 }
  0x7a   : > { %v2138_v48 = vrot.slane %v2136_v53, 4  ;;  %v2171_v1 = vshrl.u32 %v3111_v57, 16  ;;  %v1342_v11 = vshll.u32 %v4137_v59, 16  ;;  %v2087_v53 = vsel %vm3861_vm4, %v2082_v55, %v4354_v26 }
  0x7b   : > { %v2125_v25 = vrot.slane %v2123_v49, 4  ;;  %v2128_v4 = vrot.slane %v2126_v13, 5  ;;  %v4420_v49 = vrot.slane %v2156_v39, 5  ;;  %v2162_v13 = vrot.slane %v2160_v20, 4 }
  0x7c   : > { %v2097_v52 = vsel %vm3861_vm4, %v2092_v41, %v2096_v44  ;;  %v2139_v57 = vor.u32 %v2138_v48, %v4411_v15  ;;  %v2121_v26 = vsel %vm3861_vm4, %v2116_v56, %v2120_v33  ;;  %v2173_v44 = vrot.slane %v2171_v1, 4  ;;  %v4461_v56 = vld [vmem:[%s3822_s5 + $0x5c] sm:$0x1] }
  0x7d   : > { %3453 = vmatmul.mubr.msk.bf16.gmra.mrb[8].mxu0 %vm447_vm3, %v3690_v40  ;;  %v2106_v40 = vrot.slane %v2105_v6, 4  ;;  %v2129_v20 = vor.u32 %v2128_v4, %v2125_v25  ;;  %v2163_v41 = vor.u32 %v2162_v13, %v4420_v49  ;;  %v4727_v33 = vcombine.low %v4247_v2, %v4262_v9 }
  0x7e   : > { %3456 = vmatprep.mubr.msk.bf16.mxu0 %vm447_vm3, %v3691_v18  ;;  %v3692_v18 = vld [vmem:[%s3822_s5 + $0x6c] sm:$0xff]   ;;  %v2195_v4 = vshrl.u32 %v3114_v7, 16  ;;  %v1346_v48 = vshrl.u32 %v4137_v59, 16  ;;  %v3122_v13 = vcombine.low %v2087_v53, %v2097_v52 }
  0x7f   : > { %3373 = vmatmul.mubr.msk.bf16.vlgmr.msra.gmra.mrb[0].mxu1 %vm447_vm3, %v2937_v27  ;;  %v4408_v27 = vld [vmem:[%s3822_s5 + $0x58] sm:$0xf]  ;;  %v2111_v39 = vsel %vm3861_vm4, %v2106_v40, %v4367_v22  ;;  %v4726_v22 = vcombine.low %v4241_v58, %v4253_v23  ;;  %v2176_v40 = vrot.slane %v2174_v34, 5  ;;  %v2198_v58 = vshll.u32 %v3114_v7, 16 }
  0x80   : > { %3389 = vmatpush3.bf16.msra.mxu1 %v1073_v28  ;;  %3376 = vmatprep.mubr.msk.bf16.mxu1 %vm447_vm3, %v2938_v29  ;;  %v3701_v28 = vld [vmem:[%s4710_s1 + $0x8] sm:$0x3]  ;;  %v2152_v29 = vrot.slane %v2150_v37, 5  ;;  %v2180_v61 = vshll.u32 %v4408_v27, 16  ;;  %v2184_v6 = vshrl.u32 %v4408_v27, 16  ;;  %v2547_v37 = vsel %vm472_vm0, %v4295_v38, 0 }
  0x81   : > { %3631 = vmatprep.subr.msk.bf16.mxu1 %vm472_vm0, %v3701_v28  ;;  %v2142_v28 = vshll.u32 %v4418_v46, 16  ;;  %v2166_v38 = vshll.u32 %v4423_v63, 16  ;;  %v2204_v23 = vshll.u32 %v4442_v60, 16  ;;  %v3123_v34 = vcombine.low %v2111_v39, %v2121_v26 }
  0x82   : > { %v2153_v55 = vor.u32 %v2152_v29, %v2149_v50  ;;  %v4454_v25 = vrot.slane %v2180_v61, 5  ;;  %v2130_v50 = vrot.slane %v2129_v20, 4  ;;  %v2140_v29 = vrot.slane %v2139_v57, 4 }
  0x83   : > { %v2144_v1 = vrot.slane %v2142_v28, 5  ;;  %v2168_v9 = vrot.slane %v2166_v38, 5  ;;  %v2164_v61 = vrot.slane %v2163_v41, 4  ;;  %v2190_v7 = vshll.u32 %v4461_v56, 16  ;;  %v4482_v28 = vld [vmem:[%s3822_s5 + $0x68] sm:$0x1] }
  0x84   : > { %v2154_v2 = vrot.slane %v2153_v55, 4  ;;  %v2197_v35 = vrot.slane %v2195_v4, 4  ;;  %v4472_v59 = vrot.slane %v2204_v23, 5  ;;  %v4474_v57 = vrot.slane %v1342_v11, 5 }
  0x85   : > { %3457 = vmatmul.mubr.msk.bf16.gmra.mrb[12].mxu0 %vm447_vm3, %v3692_v18  ;;  %v2186_v18 = vrot.slane %v2184_v6, 4  ;;  %v2177_v6 = vor.u32 %v2176_v40, %v2173_v44  ;;  %v1348_v53 = vrot.slane %v1346_v48, 4  ;;  %v2135_v52 = vsel %vm3861_vm4, %v2130_v50, %v4411_v15 }
  0x86   : > { %3462 = vmatprep.mubr.msk.bf16.mxu0 %vm447_vm3, %v3121_v54  ;;  %v2208_v54 = vshrl.u32 %v4442_v60, 16  ;;  %v2200_v60 = vrot.slane %v2198_v58, 5  ;;  %v2145_v39 = vsel %vm3861_vm4, %v2140_v29, %v2144_v1  ;;  %v2228_v38 = vshll.u32 %v4470_v12, 16  ;;  %v3693_v1 = vld [vmem:[%s3822_s5 + $0xc] sm:$0xff]  }
  0x87   : > { %3377 = vmatmul.mubr.msk.bf16.gmra.mrb[4].mxu1 %vm447_vm3, %v4726_v22  ;;  %v2187_v22 = vor.u32 %v2186_v18, %v4454_v25  ;;  %v2232_v44 = vshrl.u32 %v4470_v12, 16  ;;  %v4728_v11 = vcombine.low %v4281_v47, %v4299_v51  ;;  %v2159_v15 = vsel %vm3861_vm4, %v2154_v2, %v4420_v49 }
  0x88   : > { %3380 = vmatprep.mubr.msk.bf16.mxu1 %vm447_vm3, %v4727_v33  ;;  %v3117_v33 = vld [vmem:[%s3822_s5 + $0x6c] sm:$0xf]  ;;  %v2210_v20 = vrot.slane %v2208_v54, 4  ;;  %v2169_v41 = vsel %vm3861_vm4, %v2164_v61, %v2168_v9  ;;  %v2178_v40 = vrot.slane %v2177_v6, 4  ;;  %v2192_v18 = vrot.slane %v2190_v7, 5 }
  0x89   : > { %v2219_v26 = vshrl.u32 %v3117_v33, 16  ;;  %v2222_v55 = vshll.u32 %v3117_v33, 16  ;;  %v4729_v4 = vcombine.low %v4320_v62, %v4332_v24  ;;  %v2188_v47 = vrot.slane %v2187_v22, 4  ;;  %v3002_v22 = vld [vmem:[%s3822_s5 + $0x48] sm:$0xf] }
  0x8a   : > { %v2201_v51 = vor.u32 %v2200_v60, %v2197_v35  ;;  %v2214_v49 = vshll.u32 %v4482_v28, 16  ;;  %v1349_v58 = vor.u32 %v1348_v53, %v4474_v57  ;;  %v1352_v23 = vshll.u32 %v4140_v0, 16  ;;  %v4511_v60 = vld [vmem:[%s3822_s5 + $0x74] sm:$0x1] }
  0x8b   : > { %v3124_v54 = vcombine.low %v2135_v52, %v2145_v39  ;;  %v2221_v48 = vrot.slane %v2219_v26, 4  ;;  %v2224_v62 = vrot.slane %v2222_v55, 5  ;;  %v4505_v24 = vrot.slane %v2228_v38, 5 }
  0x8c   : > { %v2234_v50 = vrot.slane %v2232_v44, 4  ;;  %v3125_v29 = vcombine.low %v2159_v15, %v2169_v41  ;;  %v2183_v35 = vsel %vm3861_vm4, %v2178_v40, %v4454_v25  ;;  %v2202_v0 = vrot.slane %v2201_v51, 4  ;;  %v3695_v51 = vld [vmem:[%s3822_s5 + $0x24] sm:$0xff]  }
  0x8d   : > { %3463 = vmatmul.mubr.msk.bf16.vlgmr.msra.gmra.mrb[0].mxu0 %vm447_vm3, %v3122_v13  ;;  %v2193_v13 = vsel %vm3861_vm4, %v2188_v47, %v2192_v18  ;;  %v2216_v2 = vrot.slane %v2214_v49, 5  ;;  %v1350_v9 = vrot.slane %v1349_v58, 4  ;;  %v1354_v61 = vrot.slane %v1352_v23, 5 }
  0x8e   : > { %3479 = vmatpush3.bf16.msra.mxu0 %v2547_v37  ;;  %3466 = vmatprep.mubr.msk.bf16.mxu0 %vm447_vm3, %v3123_v34  ;;  %v2211_v37 = vor.u32 %v2210_v20, %v4472_v59  ;;  %v2442_v6 = vrot.slane %v4269_v31, 5  ;;  %v2225_v7 = vor.u32 %v2224_v62, %v2221_v48  ;;  %v2235_v33 = vor.u32 %v2234_v50, %v4505_v24  ;;  %v3137_v20 = vld [vmem:[%s3822_s5 + $0x18] sm:$0xe]  ;;  %v3139_v62 = vld [vmem:[%s3822_s5 + $0x30] sm:$0xe] }
  0x8f   : > { %3381 = vmatmul.mubr.msk.bf16.gmra.mrb[8].mxu1 %vm447_vm3, %v4728_v11  ;;  %v2238_v25 = vshll.u32 %v4511_v60, 16  ;;  %v4730_v53 = vcombine.low %v4350_v19, %v4362_v10  ;;  %v3126_v52 = vcombine.low %v2183_v35, %v2193_v13  ;;  %v2207_v31 = vsel %vm3861_vm4, %v2202_v0, %v4472_v59  ;;  %v3694_v59 = vld [vmem:[%s3822_s5 + $0x18] sm:$0xff]  }
  0x90   : > { %3384 = vmatprep.mubr.msk.bf16.mxu1 %vm447_vm3, %v4729_v4  ;;  %v2212_v34 = vrot.slane %v2211_v37, 4  ;;  %v1333_v26 = vshrl.u32 %v3002_v22, 16  ;;  %v1336_v55 = vshll.u32 %v3002_v22, 16  ;;  %v3145_v19 = vrot.slane %v3137_v20, 9  ;;  %v2999_v4 = vld [vmem:[%s3822_s5 + $0x3c] sm:$0xf] }
  0x91   : > { %v2444_v10 = vrot.slane %v2442_v6, 4  ;;  %v2445_v38 = vrot.slane %v4303_v30, 5  ;;  %v1355_v44 = vsel %vm3861_vm4, %v1350_v9, %v1354_v61  ;;  %v2226_v11 = vrot.slane %v2225_v7, 4  ;;  %v3138_v30 = vld [vmem:[%s3822_s5 + $0x24] sm:$0xe]  ;;  %v3696_v22 = vld [vmem:[%s3822_s5 + $0x30] sm:$0xff]  }
  0x92   : > { %v2217_v39 = vsel %vm3861_vm4, %v2212_v34, %v2216_v2  ;;  %v2236_v15 = vrot.slane %v2235_v33, 4  ;;  %v2240_v41 = vrot.slane %v2238_v25, 5  ;;  %v1335_v40 = vrot.slane %v1333_v26, 4  ;;  %v3697_v20 = vld [vmem:[%s3822_s5 + $0x3c] sm:$0xff]   ;;  %v3005_v26 = vld [vmem:[%s3822_s5 + $0x54] sm:$0xf] }
  0x93   : > { %v3127_v18 = vcombine.low %v2207_v31, %v2217_v39  ;;  %v1338_v47 = vrot.slane %v1336_v55, 5  ;;  %v2443_v37 = vsel %vm4016_vm7, %v3145_v19, %v2442_v6  ;;  %v2446_v49 = vsel %vm4016_vm7, %v2444_v10, %v2445_v38  ;;  %v3141_v38 = vld [vmem:[%s3822_s5 + $0x48] sm:$0xe] }
  0x94   : > { %v2449_v58 = vrot.slane %v4316_v14, 5  ;;  %v2241_v48 = vsel %vm3861_vm4, %v2236_v15, %v2240_v41  ;;  %v2456_v50 = vrot.slane %v4335_v8, 5  ;;  %v1312_v35 = vshll.u32 %v2999_v4, 16 }
  0x95   : > { %3467 = vmatmul.mubr.msk.bf16.gmra.mrb[4].mxu0 %vm447_vm3, %v3124_v54  ;;  %v1339_v23 = vor.u32 %v1338_v47, %v1335_v40  ;;  %v2231_v54 = vsel %vm3861_vm4, %v2226_v11, %v4505_v24  ;;  %v1318_v14 = vshll.u32 %v4119_v42, 16  ;;  %v3146_v24 = vrot.slane %v3138_v30, 9 }
  0x96   : > { %3470 = vmatprep.mubr.msk.bf16.mxu0 %vm447_vm3, %v3125_v29  ;;  %v1309_v29 = vshrl.u32 %v2999_v4, 16  ;;  %v2452_v8 = vrot.slane %v4358_v36, 5  ;;  %v3154_v0 = vcombine.low %v2443_v37, %v2446_v49  ;;  %v2451_v34 = vrot.slane %v2449_v58, 4  ;;  %v3698_v37 = vld [vmem:[%s3822_s5 + $0x48] sm:$0xff]  }
  0x97   : > { %3385 = vmatmul.mubr.msk.bf16.gmra.mrb[12].mxu1 %vm447_vm3, %v4730_v53  ;;  %v1340_v13 = vrot.slane %v1339_v23, 4  ;;  %v3147_v2 = vrot.slane %v3139_v62, 9  ;;  %v3128_v61 = vcombine.low %v2231_v54, %v2241_v48  ;;  %v2458_v6 = vrot.slane %v2456_v50, 4  ;;  %v3699_v23 = vld [vmem:[%s3822_s5 + $0x54] sm:$0xff]  }
  0x98   : > { %3390 = vmatprep.mubr.msk.bf16.mxu1 %vm447_vm3, %v3693_v1  ;;  %v1322_v1 = vshrl.u32 %v4119_v42, 16  ;;  %v2459_v42 = vrot.slane %v4365_v21, 5  ;;  %v1311_v7 = vrot.slane %v1309_v29, 4  ;;  %v1314_v33 = vrot.slane %v1312_v35, 5 }
  0x99   : > { %v1345_v9 = vsel %vm3861_vm4, %v1340_v13, %v4474_v57  ;;  %v4567_v25 = vrot.slane %v1318_v14, 5  ;;  %v2450_v53 = vsel %vm4016_vm7, %v3146_v24, %v2449_v58  ;;  %v2453_v57 = vsel %vm4016_vm7, %v2451_v34, %v2452_v8  ;;  %v3142_v24 = vld [vmem:[%s3822_s5 + $0x54] sm:$0xe]  ;;  %v4731_v8 = vld [vmem:[#allocation5_spill] sm:$0xff] }
  0x9a   : > { %v1324_v36 = vrot.slane %v1322_v1, 4  ;;  %v2457_v21 = vsel %vm4016_vm7, %v3147_v2, %v2456_v50  ;;  %v2463_v31 = vrot.slane %v4376_v43, 5  ;;  %v1328_v39 = vshll.u32 %v4122_v45, 16  ;;  %v3008_v50 = vld [vmem:[%s3822_s5 + $0x60] sm:$0xf] }
  0x9b   : > { %v2460_v55 = vsel %vm4016_vm7, %v2458_v6, %v2459_v42  ;;  %v1315_v19 = vor.u32 %v1314_v33, %v1311_v7  ;;  %v3155_v43 = vcombine.low %v2450_v53, %v2453_v57  ;;  %v2466_v11 = vrot.slane %v4418_v46, 5  ;;  %v4733_v33 = vld [vmem:[#allocation2_spill] sm:$0xff] }
  0x9c   : > { %v1325_v10 = vor.u32 %v1324_v36, %v4567_v25  ;;  %v1357_v15 = vshrl.u32 %v3005_v26, 16  ;;  %v1360_v41 = vshll.u32 %v3005_v26, 16  ;;  %v1366_v40 = vshll.u32 %v4148_v17, 16 }
  0x9d   : > { %3471 = vmatmul.mubr.msk.bf16.gmra.mrb[8].mxu0 %vm447_vm3, %v3126_v52  ;;  %v3140_v52 = vld [vmem:[%s3822_s5 + $0x3c] sm:$0xe]  ;;  %v2465_v4 = vrot.slane %v2463_v31, 4  ;;  %v1330_v47 = vrot.slane %v1328_v39, 5  ;;  %v2473_v58 = vrot.slane %v4423_v63, 5  ;;  %v2477_v63 = vrot.slane %v4408_v27, 5 }
  0x9e   : > { %3474 = vmatprep.mubr.msk.bf16.mxu0 %vm447_vm3, %v3127_v18  ;;  %v3148_v45 = vrot.slane %v3140_v52, 9  ;;  %v3156_v18 = vcombine.low %v2457_v21, %v2460_v55  ;;  %v1326_v49 = vrot.slane %v1325_v10, 4  ;;  %v1359_v46 = vrot.slane %v1357_v15, 4  ;;  %v3143_v27 = vld [vmem:[%s3822_s5 + $0x60] sm:$0xe] }
  0x9f   : > { %3391 = vmatmul.mubr.msk.bf16.vlgmr.msra.gmra.mrb[0].mxu1 %vm447_vm3, %v3694_v59  ;;  %v1370_v59 = vshrl.u32 %v4148_v17, 16  ;;  %v1362_v54 = vrot.slane %v1360_v41, 5  ;;  %v1368_v48 = vrot.slane %v1366_v40, 5  ;;  %v2467_v29 = vsel %vm4016_vm7, %v2465_v4, %v2466_v11  ;;  %v3700_v52 = vld [vmem:[%s3822_s5 + $0x60] sm:$0xff]  }
  0xa0   : > { %3497 = vmatpush3.bf16.msra.mxu1 %v3804_v3  ;;  %3394 = vmatprep.mubr.msk.bf16.mxu1 %vm447_vm3, %v3695_v51  ;;  %v4564_v3 = vcombine.low %v1345_v9, %v1355_v44  ;;  %v2470_v44 = vrot.slane %v4387_v16, 5  ;;  %v3149_v51 = vrot.slane %v3141_v38, 9  ;;  %v1316_v16 = vrot.slane %v1315_v19, 4  ;;  %v4732_v9 = vld [vmem:[#allocation3_spill] sm:$0xff] }
  0xa1   : > { %v1372_v62 = vrot.slane %v1370_v59, 4  ;;  %v2464_v17 = vsel %vm4016_vm7, %v3148_v45, %v2463_v31  ;;  %v1331_v1 = vsel %vm3861_vm4, %v1326_v49, %v1330_v47  ;;  %v1381_v34 = vshrl.u32 %v3008_v50, 16  ;;  %v3144_v47 = vld [vmem:[%s3822_s5 + $0x6c] sm:$0xe]  ;;  %s4672_s5 = scalar_lea.vmem %s4712_s3, %s2890_s12 }
  0xa2   : > { %v2472_v30 = vrot.slane %v2470_v44, 4  ;;  %v2471_v35 = vsel %vm4016_vm7, %v3149_v51, %v2470_v44  ;;  %v1321_v14 = vsel %vm3861_vm4, %v1316_v16, %v4567_v25  ;;  %v1384_v2 = vshll.u32 %v3008_v50, 16 }
  0xa3   : > { %v1394_v6 = vshrl.u32 %v4732_v9, 16  ;;  %v3157_v42 = vcombine.low %v2464_v17, %v2467_v29  ;;  %v1373_v7 = vor.u32 %v1372_v62, %v1368_v48  ;;  %v1376_v25 = vshll.u32 %v4733_v33, 16 }
  0xa4   : > { %v2474_v13 = vsel %vm4016_vm7, %v2472_v30, %v2473_v58  ;;  %v2479_v53 = vrot.slane %v2477_v63, 4  ;;  %v2480_v57 = vrot.slane %v4461_v56, 5  ;;  %v3016_v21 = vcombine.low %v1321_v14, %v1331_v1 }
  0xa5   : > { %3475 = vmatmul.mubr.msk.bf16.gmra.mrb[12].mxu0 %vm447_vm3, %v3128_v61  ;;  %v1390_v61 = vshll.u32 %v4732_v9, 16  ;;  %v3158_v36 = vcombine.low %v2471_v35, %v2474_v13  ;;  %v3151_v31 = vrot.slane %v3143_v27, 9  ;;  %v2487_v26 = vrot.slane %v4482_v28, 5 }
  0xa6   : > { %3480 = vmatprep.mubr.msk.bf16.mxu0 %vm447_vm3, %v3154_v0  ;;  %v2484_v0 = vrot.slane %v4731_v8, 5  ;;  %v1383_v55 = vrot.slane %v1381_v34, 4  ;;  %v1386_v19 = vrot.slane %v1384_v2, 5  ;;  %v1396_v38 = vrot.slane %v1394_v6, 4 }
  0xa7   : > { %3395 = vmatmul.mubr.msk.bf16.gmra.mrb[4].mxu1 %vm447_vm3, %v3696_v22  ;;  %v1363_v22 = vor.u32 %v1362_v54, %v1359_v46  ;;  %v1392_v10 = vrot.slane %v1390_v61, 5  ;;  %v1378_v45 = vrot.slane %v1376_v25, 5  ;;  %v2481_v28 = vsel %vm4016_vm7, %v2479_v53, %v2480_v57 }
  0xa8   : > { %3398 = vmatprep.mubr.msk.bf16.mxu1 %vm447_vm3, %v3697_v20  ;;  %v3150_v20 = vrot.slane %v3142_v24, 9  ;;  %v2486_v39 = vrot.slane %v2484_v0, 4  ;;  %v2485_v11 = vsel %vm4016_vm7, %v3151_v31, %v2484_v0  ;;  %v2491_v15 = vrot.slane %v4470_v12, 5  ;;  %v4663_v0 = vld [vmem:[%s4711_s2] ss:$0 sm:$0xff] }
  0xa9   : > { %v1364_v44 = vrot.slane %v1363_v22, 4  ;;  %v1387_v40 = vor.u32 %v1386_v19, %v1383_v55  ;;  %v1397_v59 = vor.u32 %v1396_v38, %v1392_v10  ;;  %v3152_v30 = vrot.slane %v3144_v47, 9 }
  0xaa   : > { %v2478_v56 = vsel %vm4016_vm7, %v3150_v20, %v2477_v63  ;;  %v2488_v41 = vsel %vm4016_vm7, %v2486_v39, %v2487_v26  ;;  %v2493_v12 = vrot.slane %v2491_v15, 4  ;;  %v2494_v58 = vrot.slane %v4511_v60, 5 }
  0xab   : > { %v1369_v51 = vsel %vm3861_vm4, %v1364_v44, %v1368_v48  ;;  %v3159_v16 = vcombine.low %v2478_v56, %v2481_v28  ;;  %v3160_v49 = vcombine.low %v2485_v11, %v2488_v41  ;;  %v1388_v46 = vrot.slane %v1387_v40, 4 }
  0xac   : > { %v1398_v54 = vrot.slane %v1397_v59, 4  ;;  %v2492_v48 = vsel %vm4016_vm7, %v3152_v30, %v2491_v15  ;;  %v2495_v50 = vsel %vm4016_vm7, %v2493_v12, %v2494_v58 }
  0xad   : > { %3481 = vmatmul.mubr.msk.bf16.vlgmr.msra.gmra.mrb[0].mxu0 %vm447_vm3, %v3155_v43  ;;  %v1374_v43 = vrot.slane %v1373_v7, 4  ;;  %v1393_v60 = vsel %vm3861_vm4, %v1388_v46, %v1392_v10  ;;  %v3161_v29 = vcombine.low %v2492_v48, %v2495_v50 }
  0xae   : > { %3484 = vmatprep.mubr.msk.bf16.mxu0 %vm447_vm3, %v3156_v18  ;;  %v4734_v18 = vld [vmem:[#allocation4_spill] sm:$0xff] }
  0xaf   : > { %3399 = vmatmul.mubr.msk.bf16.gmra.mrb[8].mxu1 %vm447_vm3, %v3698_v37  ;;  %v1400_v4 = vshll.u32 %v4734_v18, 16  ;;  %v1379_v37 = vsel %vm3861_vm4, %v1374_v43, %v1378_v45 }
  0xb0   : > { %3402 = vmatprep.mubr.msk.bf16.mxu1 %vm447_vm3, %v3699_v23  ;;  %v3018_v23 = vcombine.low %v1369_v51, %v1379_v37 }
  0xb1   : > { %v1402_v62 = vrot.slane %v1400_v4, 5 }
  0xb3   : > { %v1403_v17 = vsel %vm3861_vm4, %v1398_v54, %v1402_v62 }
  0xb4   : > { %v3019_v35 = vcombine.low %v1393_v60, %v1403_v17 }
  0xb5   : > { %3485 = vmatmul.mubr.msk.bf16.gmra.mrb[4].mxu0 %vm447_vm3, %v3157_v42 }
  0xb6   : > { %3488 = vmatprep.mubr.msk.bf16.mxu0 %vm447_vm3, %v3158_v36 }
  0xb7   : > { %3403 = vmatmul.mubr.msk.bf16.gmra.mrb[12].mxu1 %vm447_vm3, %v3700_v52 }
  0xb8   : > { %3416 = vmatprep.mubr.msk.bf16.mxu1 %vm447_vm3, %v3016_v21 }
  0xbd   : > { %3489 = vmatmul.mubr.msk.bf16.gmra.mrb[8].mxu0 %vm447_vm3, %v3159_v16 }
  0xbe   : > { %3492 = vmatprep.mubr.msk.bf16.mxu0 %vm447_vm3, %v3160_v49 }
  0xbf   : > { %3417 = vmatmul.mubr.msk.bf16.vlgmr.msra.gmra.mrb[8].mxu1 %vm447_vm3, %v4564_v3 }
  0xc0   : > { %3420 = vmatprep.mubr.msk.bf16.mxu1 %vm447_vm3, %v3018_v23 }
  0xc5   : > { %3493 = vmatmul.mubr.msk.bf16.gmra.mrb[12].mxu0 %vm447_vm3, %v3161_v29 }
  0xc7   : > { %3421 = vmatmul.mubr.msk.bf16.gmra.mrb[12].mxu1 %vm447_vm3, %v3019_v35 }
 0x172   : > { %v3392_v3 = vpop.f32.mrb[0].mxu1 }
 0x173   : > { %v1109_v63 = vpop.f32.mrb[1].mxu1 }
 0x174   : > { %v3393_v14 = vpop.f32.mrb[2].mxu1 }
 0x175   : > { %v1112_v5 = vpop.f32.mrb[3].mxu1 }
 0x17a   : > { %v3396_v1 = vpop.f32.mrb[4].mxu1 }
 0x17b   : > { %v1125_v13 = vpop.f32.mrb[5].mxu1 }
 0x17c   : > { %v3397_v24 = vpop.f32.mrb[6].mxu1 }
 0x17d   : > { %v1128_v8 = vpop.f32.mrb[7].mxu1 }
 0x180   : > { %v3482_v32 = vpop.f32.mrb[0].mxu0 }
 0x181   : > { %v3498_v27 = vadd.f32 %v3482_v32, %v3392_v3  ;;  %v2583_v34 = vpop.f32.mrb[1].mxu0 }
 0x182   : > { %v3499_v2 = vadd.f32 %v2583_v34, %v1109_v63  ;;  %v3483_v9 = vpop.f32.mrb[2].mxu0 }
 0x183   : > { %v2671_v61 = vadd.f32 %v3498_v27, %v4663_v0  ;;  %v3500_v6 = vadd.f32 %v3483_v9, %v3393_v14  ;;  %v2586_v42 = vpop.f32.mrb[3].mxu0 }
 0x184   : > { %v2669_v22 = vadd.f32 %v3499_v2, %v4663_v0  ;;  %v3501_v7 = vadd.f32 %v2586_v42, %v1112_v5 }
 0x185   : > { %v2672_v33 = vadd.f32 %v3500_v6, %v4663_v0  ;;  %v2687_v36 = vmax.f32 %v2671_v61, 0.0 }
 0x186   : > { %v2670_v25 = vadd.f32 %v3501_v7, %v4663_v0  ;;  %v2685_v53 = vmax.f32 %v2669_v22, 0.0 }
 0x187   : > { %v2688_v20 = vmax.f32 %v2672_v33, 0.0 }
 0x188   : > { %v2686_v57 = vmax.f32 %v2670_v25, 0.0  ;;  %v3486_v52 = vpop.f32.mrb[4].mxu0 }
 0x189   : > { %v3214_v21 = vpack.c.bf16 %v2688_v20, %v2687_v36  ;;  %v3502_v31 = vadd.f32 %v3486_v52, %v3396_v1  ;;  %v2599_v39 = vpop.f32.mrb[5].mxu0 }
 0x18a   : > { %v3209_v26 = vpack.c.bf16 %v2686_v57, %v2685_v53  ;;  %v3503_v55 = vadd.f32 %v2599_v39, %v1125_v13  ;;  %v3487_v19 = vpop.f32.mrb[6].mxu0 }
 0x18b   : > { %3246 = vst [vmem:[%s4672_s5 + $0x8] sm:$0xff] %v3214_v21   ;;  %v2675_v10 = vadd.f32 %v3502_v31, %v4663_v0  ;;  %v3504_v38 = vadd.f32 %v3487_v19, %v3397_v24  ;;  %v2602_v44 = vpop.f32.mrb[7].mxu0 }
 0x18c   : > { %3210 = vst [vmem:[%s4672_s5] sm:$0xff] %v3209_v26   ;;  %v2673_v43 = vadd.f32 %v3503_v55, %v4663_v0  ;;  %v3505_v45 = vadd.f32 %v2602_v44, %v1128_v8 }
 0x18d   : > { %v2676_v56 = vadd.f32 %v3504_v38, %v4663_v0  ;;  %v2691_v11 = vmax.f32 %v2675_v10, 0.0 }
 0x18e   : > { %v2674_v28 = vadd.f32 %v3505_v45, %v4663_v0  ;;  %v2689_v41 = vmax.f32 %v2673_v43, 0.0 }
 0x18f   : > { %v2692_v15 = vmax.f32 %v2676_v56, 0.0 }
 0x190   : > { %v2690_v40 = vmax.f32 %v2674_v28, 0.0  ;;  %v3490_v59 = vpop.f32.mrb[8].mxu0 }
 0x191   : > { %v3224_v18 = vpack.c.bf16 %v2692_v15, %v2691_v11  ;;  %v2615_v47 = vpop.f32.mrb[9].mxu0 }
 0x192   : > { %v3418_v4 = vpop.f32.mrb[8].mxu1  ;;  %v3219_v51 = vpack.c.bf16 %v2690_v40, %v2689_v41  ;;  %v3491_v49 = vpop.f32.mrb[10].mxu0 }
 0x193   : > { %v3506_v37 = vadd.f32 %v3490_v59, %v3418_v4  ;;  %v1523_v16 = vpop.f32.mrb[9].mxu1  ;;  %3248 = vst [vmem:[%s4672_s5 + $0x18] sm:$0xff] %v3224_v18   ;;  %v2618_v58 = vpop.f32.mrb[11].mxu0 }
 0x194   : > { %v3507_v30 = vadd.f32 %v2615_v47, %v1523_v16  ;;  %v3419_v12 = vpop.f32.mrb[10].mxu1  ;;  %3247 = vst [vmem:[%s4672_s5 + $0x10] sm:$0xff] %v3219_v51  }
 0x195   : > { %v2679_v23 = vadd.f32 %v3506_v37, %v4663_v0  ;;  %v3508_v46 = vadd.f32 %v3491_v49, %v3419_v12  ;;  %v1526_v54 = vpop.f32.mrb[11].mxu1 }
 0x196   : > { %v2677_v62 = vadd.f32 %v3507_v30, %v4663_v0  ;;  %v3509_v48 = vadd.f32 %v2618_v58, %v1526_v54 }
 0x197   : > { %v2680_v50 = vadd.f32 %v3508_v46, %v4663_v0  ;;  %v2695_v17 = vmax.f32 %v2679_v23, 0.0 }
 0x198   : > { %v2678_v60 = vadd.f32 %v3509_v48, %v4663_v0  ;;  %v3494_v35 = vpop.f32.mrb[12].mxu0  ;;  %v2693_v3 = vmax.f32 %v2677_v62, 0.0 }
 0x199   : > { %v2696_v29 = vmax.f32 %v2680_v50, 0.0  ;;  %v2631_v5 = vpop.f32.mrb[13].mxu0 }
 0x19a   : > { %v2694_v63 = vmax.f32 %v2678_v60, 0.0  ;;  %v3422_v14 = vpop.f32.mrb[12].mxu1  ;;  %v3495_v8 = vpop.f32.mrb[14].mxu0 }
 0x19b   : > { %v3234_v1 = vpack.c.bf16 %v2696_v29, %v2695_v17  ;;  %v3510_v13 = vadd.f32 %v3494_v35, %v3422_v14  ;;  %v1539_v24 = vpop.f32.mrb[13].mxu1  ;;  %v2634_v2 = vpop.f32.mrb[15].mxu0 }
 0x19c   : > { %v3229_v32 = vpack.c.bf16 %v2694_v63, %v2693_v3  ;;  %v3511_v27 = vadd.f32 %v2631_v5, %v1539_v24  ;;  %v3423_v34 = vpop.f32.mrb[14].mxu1 }
 0x19d   : > { %3250 = vst [vmem:[%s4672_s5 + $0x28] sm:$0xff] %v3234_v1   ;;  %v2683_v9 = vadd.f32 %v3510_v13, %v4663_v0  ;;  %v3512_v61 = vadd.f32 %v3495_v8, %v3423_v34  ;;  %v1542_v6 = vpop.f32.mrb[15].mxu1 }
 0x19e   : > { %3249 = vst [vmem:[%s4672_s5 + $0x20] sm:$0xff] %v3229_v32   ;;  %v2681_v42 = vadd.f32 %v3511_v27, %v4663_v0  ;;  %v3513_v22 = vadd.f32 %v2634_v2, %v1542_v6 }
 0x19f   : > { %v2684_v7 = vadd.f32 %v3512_v61, %v4663_v0  ;;  %v2699_v25 = vmax.f32 %v2683_v9, 0.0 }
 0x1a0   : > { %v2682_v33 = vadd.f32 %v3513_v22, %v4663_v0  ;;  %v2697_v20 = vmax.f32 %v2681_v42, 0.0 }
 0x1a1   : > { %v2700_v36 = vmax.f32 %v2684_v7, 0.0 }
 0x1a2   : > { %v2698_v53 = vmax.f32 %v2682_v33, 0.0 }
 0x1a3   : > { %v3244_v57 = vpack.c.bf16 %v2700_v36, %v2699_v25 }
 0x1a4   : > { %v3239_v52 = vpack.c.bf16 %v2698_v53, %v2697_v20 }
 0x1a5   : > { %3252 = vst [vmem:[%s4672_s5 + $0x38] sm:$0xff] %v3244_v57  }
 0x1a6   : > { %3251 = vst [vmem:[%s4672_s5 + $0x30] sm:$0xff] %v3239_v52  }
 0x1a7 PF: > { %s13_s16 = sadd.s32 1, %s3740_s16   ;;  %s4735_s12 = smov %s3732_s14 }
 0x1a8   : > { %p10_p7 = scmp.ge.s32.totalorder %s13_s16, 6   ;;  %s4736_s13 = smov %s3736_s15 }
 0x1a9   : > { %s4737_s14 = smov %s4740_s17  ;;  %s4738_s15 = smov %s4744_s18 }
 0x1aa   :  { %12 = sbr.rel (!%p10_p7) target bundleno = 3 (0x3), region = 73 }

// kernel: forward.5
= control target key start
LH: loop header
LB: loop body
LE: loop exit
PB: predicated region body
PF: predicated region fallthrough
CT: control target
= control target key end

     0   :  { %s3519_s15 = smov 0   ;;  %s3521_s16 = smov 0   ;;  %s4433_s0 = inlined_call_operand.vmem [shape: bf16[2,18,18,128], index: 0, kind: input, shape index: {}]   ;;  %s4434_s1 = inlined_call_operand.vmem [shape: bf16[3,384,128], index: 1, kind: input, shape index: {}]   ;;  %s4435_s2 = inlined_call_operand.vmem [shape: f32[1,128], index: 2, kind: input, shape index: {}]   ;;  %s4436_s3 = inlined_call_operand.vmem [shape: bf16[2,16,16,128], index: 3, kind: input, shape index: {}]   ;;  %s4437_s4 = inlined_call_operand.vmem [shape: f32[2,16,16,128], index: 4, kind: output, shape index: {}]  }
   0x1   :  { %s3523_s17 = smov 0   ;;  %s3525_s18 = smov 0  }
   0x2   :  { %s3527_s19 = smov 0  }
   0x3 LB: > { %s23_s20 = sadd.s32 1, %s3484_s17  ;;  %s26_s21 = sadd.s32 1, %s3488_s18  ;;  %s3492_s19 = sphi %s3527_s19, %s14_s19   ;;  %s3488_s18 = sphi %s3525_s18, %s4441_s18   ;;  %s3484_s17 = sphi %s3523_s17, %s4440_s17   ;;  %s3480_s16 = sphi %s3521_s16, %s4439_s16   ;;  %s3476_s15 = sphi %s3519_s15, %s4438_s15  }
   0x4   : > { %p24_p0 = scmp.ge.s32.totalorder %s23_s20, 2  ;;  %p2473_p1 = scmp.ge.s32.totalorder %s3492_s19, 1 }
   0x5   : > { %p194_p2 = scmp.lt.s32.totalorder %s3492_s19, 5 }
   0x6   : > { %s4443_s20 = smov (%p24_p0, %s23_s20), 0  ;;  %s4445_s21 = smov (!%p24_p0, %s26_s21), %s3488_s18 }
   0x7   : > { %p195_p3 = pnand %p2473_p1, %p194_p2  ;;  %p28_p4 = scmp.ge.s32.totalorder %s4445_s21, 2 }
   0x8   : > { %v3310_v0 = vld [vmem:[%s4434_s1 + $0x100] sm:$0xff] (!%p195_p3)   ;;  %v3313_v3 = vld [vmem:[%s4434_s1 + $0x108] sm:$0xff] (!%p195_p3)   ;;  %v3316_v6 = vld [vmem:[%s4434_s1 + $0x110] sm:$0xff] (!%p195_p3)   ;;  %p235_p5 = scmp.lt.s32.totalorder (!%p195_p3), %s3480_s16, 1  ;;  %s2797_s12 = smul.u32 (!%p195_p3), 96, %s3476_s15  ;;  %vm500_vm0 = vcmask (!%p195_p3), 1046528  }
   0x9   : > { %s4447_s21 = smov (%p28_p4, %s4445_s21), 0  ;;  %198 = sbr.rel (%p195_p3) target bundleno = 405 (0x195), region = 36 }
   0xa   : > { %v3311_v1 = vld [vmem:[%s4434_s1 + $0x140] sm:$0xff] (!%p195_p3)   ;;  %2837 = vmatprep.subr.bf16.mxu0 (!%p195_p3), %v3310_v0  ;;  %v3314_v4 = vld [vmem:[%s4434_s1 + $0x148] sm:$0xff] (!%p195_p3)   ;;  %v3317_v7 = vld [vmem:[%s4434_s1 + $0x150] sm:$0xff] (!%p195_p3)   ;;  %vm371_vm1 = vsmask.f32 (!%p195_p3), 7424 }
   0xb   : > { %v3312_v2 = vld [vmem:[%s4434_s1 + $0xc0] sm:$0xff] (!%p195_p3)   ;;  %3077 = vmatprep.subr.bf16.mxu1 (!%p195_p3), %v3311_v1  ;;  %v3315_v5 = vld [vmem:[%s4434_s1 + $0xc8] sm:$0xff] (!%p195_p3)   ;;  %v3318_v8 = vld [vmem:[%s4434_s1 + $0xd0] sm:$0xff] (!%p195_p3)  }
   0xc   : > { %2838 = vmatpush3.bf16.msra.mxu0 (!%p195_p3), %v3312_v2  ;;  %3078 = vmatpush3.bf16.msra.mxu1 (!%p195_p3), %v3311_v1  ;;  %v3319_v9 = vld [vmem:[%s4434_s1 + $0x118] sm:$0xff] (!%p195_p3)   ;;  %v3322_v12 = vld [vmem:[%s4434_s1 + $0x120] sm:$0xff] (!%p195_p3)   ;;  %v3325_v15 = vld [vmem:[%s4434_s1 + $0x128] sm:$0xff] (!%p195_p3)  }
   0xd   : > { %2839 = vmatprep.subr.bf16.mxu0 (!%p195_p3), %v3313_v3  ;;  %3079 = vmatprep.subr.bf16.mxu1 (!%p195_p3), %v3314_v4  ;;  %v3320_v10 = vld [vmem:[%s4434_s1 + $0x158] sm:$0xff] (!%p195_p3)   ;;  %v3323_v13 = vld [vmem:[%s4434_s1 + $0x160] sm:$0xff] (!%p195_p3)   ;;  %v3326_v16 = vld [vmem:[%s4434_s1 + $0x168] sm:$0xff] (!%p195_p3)  }
   0xe   : > { %v3321_v11 = vld [vmem:[%s4434_s1 + $0xd8] sm:$0xff] (!%p195_p3)   ;;  %v3324_v14 = vld [vmem:[%s4434_s1 + $0xe0] sm:$0xff] (!%p195_p3)   ;;  %v3327_v17 = vld [vmem:[%s4434_s1 + $0xe8] sm:$0xff] (!%p195_p3)  }
   0xf   : > { %v3328_v18 = vld [vmem:[%s4434_s1 + $0x130] sm:$0xff] (!%p195_p3)   ;;  %v3331_v21 = vld [vmem:[%s4434_s1 + $0x138] sm:$0xff] (!%p195_p3)   ;;  %v3340_v35 = vld [vmem:[%s4434_s1 + $0x40] sm:$0xff] (!%p195_p3)  }
  0x10   : > { %2840 = vmatpush3.bf16.msra.mxu0 %v3315_v5  ;;  %3080 = vmatpush3.bf16.msra.mxu1 %v3314_v4  ;;  %s4449_s16 = smov (!%p235_p5, %s3480_s16), 1  ;;  %v3329_v19 = vld [vmem:[%s4434_s1 + $0x170] sm:$0xff]   ;;  %v3332_v24 = vld [vmem:[%s4434_s1 + $0x178] sm:$0xff]   ;;  %v3341_v43 = vld [vmem:[%s4434_s1 + $0x1c0] sm:$0xff]  }
  0x11   : > { %2841 = vmatprep.subr.bf16.mxu0 %v3316_v6  ;;  %3081 = vmatprep.subr.bf16.mxu1 %v3317_v7  ;;  %s3269_s5 = smul.u32 216, %s4449_s16  ;;  %v3330_v20 = vld [vmem:[%s4434_s1 + $0xf0] sm:$0xff]   ;;  %v3333_v27 = vld [vmem:[%s4434_s1 + $0xf8] sm:$0xff]   ;;  %v3342_v46 = vld [vmem:[%s4434_s1] sm:$0xff]   ;;  %s2477_s25 = sshll.u32 %s4449_s16, 5 }
  0x12   : > { %v3343_v47 = vld [vmem:[%s4434_s1 + $0x180] sm:$0xff]   ;;  %v3344_v51 = vld [vmem:[%s4434_s1 + $0x48] sm:$0xff]   ;;  %v3352_v2 = vld [vmem:[%s4434_s1 + $0x50] sm:$0xff]  }
  0x13   : > { %s239_s22 = scalar_lea.vmem %s4433_s0, %s3269_s5  ;;  %v3345_v57 = vld [vmem:[%s4434_s1 + $0x8] sm:$0xff]  }
  0x14   : > { %2842 = vmatpush3.bf16.msra.mxu0 %v3318_v8  ;;  %3082 = vmatpush3.bf16.msra.mxu1 %v3317_v7  ;;  %s3622_s29 = scalar_lea.vmem %s239_s22, %s2797_s12 }
  0x15   : > { %2843 = vmatprep.subr.bf16.mxu0 %v3319_v9  ;;  %3083 = vmatprep.subr.bf16.mxu1 %v3320_v10  ;;  %v2512_v22 = vld [vmem:[%s3622_s29 + $0xc] sm:$0xf]  ;;  %v2513_v23 = vld [vmem:[%s3622_s29 + $0x10] sm:$0xf]  ;;  %v2514_v29 = vld [vmem:[%s3622_s29 + $0x18] sm:$0xf] }
  0x16   : > { %v2544_v25 = vcombine.low %v2512_v22, %v2513_v23  ;;  %v3335_v26 = vld [vmem:[%s3622_s29 + $0x14] ss:$0 sps:$4 sm:$0x11]   ;;  %v2536_v28 = vld [vmem:[%s3622_s29 + $0xc] sm:$0xe]  ;;  %v3357_v22 = vld [vmem:[%s4434_s1 + $0x18] sm:$0xff]  }
  0x17   : > { %v2515_v30 = vld [vmem:[%s3622_s29 + $0x1c] sm:$0xf]  ;;  %v697_v33 = vshll.u32 %v3335_v26, 16  ;;  %v2560_v34 = vcombine.low %v2536_v28, %v2513_v23  ;;  %v818_v36 = vrot.slane %v3335_v26, 1  ;;  %v2537_v37 = vld [vmem:[%s3622_s29 + $0x18] sm:$0xe] }
  0x18   : > { %2844 = vmatpush3.bf16.msra.mxu0 %v3321_v11  ;;  %3084 = vmatpush3.bf16.msra.mxu1 %v3320_v10  ;;  %v690_v31 = vshrl.u32 %v2544_v25, 16  ;;  %v692_v32 = vshll.u32 %v2544_v25, 16  ;;  %v3338_v38 = vld [vmem:[%s3622_s29 + $0x20] ss:$0 sps:$4 sm:$0x11]   ;;  %v2561_v42 = vcombine.low %v2537_v37, %v2515_v30  ;;  %v2545_v44 = vcombine.low %v2514_v29, %v2515_v30  ;;  %v3353_v10 = vld [vmem:[%s4434_s1 + $0x1c8] sm:$0xff]  }
  0x19   : > { %2845 = vmatprep.subr.bf16.mxu0 %v3322_v12  ;;  %3085 = vmatprep.subr.bf16.mxu1 %v3323_v13  ;;  %v699_v40 = vrot.slane %v697_v33, 1  ;;  %v817_v41 = vrot.slane %v2560_v34, 1  ;;  %v821_v45 = vrot.slane %v3338_v38, 1  ;;  %v709_v56 = vshll.u32 %v3338_v38, 16  ;;  %v2517_v58 = vld [vmem:[%s3622_s29 + $0x28] sm:$0xf] }
  0x1a   : > { %v694_v39 = vrot.slane %v692_v32, 1  ;;  %v820_v50 = vrot.slane %v2561_v42, 1  ;;  %v702_v54 = vshrl.u32 %v2545_v44, 16  ;;  %v704_v55 = vshll.u32 %v2545_v44, 16  ;;  %v2516_v61 = vld [vmem:[%s3622_s29 + $0x24] sm:$0xf] }
  0x1b   : > { %v819_v49 = vsel %vm500_vm0, %v817_v41, %v818_v36  ;;  %v711_v60 = vrot.slane %v709_v56, 1  ;;  %v2538_v62 = vld [vmem:[%s3622_s29 + $0x24] sm:$0xe]  ;;  %v3347_v63 = vld [vmem:[%s3622_s29 + $0x2c] ss:$0 sps:$4 sm:$0x11]   ;;  %v2546_v5 = vcombine.low %v2516_v61, %v2517_v58 }
  0x1c   : > { %2846 = vmatpush3.bf16.msra.mxu0 %v3324_v14  ;;  %3086 = vmatpush3.bf16.msra.mxu1 %v3323_v13  ;;  %v695_v48 = vor.u32 %v694_v39, %v690_v31  ;;  %v822_v53 = vsel %vm500_vm0, %v820_v50, %v821_v45  ;;  %v706_v59 = vrot.slane %v704_v55, 1  ;;  %v2562_v0 = vcombine.low %v2538_v62, %v2517_v58  ;;  %v2519_v1 = vld [vmem:[%s3622_s29 + $0x34] sm:$0xf]  ;;  %v2539_v4 = vld [vmem:[%s3622_s29 + $0x30] sm:$0xe]  ;;  %v3366_v39 = vld [vmem:[%s4434_s1 + $0x20] sm:$0xff]  }
  0x1d   : > { %2847 = vmatprep.subr.bf16.mxu0 %v3325_v15  ;;  %3087 = vmatprep.subr.bf16.mxu1 %v3326_v16  ;;  %v824_v7 = vrot.slane %v3347_v63, 1  ;;  %v3675_v8 = vld [vmem:[%s3622_s29 + $0x38] ss:$0 sps:$4 sm:$0x11]   ;;  %v2563_v9 = vcombine.low %v2539_v4, %v2519_v1  ;;  %v3354_v15 = vld [vmem:[%s4434_s1 + $0x10] sm:$0xff]  }
  0x1e   : > { %v700_v52 = vsel %vm371_vm1, %v695_v48, %v699_v40  ;;  %3093 = vmatprep.mubr.bf16.mxu1 %v819_v49  ;;  %v707_v3 = vor.u32 %v706_v59, %v702_v54  ;;  %v823_v6 = vrot.slane %v2562_v0, 1  ;;  %v827_v14 = vrot.slane %v3675_v8, 1  ;;  %v2540_v26 = vld [vmem:[%s3622_s29 + $0x3c] sm:$0xe]  ;;  %v2518_v28 = vld [vmem:[%s3622_s29 + $0x30] sm:$0xf] }
  0x1f   : > { %1074 = vmatprep.mubr.bf16.mxu0 %v700_v52  ;;  %v826_v13 = vrot.slane %v2563_v9, 1  ;;  %v3703_v30 = vld [vmem:[%s3622_s29 + $0x44] ss:$0 sps:$4 sm:$0x11]   ;;  %v3365_v32 = vld [vmem:[%s4434_s1 + $0x1d0] sm:$0xff]   ;;  %v2547_v41 = vcombine.low %v2518_v28, %v2519_v1  ;;  %v3369_v48 = vld [vmem:[%s4434_s1 + $0x28] sm:$0xff]  }
  0x20   : > { %2848 = vmatpush3.bf16.msra.mxu0 %v3327_v17  ;;  %3088 = vmatpush3.bf16.msra.mxu1 %v3326_v16  ;;  %v712_v11 = vsel %vm371_vm1, %v707_v3, %v711_v60  ;;  %v825_v12 = vsel %vm500_vm0, %v823_v6, %v824_v7  ;;  %v714_v16 = vshrl.u32 %v2546_v5, 16  ;;  %v3709_v33 = vld [vmem:[%s3622_s29 + $0x4c] sm:$0xf]  ;;  %v2541_v34 = vld [vmem:[%s3622_s29 + $0x48] sm:$0xe]  ;;  %v830_v37 = vrot.slane %v3703_v30, 1 }
  0x21   : > { %2849 = vmatprep.subr.bf16.mxu0 %v3328_v18  ;;  %3089 = vmatprep.subr.bf16.mxu1 %v3329_v19  ;;  %v828_v17 = vsel %vm500_vm0, %v826_v13, %v827_v14  ;;  %v3355_v18 = vld [vmem:[%s4434_s1 + $0x188] sm:$0xff]   ;;  %v3715_v38 = vld [vmem:[%s3622_s29 + $0x50] ss:$0 sps:$4 sm:$0x11]   ;;  %v2565_v40 = vcombine.low %v2541_v34, %v3709_v33  ;;  %v726_v49 = vshrl.u32 %v2547_v41, 16  ;;  %v728_v50 = vshll.u32 %v2547_v41, 16 }
  0x22   : > { %v3735_v52 = vld [vmem:[%s3622_s29 + $0x58] sm:$0xf]  ;;  %v2542_v54 = vld [vmem:[%s3622_s29 + $0x54] sm:$0xe]  ;;  %v3747_v60 = vld [vmem:[%s3622_s29 + $0x64] sm:$0xf] }
  0x23   : > { %v832_v45 = vrot.slane %v2565_v40, 1  ;;  %v730_v55 = vrot.slane %v728_v50, 1  ;;  %v2566_v58 = vcombine.low %v2542_v54, %v3735_v52  ;;  %v3376_v59 = vld [vmem:[%s4434_s1 + $0x70] sm:$0xff]   ;;  %v2543_v61 = vld [vmem:[%s3622_s29 + $0x60] sm:$0xe]  ;;  %v3380_v13 = vld [vmem:[%s4434_s1 + $0x78] sm:$0xff]  }
  0x24   : > { %2850 = vmatpush3.bf16.msra.mxu0 %v3330_v20  ;;  %3090 = vmatpush3.bf16.msra.mxu1 %v3329_v19  ;;  %v716_v19 = vshll.u32 %v2546_v5, 16  ;;  %v3356_v20 = vld [vmem:[%s4434_s1 + $0x58] sm:$0xff]   ;;  %v3752_v1 = vld [vmem:[%s3622_s29 + $0x68] ss:$0 sps:$4 sm:$0x11]   ;;  %v2567_v3 = vcombine.low %v2543_v61, %v3747_v60  ;;  %v3378_v9 = vld [vmem:[%s4434_s1 + $0x30] sm:$0xff]  }
  0x25   : > { %2851 = vmatprep.subr.bf16.mxu0 %v3331_v21  ;;  %3091 = vmatprep.subr.bf16.mxu1 %v3332_v24  ;;  %v721_v21 = vshll.u32 %v3347_v63, 16  ;;  %v731_v62 = vor.u32 %v730_v55, %v726_v49  ;;  %v835_v63 = vrot.slane %v2566_v58, 1  ;;  %v269_v40 = vld [vmem:[%s3622_s29 + $0xc] sm:$0xf] }
  0x26   : > { %v718_v23 = vrot.slane %v716_v19, 1  ;;  %v3384_v19 = vld [vmem:[%s4434_s1 + $0x80] sm:$0xff]   ;;  %v3390_v49 = vld [vmem:[%s4434_s1 + $0x1e8] sm:$0xff]  }
  0x27   : > { %v3391_v55 = vld [vmem:[%s4434_s1 + $0x1a8] sm:$0xff]  }
  0x28   : > { %2852 = vmatpush3.bf16.msra.mxu0 %v3333_v27  ;;  %3092 = vmatpush3.bf16.msra.mxu1 %v3332_v24  ;;  %v2521_v24 = vld [vmem:[%s3622_s29 + $0x40] sm:$0xf]  ;;  %v719_v29 = vor.u32 %v718_v23, %v714_v16 }
  0x29   : > { %2917 = vmatprep.subr.bf16.mxu1 %v3340_v35  ;;  %2997 = vmatprep.subr.bf16.mxu0 %v3341_v43  ;;  %v3364_v27 = vld [vmem:[%s4434_s1 + $0x60] sm:$0xff]   ;;  %v2564_v31 = vcombine.low %v2540_v26, %v2521_v24  ;;  %v833_v43 = vrot.slane %v3715_v38, 1  ;;  %v3789_v26 = vld [vmem:[%s3622_s29 + $0x8] ss:$0 sps:$4 sm:$0x11]  }
  0x2b   : > { %1075 = vmatmul.mubr.bf16.vlgmr.msra.gmra.mrb[0].mxu0 %v2544_v25  ;;  %3094 = vmatmul.mubr.bf16.vlgmr.msra.gmra.mrb[0].mxu1 %v822_v53  ;;  %v723_v25 = vrot.slane %v721_v21, 1  ;;  %v829_v36 = vrot.slane %v2564_v31, 1  ;;  %v2520_v53 = vld [vmem:[%s3622_s29 + $0x3c] sm:$0xf]  ;;  %v3784_v21 = vld [vmem:[%s3622_s29 + $0x4] sm:$0xf] }
  0x2c   : > { %2918 = vmatpush3.bf16.msra.mxu1 %v3342_v46  ;;  %2998 = vmatpush3.bf16.msra.mxu0 %v3343_v47  ;;  %v3368_v46 = vld [vmem:[%s4434_s1 + $0x68] sm:$0xff]   ;;  %v834_v47 = vsel %vm500_vm0, %v832_v45, %v833_v43  ;;  %v2548_v4 = vcombine.low %v2520_v53, %v2521_v24  ;;  %v380_v31 = vshll.u32 %v3789_v26, 16  ;;  %v2526_v43 = vld [vmem:[%s3622_s29 + $0x60] sm:$0xf] }
  0x2d   : > { %2919 = vmatprep.subr.bf16.mxu1 %v3344_v51  ;;  %1082 = vmatprep.mubr.bf16.mxu0 %v712_v11  ;;  %v724_v35 = vsel %vm371_vm1, %v719_v29, %v723_v25  ;;  %v831_v42 = vsel %vm500_vm0, %v829_v36, %v830_v37  ;;  %v733_v51 = vshll.u32 %v3675_v8, 16  ;;  %v839_v8 = vrot.slane %v3752_v1, 1  ;;  %v3379_v11 = vld [vmem:[%s4434_s1 + $0x198] sm:$0xff]  }
  0x2e   : > { %3097 = vmatprep.mubr.bf16.mxu1 %v825_v12  ;;  %2999 = vmatprep.subr.bf16.mxu0 %v3353_v10  ;;  %v838_v10 = vrot.slane %v2567_v3, 1  ;;  %v738_v14 = vshrl.u32 %v2548_v4, 16  ;;  %v740_v16 = vshll.u32 %v2548_v4, 16  ;;  %v3834_v3 = vld [vmem:[%s3622_s29 + $0x1c] sm:$0xf] }
  0x2f   : > { %v735_v56 = vrot.slane %v733_v51, 1 }
  0x30   : > { %2920 = vmatpush3.bf16.msra.mxu1 %v3345_v57  ;;  %3000 = vmatpush3.bf16.msra.mxu0 %v3355_v18  ;;  %v3740_v57 = vld [vmem:[%s3622_s29 + $0x5c] ss:$0 sps:$4 sm:$0x11]   ;;  %v840_v12 = vsel %vm500_vm0, %v838_v10, %v839_v8  ;;  %v267_v18 = vld [vmem:[%s3622_s29] sm:$0xf]  ;;  %v742_v23 = vrot.slane %v740_v16, 1 }
  0x31   : > { %2921 = vmatprep.subr.bf16.mxu1 %v3352_v2  ;;  %3001 = vmatprep.subr.bf16.mxu0 %v3365_v32  ;;  %v836_v0 = vrot.slane %v3740_v57, 1  ;;  %v3377_v2 = vld [vmem:[%s4434_s1 + $0x1d8] sm:$0xff]   ;;  %v736_v6 = vsel %vm371_vm1, %v731_v62, %v735_v56  ;;  %v2486_v25 = vcombine.low %v267_v18, %v3784_v21  ;;  %v3386_v32 = vld [vmem:[%s4434_s1 + $0x1a0] sm:$0xff]  }
  0x32   : > { %v743_v28 = vor.u32 %v742_v23, %v738_v14  ;;  %v271_v62 = vld [vmem:[%s3622_s29 + $0x18] sm:$0xf]  ;;  %v3396_v14 = vld [vmem:[%s4434_s1 + $0x1b0] sm:$0xff]  }
  0x33   : > { %1083 = vmatmul.mubr.bf16.gmra.mrb[4].mxu0 %v2545_v44  ;;  %3098 = vmatmul.mubr.bf16.gmra.mrb[4].mxu1 %v828_v17  ;;  %v3367_v44 = vld [vmem:[%s4434_s1 + $0x190] sm:$0xff]   ;;  %v837_v7 = vsel %vm500_vm0, %v835_v63, %v836_v0  ;;  %v745_v17 = vshll.u32 %v3703_v30, 16  ;;  %v373_v29 = vshrl.u32 %v2486_v25, 16  ;;  %v375_v30 = vshll.u32 %v2486_v25, 16 }
  0x34   : > { %2922 = vmatpush3.bf16.msra.mxu1 %v3354_v15  ;;  %1090 = vmatprep.mubr.bf16.mxu0 %v724_v35  ;;  %v3381_v15 = vld [vmem:[%s4434_s1 + $0x38] sm:$0xff]   ;;  %v757_v35 = vshll.u32 %v3715_v38, 16  ;;  %v3812_v38 = vld [vmem:[%s3622_s29 + $0x14] ss:$0 sps:$4 sm:$0x11]   ;;  %v3830_v63 = vcombine.low %v2526_v43, %v3747_v60  ;;  %v3406_v43 = vld [vmem:[%s4434_s1 + $0xa0] sm:$0xff]  }
  0x35   : > { %2923 = vmatprep.subr.bf16.mxu1 %v3356_v20  ;;  %3101 = vmatprep.mubr.bf16.mxu1 %v831_v42  ;;  %v747_v24 = vrot.slane %v745_v17, 1  ;;  %v377_v37 = vrot.slane %v375_v30, 1  ;;  %v392_v54 = vshll.u32 %v3812_v38, 16  ;;  %v3843_v60 = vld [vmem:[%s3622_s29 + $0x20] ss:$0 sps:$4 sm:$0x11]  }
  0x36   : > { %3002 = vmatpush3.bf16.msra.mxu0 %v3367_v44  ;;  %v759_v45 = vrot.slane %v757_v35, 1  ;;  %v776_v16 = vshll.u32 %v3830_v63, 16 }
  0x37   : > { %3003 = vmatprep.subr.bf16.mxu0 %v3377_v2  ;;  %v748_v36 = vsel %vm371_vm1, %v743_v28, %v747_v24  ;;  %v394_v0 = vrot.slane %v392_v54, 1  ;;  %v769_v2 = vshll.u32 %v3740_v57, 16  ;;  %v3395_v57 = vld [vmem:[%s4434_s1 + $0x1f0] sm:$0xff]  }
  0x38   : > { %2924 = vmatpush3.bf16.msra.mxu1 %v3357_v22  ;;  %v2524_v22 = vld [vmem:[%s3622_s29 + $0x54] sm:$0xf]  ;;  %v778_v24 = vrot.slane %v776_v16, 1 }
  0x39   : > { %2925 = vmatprep.subr.bf16.mxu1 %v3364_v27  ;;  %v3385_v27 = vld [vmem:[%s4434_s1 + $0x1e0] sm:$0xff]   ;;  %v3807_v42 = vcombine.low %v2524_v22, %v3735_v52  ;;  %v771_v8 = vrot.slane %v769_v2, 1 }
  0x3a   : > { %3004 = vmatpush3.bf16.msra.mxu0 %v3379_v11  ;;  %v273_v22 = vld [vmem:[%s3622_s29 + $0x24] sm:$0xf] }
  0x3b   : > { %1091 = vmatmul.mubr.bf16.gmra.mrb[8].mxu0 %v2546_v5  ;;  %3102 = vmatmul.mubr.bf16.gmra.mrb[8].mxu1 %v834_v47  ;;  %v2522_v5 = vld [vmem:[%s3622_s29 + $0x48] sm:$0xf]  ;;  %v378_v47 = vor.u32 %v377_v37, %v373_v29  ;;  %v764_v61 = vshll.u32 %v3807_v42, 16  ;;  %v3868_v29 = vld [vmem:[%s3622_s29 + $0x2c] ss:$0 sps:$4 sm:$0x11]  }
  0x3c   : > { %2926 = vmatpush3.bf16.msra.mxu1 %v3366_v39  ;;  %1098 = vmatprep.mubr.bf16.mxu0 %v736_v6  ;;  %v3781_v20 = vcombine.low %v2522_v5, %v3709_v33  ;;  %v382_v39 = vrot.slane %v380_v31, 1  ;;  %v416_v35 = vshll.u32 %v3868_v29, 16 }
  0x3d   : > { %2927 = vmatprep.subr.bf16.mxu1 %v3368_v46  ;;  %3105 = vmatprep.mubr.bf16.mxu1 %v837_v7  ;;  %v766_v6 = vrot.slane %v764_v61, 1  ;;  %v3840_v7 = vcombine.low %v271_v62, %v3834_v3 }
  0x3e   : > { %3005 = vmatprep.subr.bf16.mxu0 %v3385_v27  ;;  %v750_v33 = vshrl.u32 %v3781_v20, 16  ;;  %v752_v34 = vshll.u32 %v3781_v20, 16  ;;  %v383_v53 = vsel %vm371_vm1, %v378_v47, %v382_v39 }
  0x3f   : > { %3006 = vmatpush3.bf16.msra.mxu0 %v3386_v32  ;;  %v397_v11 = vshrl.u32 %v3840_v7, 16  ;;  %v3399_v32 = vld [vmem:[%s4434_s1 + $0x98] sm:$0xff]  }
  0x40   : > { %2928 = vmatpush3.bf16.msra.mxu1 %v3369_v48  ;;  %v754_v44 = vrot.slane %v752_v34, 1  ;;  %v3389_v48 = vld [vmem:[%s4434_s1 + $0x88] sm:$0xff]   ;;  %3007 = vmatprep.subr.bf16.mxu0 %v3390_v49  ;;  %v3901_v49 = vld [vmem:[%s3622_s29 + $0x38] ss:$0 sps:$4 sm:$0x11]  }
  0x41   : > { %2929 = vmatprep.subr.bf16.mxu1 %v3376_v59  ;;  %v762_v59 = vshrl.u32 %v3807_v42, 16 }
  0x42   : > { %v755_v50 = vor.u32 %v754_v44, %v750_v33  ;;  %v3400_v33 = vld [vmem:[%s4434_s1 + $0x1f8] sm:$0xff]   ;;  %v418_v44 = vrot.slane %v416_v35, 1  ;;  %v3966_v35 = vld [vmem:[%s3622_s29 + $0x34] sm:$0xf] }
  0x43   : > { %1099 = vmatmul.mubr.bf16.gmra.mrb[12].mxu0 %v2547_v41  ;;  %3106 = vmatmul.mubr.bf16.gmra.mrb[12].mxu1 %v840_v12  ;;  %v3804_v41 = vld [vmem:[%s3622_s29 + $0x10] sm:$0xf]  ;;  %v767_v10 = vor.u32 %v766_v6, %v762_v59  ;;  %v399_v12 = vshll.u32 %v3840_v7, 16 }
  0x44   : > { %2930 = vmatpush3.bf16.msra.mxu1 %v3378_v9  ;;  %1106 = vmatprep.mubr.bf16.mxu0 %v748_v36  ;;  %v2487_v46 = vcombine.low %v269_v40, %v3804_v41  ;;  %v760_v56 = vsel %vm371_vm1, %v755_v50, %v759_v45  ;;  %v3401_v36 = vld [vmem:[%s4434_s1 + $0x1b8] sm:$0xff]   ;;  %v275_v40 = vld [vmem:[%s3622_s29 + $0x30] sm:$0xf]  ;;  %v3889_v45 = vld [vmem:[%s3622_s29 + $0x34] sm:$0xf] }
  0x45   : > { %2931 = vmatprep.subr.bf16.mxu1 %v3380_v13  ;;  %1412 = vmatprep.mubr.bf16.mxu1 %v383_v53  ;;  %v404_v13 = vshll.u32 %v3843_v60, 16  ;;  %v772_v17 = vsel %vm371_vm1, %v767_v10, %v771_v8  ;;  %v401_v18 = vrot.slane %v399_v12, 1  ;;  %v2666_v50 = vld [vmem:[%s3622_s29 + $0x18] sm:$0xf]  ;;  %v3418_v12 = vld [vmem:[%s4434_s1 + $0xb0] sm:$0xff]  }
  0x46   : > { %v385_v51 = vshrl.u32 %v2487_v46, 16  ;;  %v387_v52 = vshll.u32 %v2487_v46, 16  ;;  %3008 = vmatpush3.bf16.msra.mxu0 %v3391_v55  ;;  %v428_v55 = vshll.u32 %v3901_v49, 16 }
  0x47   : > { %3009 = vmatprep.subr.bf16.mxu0 %v3395_v57  ;;  %v406_v23 = vrot.slane %v404_v13, 1  ;;  %v402_v27 = vor.u32 %v401_v18, %v397_v11  ;;  %v3933_v11 = vld [vmem:[%s3622_s29 + $0x28] sm:$0xf] }
  0x48   : > { %2932 = vmatpush3.bf16.msra.mxu1 %v3381_v15  ;;  %v389_v58 = vrot.slane %v387_v52, 1  ;;  %v774_v15 = vshrl.u32 %v3830_v63, 16  ;;  %v3908_v52 = vld [vmem:[%s3622_s29 + $0x1c] sm:$0xf]  ;;  %v430_v61 = vrot.slane %v428_v55, 1 }
  0x49   : > { %3109 = vmatprep.subr.bf16.mxu1 %v3384_v19  ;;  %v407_v34 = vsel %vm371_vm1, %v402_v27, %v406_v23 }
  0x4a   : > { %v390_v5 = vor.u32 %v389_v58, %v385_v51  ;;  %3010 = vmatpush3.bf16.msra.mxu0 %v3396_v14  ;;  %v779_v30 = vor.u32 %v778_v24, %v774_v15  ;;  %v3412_v51 = vld [vmem:[%s4434_s1 + $0xa8] sm:$0xff]   ;;  %v2698_v58 = vcombine.low %v2666_v50, %v3908_v52  ;;  %v3982_v50 = vld [vmem:[%s3622_s29 + $0x38] ss:$0 sps:$4 sm:$0x11]  }
  0x4b   : > { %1107 = vmatmul.mubr.bf16.gmra.mrb[16].mxu0 %v2548_v4  ;;  %1413 = vmatmul.mubr.bf16.vlgmr.msra.gmra.mrb[16].mxu1 %v2486_v25  ;;  %v3394_v4 = vld [vmem:[%s4434_s1 + $0x90] sm:$0xff]   ;;  %v3941_v14 = vld [vmem:[%s3622_s29 + $0x2c] ss:$0 sps:$4 sm:$0x11]  }
  0x4c   : > { %1114 = vmatprep.mubr.bf16.mxu0 %v760_v56  ;;  %3110 = vmatpush3.bf16.msra.mxu1 %v3384_v19  ;;  %v395_v9 = vsel %vm371_vm1, %v390_v5, %v394_v0  ;;  %v781_v19 = vshll.u32 %v3752_v1, 16  ;;  %v3915_v56 = vld [vmem:[%s3622_s29 + $0x20] ss:$0 sps:$4 sm:$0x11]   ;;  %v277_v0 = vld [vmem:[%s3622_s29 + $0x3c] sm:$0xf] }
  0x4d   : > { %3111 = vmatprep.subr.bf16.mxu1 %v3389_v48  ;;  %1420 = vmatprep.mubr.bf16.mxu1 %v395_v9  ;;  %v1690_v62 = vshll.u32 %v3915_v56, 16  ;;  %v1683_v2 = vshrl.u32 %v2698_v58, 16  ;;  %v3923_v5 = vld [vmem:[%s3622_s29 + $0x40] sm:$0xf] }
  0x4e   : > { %v783_v28 = vrot.slane %v781_v19, 1  ;;  %3011 = vmatprep.subr.bf16.mxu0 %v3400_v33  ;;  %v3926_v57 = vcombine.low %v277_v0, %v3923_v5  ;;  %v3929_v9 = vld [vmem:[%s3622_s29 + $0x44] ss:$0 sps:$4 sm:$0x11]   ;;  %v3999_v0 = vld [vmem:[%s3622_s29 + $0x58] sm:$0xf] }
  0x4f   : > { %3012 = vmatpush3.bf16.msra.mxu0 %v3401_v36  ;;  %v1692_v8 = vrot.slane %v1690_v62, 1  ;;  %v3424_v36 = vld [vmem:[%s4434_s1 + $0xb8] sm:$0xff]   ;;  %v281_v62 = vld [vmem:[%s3622_s29 + $0x54] sm:$0xf] }
  0x50   : > { %3112 = vmatpush3.bf16.msra.mxu1 %v3389_v48  ;;  %v784_v37 = vsel %vm371_vm1, %v779_v30, %v783_v28  ;;  %v3898_v48 = vcombine.low %v275_v40, %v3889_v45  ;;  %v435_v13 = vshll.u32 %v3926_v57, 16  ;;  %v433_v18 = vshrl.u32 %v3926_v57, 16  ;;  %v279_v28 = vld [vmem:[%s3622_s29 + $0x48] sm:$0xf]  ;;  %v3955_v30 = vld [vmem:[%s3622_s29 + $0x4c] sm:$0xf] }
  0x51   : > { %3113 = vmatprep.subr.bf16.mxu1 %v3394_v4 }
  0x52   : > { %v423_v54 = vshll.u32 %v3898_v48, 16  ;;  %v437_v19 = vrot.slane %v435_v13, 1 }
  0x53   : > { %1115 = vmatmul.mubr.bf16.gmra.mrb[20].mxu0 %v3781_v20  ;;  %v3862_v20 = vld [vmem:[%s3622_s29 + $0x28] sm:$0xf]  ;;  %1421 = vmatmul.mubr.bf16.gmra.mrb[20].mxu1 %v2487_v46  ;;  %v3894_v46 = vld [vmem:[%s4434_s1 + $0x200] sm:$0xff]  }
  0x54   : > { %1122 = vmatprep.mubr.bf16.mxu0 %v772_v17  ;;  %v3865_v25 = vcombine.low %v273_v22, %v3862_v20  ;;  %3114 = vmatpush3.bf16.msra.mxu1 %v3394_v4  ;;  %v425_v59 = vrot.slane %v423_v54, 1  ;;  %v1685_v4 = vshll.u32 %v2698_v58, 16  ;;  %v440_v22 = vshll.u32 %v3929_v9, 16 }
  0x55   : > { %1428 = vmatprep.mubr.bf16.mxu1 %v407_v34  ;;  %3115 = vmatprep.subr.bf16.mxu1 %v3399_v32  ;;  %v2670_v34 = vld [vmem:[%s3622_s29 + $0x30] sm:$0xf] }
  0x56   : > { %v409_v1 = vshrl.u32 %v3865_v25, 16  ;;  %v411_v31 = vshll.u32 %v3865_v25, 16  ;;  %3141 = vmatprep.subr.bf16.mxu0 %v3894_v46  ;;  %v1687_v10 = vrot.slane %v1685_v4, 1 }
  0x58   : > { %v413_v39 = vrot.slane %v411_v31, 1  ;;  %3116 = vmatpush3.bf16.msra.mxu1 %v3399_v32  ;;  %v1688_v16 = vor.u32 %v1687_v10, %v1683_v2  ;;  %v3959_v31 = vcombine.low %v279_v28, %v3955_v30  ;;  %v3962_v32 = vld [vmem:[%s3622_s29 + $0x50] ss:$0 sps:$4 sm:$0x11]   ;;  %v4011_v10 = vld [vmem:[%s3622_s29 + $0x40] sm:$0xf] }
  0x59   : > { %3117 = vmatprep.subr.bf16.mxu1 %v3406_v43  ;;  %v2674_v28 = vld [vmem:[%s3622_s29 + $0x48] sm:$0xf] }
  0x5a   : > { %v414_v47 = vor.u32 %v413_v39, %v409_v1  ;;  %v1693_v23 = vsel %vm371_vm1, %v1688_v16, %v1692_v8  ;;  %v3974_v39 = vld [vmem:[%s4434_s1 + $0x208] sm:$0xff]   ;;  %v447_v40 = vshll.u32 %v3959_v31, 16  ;;  %v4005_v8 = vld [vmem:[%s3622_s29 + $0x5c] ss:$0 sps:$4 sm:$0x11]  }
  0x5b   : > { %1123 = vmatmul.mubr.bf16.gmra.mrb[24].mxu0 %v3807_v42  ;;  %v421_v42 = vshrl.u32 %v3898_v48, 16  ;;  %1429 = vmatmul.mubr.bf16.gmra.mrb[24].mxu1 %v3840_v7  ;;  %v2668_v7 = vld [vmem:[%s3622_s29 + $0x24] sm:$0xf] }
  0x5c   : > { %1130 = vmatprep.mubr.bf16.mxu0 %v784_v37  ;;  %v419_v53 = vsel %vm371_vm1, %v414_v47, %v418_v44  ;;  %3118 = vmatpush3.bf16.msra.mxu1 %v3406_v43  ;;  %v3945_v17 = vcombine.low %v2668_v7, %v3933_v11  ;;  %v438_v37 = vor.u32 %v437_v19, %v433_v18  ;;  %v445_v44 = vshrl.u32 %v3959_v31, 16  ;;  %v2672_v7 = vld [vmem:[%s3622_s29 + $0x3c] sm:$0xf]  ;;  %v4016_v16 = vld [vmem:[%s3622_s29 + $0x44] ss:$0 sps:$4 sm:$0x11]  }
  0x5d   : > { %1436 = vmatprep.mubr.bf16.mxu1 %v419_v53  ;;  %v426_v6 = vor.u32 %v425_v59, %v421_v42  ;;  %3119 = vmatprep.subr.bf16.mxu1 %v3412_v51  ;;  %v3979_v47 = vcombine.low %v2670_v34, %v3966_v35  ;;  %v452_v53 = vshll.u32 %v3962_v32, 16  ;;  %v1714_v59 = vshll.u32 %v3982_v50, 16  ;;  %v4021_v18 = vld [vmem:[%s4434_s1 + $0x218] sm:$0xff]   ;;  %v4037_v34 = vld [vmem:[%s3622_s29 + $0x4c] sm:$0xf] }
  0x5e   : > { %v1695_v24 = vshrl.u32 %v3945_v17, 16  ;;  %v1697_v27 = vshll.u32 %v3945_v17, 16  ;;  %v4025_v19 = vcombine.low %v2672_v7, %v4011_v10 }
  0x5f   : > { %v431_v15 = vsel %vm371_vm1, %v426_v6, %v430_v61  ;;  %v1707_v54 = vshrl.u32 %v3979_v47, 16  ;;  %v1709_v55 = vshll.u32 %v3979_v47, 16  ;;  %v1716_v4 = vrot.slane %v1714_v59, 1  ;;  %v4058_v59 = vld [vmem:[%s3622_s29 + $0x58] sm:$0xf] }
  0x60   : > { %3120 = vmatpush3.bf16.msra.mxu1 %v3412_v51  ;;  %v1699_v33 = vrot.slane %v1697_v27, 1  ;;  %v449_v51 = vrot.slane %v447_v40, 1  ;;  %v4002_v6 = vcombine.low %v281_v62, %v3999_v0  ;;  %v1721_v27 = vshll.u32 %v4025_v19, 16  ;;  %v4045_v40 = vld [vmem:[%s3622_s29 + $0x50] ss:$0 sps:$4 sm:$0x11]  }
  0x61   : > { %3121 = vmatprep.subr.bf16.mxu1 %v3418_v12  ;;  %v1711_v2 = vrot.slane %v1709_v55, 1  ;;  %v2676_v55 = vld [vmem:[%s3622_s29 + $0x54] sm:$0xf]  ;;  %v291_v62 = vld [vmem:[%s3622_s29] sm:$0xe] }
  0x62   : > { %v1700_v43 = vor.u32 %v1699_v33, %v1695_v24  ;;  %v1719_v24 = vshrl.u32 %v4025_v19, 16  ;;  %v4070_v7 = vcombine.low %v2676_v55, %v4058_v59 }
  0x63   : > { %1131 = vmatmul.mubr.bf16.gmra.mrb[28].mxu0 %v3830_v63  ;;  %v1702_v63 = vshll.u32 %v3941_v14, 16  ;;  %1437 = vmatmul.mubr.bf16.gmra.mrb[28].mxu1 %v3865_v25  ;;  %v442_v25 = vrot.slane %v440_v22, 1  ;;  %v1712_v13 = vor.u32 %v1711_v2, %v1707_v54  ;;  %v1738_v54 = vshll.u32 %v4045_v40, 16 }
  0x64   : > { %2067 = vmatprep.mubr.bf16.mxu0 %v1693_v23  ;;  %1444 = vmatprep.mubr.bf16.mxu1 %v431_v15  ;;  %v459_v15 = vshll.u32 %v4002_v6, 16  ;;  %v464_v23 = vshll.u32 %v4005_v8, 16 }
  0x65   : > { %v1704_v1 = vrot.slane %v1702_v63, 1  ;;  %3122 = vmatpush3.bf16.msra.mxu1 %v3418_v12  ;;  %v443_v61 = vsel %vm371_vm1, %v438_v37, %v442_v25  ;;  %v454_v12 = vrot.slane %v452_v53, 1  ;;  %v1717_v22 = vsel %vm371_vm1, %v1712_v13, %v1716_v4 }
  0x66   : > { %3123 = vmatprep.subr.bf16.mxu1 %v3424_v36  ;;  %v1726_v63 = vshll.u32 %v4016_v16, 16  ;;  %v461_v33 = vrot.slane %v459_v15, 1  ;;  %v4042_v25 = vcombine.low %v2674_v28, %v4037_v34  ;;  %v1740_v13 = vrot.slane %v1738_v54, 1  ;;  %v4078_v15 = vld [vmem:[%s4434_s1 + $0x230] sm:$0xff]   ;;  %v292_v28 = vld [vmem:[%s3622_s29 + $0xc] sm:$0xe] }
  0x67   : > { %v1705_v42 = vsel %vm371_vm1, %v1700_v43, %v1704_v1  ;;  %v457_v1 = vshrl.u32 %v4002_v6, 16  ;;  %v4050_v43 = vld [vmem:[%s4434_s1 + $0x220] sm:$0xff]  }
  0x68   : > { %v1728_v37 = vrot.slane %v1726_v63, 1  ;;  %v1733_v53 = vshll.u32 %v4042_v25, 16  ;;  %v1731_v2 = vshrl.u32 %v4042_v25, 16  ;;  %v4082_v63 = vld [vmem:[%s3622_s29 + $0x5c] ss:$0 sps:$4 sm:$0x11]  }
  0x69   : > { %3124 = vmatpush3.bf16.msra.mxu1 %v3424_v36 }
  0x6a   : > { %3173 = vmatprep.subr.bf16.mxu1 %v3894_v46  ;;  %v1735_v4 = vrot.slane %v1733_v53, 1  ;;  %v4111_v53 = vld [vmem:[%s3622_s29 + $0x68] ss:$0 sps:$4 sm:$0x11]  }
  0x6b   : > { %2068 = vmatmul.mubr.bf16.vlgmr.msra.gmra.mrb[32].mxu0 %v2698_v58  ;;  %v3993_v58 = vld [vmem:[%s4434_s1 + $0x210] sm:$0xff]   ;;  %1445 = vmatmul.mubr.bf16.gmra.mrb[32].mxu1 %v3898_v48  ;;  %v450_v48 = vor.u32 %v449_v51, %v445_v44  ;;  %v466_v44 = vrot.slane %v464_v23, 1  ;;  %v2678_v23 = vld [vmem:[%s3622_s29 + $0x60] sm:$0xf] }
  0x6c   : > { %3142 = vmatpush3.bf16.msra.mxu0 %v3894_v46  ;;  %2075 = vmatprep.mubr.bf16.mxu0 %v1705_v42  ;;  %v462_v42 = vor.u32 %v461_v33, %v457_v1  ;;  %v1743_v1 = vshrl.u32 %v4070_v7, 16 }
  0x6d   : > { %3143 = vmatprep.subr.bf16.mxu0 %v3974_v39  ;;  %1452 = vmatprep.mubr.bf16.mxu1 %v443_v61  ;;  %v455_v36 = vsel %vm371_vm1, %v450_v48, %v454_v12  ;;  %v4063_v61 = vld [vmem:[%s4434_s1 + $0x228] sm:$0xff]   ;;  %v2502_v12 = vcombine.low %v291_v62, %v3784_v21  ;;  %v4088_v21 = vld [vmem:[%s3622_s29 + $0x64] sm:$0xf] }
  0x6e   : > { %v467_v48 = vsel %vm371_vm1, %v462_v42, %v466_v44  ;;  %v2503_v44 = vcombine.low %v292_v28, %v3804_v41  ;;  %v2680_v62 = vld [vmem:[%s3622_s29 + $0x6c] sm:$0xf]  ;;  %v505_v41 = vrot.slane %v3812_v38, 1 }
  0x70   : > { %3144 = vmatpush3.bf16.msra.mxu0 %v3974_v39 }
  0x71   : > { %3145 = vmatprep.subr.bf16.mxu0 %v3993_v58 }
  0x73   : > { %2076 = vmatmul.mubr.bf16.gmra.mrb[36].mxu0 %v3945_v17  ;;  %v1723_v17 = vrot.slane %v1721_v27, 1  ;;  %1453 = vmatmul.mubr.bf16.gmra.mrb[36].mxu1 %v3926_v57  ;;  %v501_v27 = vrot.slane %v2502_v12, 1  ;;  %v2691_v12 = vld [vmem:[%s3622_s29 + $0x24] sm:$0xe] }
  0x74   : > { %2083 = vmatprep.mubr.bf16.mxu0 %v1717_v22  ;;  %3146 = vmatpush3.bf16.msra.mxu0 %v3993_v58  ;;  %v1736_v22 = vor.u32 %v1735_v4, %v1731_v2  ;;  %v4121_v2 = vld [vmem:[%s3622_s29 + $0x70] sm:$0xf]  ;;  %v1811_v4 = vrot.slane %v3915_v56, 1 }
  0x75   : > { %3147 = vmatprep.subr.bf16.mxu0 %v4021_v18  ;;  %v1724_v51 = vor.u32 %v1723_v17, %v1719_v24  ;;  %1460 = vmatprep.mubr.bf16.mxu1 %v455_v36  ;;  %v502_v24 = vrot.slane %v3789_v26, 1  ;;  %v293_v36 = vld [vmem:[%s3622_s29 + $0x18] sm:$0xe] }
  0x76   : > { %v1741_v33 = vsel %vm371_vm1, %v1736_v22, %v1740_v13  ;;  %v4105_v26 = vld [vmem:[%s4434_s1 + $0x238] sm:$0xff]   ;;  %v504_v13 = vrot.slane %v2503_v44, 1  ;;  %v2715_v22 = vcombine.low %v2691_v12, %v3933_v11 }
  0x77   : > { %v1729_v57 = vsel %vm371_vm1, %v1724_v51, %v1728_v37  ;;  %v1750_v37 = vshll.u32 %v4082_v63, 16  ;;  %v2504_v51 = vcombine.low %v293_v36, %v3834_v3  ;;  %v503_v42 = vsel %vm500_vm0, %v501_v27, %v502_v24  ;;  %v295_v27 = vld [vmem:[%s3622_s29 + $0x30] sm:$0xe] }
  0x78   : > { %3148 = vmatpush3.bf16.msra.mxu0 %v4021_v18  ;;  %v1762_v24 = vshll.u32 %v4111_v53, 16  ;;  %v1813_v11 = vrot.slane %v2715_v22, 1  ;;  %v520_v22 = vrot.slane %v3962_v32, 1 }
  0x79   : > { %3149 = vmatprep.subr.bf16.mxu0 %v4050_v43  ;;  %v1752_v55 = vrot.slane %v1750_v37, 1  ;;  %v507_v38 = vrot.slane %v2504_v51, 1 }
  0x7a   : > { %v1764_v51 = vrot.slane %v1762_v24, 1  ;;  %v2692_v24 = vld [vmem:[%s3622_s29 + $0x30] sm:$0xe] }
  0x7b   : > { %2084 = vmatmul.mubr.bf16.gmra.mrb[40].mxu0 %v3979_v47  ;;  %v1745_v47 = vshll.u32 %v4070_v7, 16  ;;  %1461 = vmatmul.mubr.bf16.gmra.mrb[40].mxu1 %v3959_v31  ;;  %v4099_v31 = vcombine.low %v2678_v23, %v4088_v21 }
  0x7c   : > { %2091 = vmatprep.mubr.bf16.mxu0 %v1729_v57  ;;  %3150 = vmatpush3.bf16.msra.mxu0 %v4050_v43 }
  0x7d   : > { %3151 = vmatprep.subr.bf16.mxu0 %v4063_v61  ;;  %1468 = vmatprep.mubr.bf16.mxu1 %v467_v48  ;;  %v1747_v17 = vrot.slane %v1745_v47, 1  ;;  %v1757_v57 = vshll.u32 %v4099_v31, 16  ;;  %v508_v48 = vrot.slane %v3843_v60, 1  ;;  %v1814_v47 = vrot.slane %v3941_v14, 1 }
  0x7e   : > { %v1755_v23 = vshrl.u32 %v4099_v31, 16  ;;  %v4137_v60 = vcombine.low %v2680_v62, %v4121_v2  ;;  %v296_v62 = vld [vmem:[%s3622_s29 + $0x3c] sm:$0xe] }
  0x7f   : > { %v1748_v54 = vor.u32 %v1747_v17, %v1743_v1  ;;  %v1759_v28 = vrot.slane %v1757_v57, 1  ;;  %v4144_v1 = vsel %vm500_vm0, %v1813_v11, %v1814_v47  ;;  %v2506_v17 = vcombine.low %v295_v27, %v3889_v45  ;;  %v2696_v27 = vld [vmem:[%s3622_s29 + $0x60] sm:$0xe]  ;;  %v2693_v11 = vld [vmem:[%s3622_s29 + $0x3c] sm:$0xe] }
  0x80   : > { %3152 = vmatpush3.bf16.msra.mxu0 %v4063_v61  ;;  %v509_v37 = vsel %vm500_vm0, %v507_v38, %v508_v48  ;;  %v514_v57 = vrot.slane %v3901_v49, 1  ;;  %v298_v38 = vld [vmem:[%s3622_s29 + $0x54] sm:$0xe] }
  0x81   : > { %3153 = vmatprep.subr.bf16.mxu0 %v4078_v15  ;;  %v1753_v56 = vsel %vm371_vm1, %v1748_v54, %v1752_v55  ;;  %v1760_v44 = vor.u32 %v1759_v28, %v1755_v23  ;;  %v511_v55 = vrot.slane %v3868_v29, 1  ;;  %v2694_v23 = vld [vmem:[%s3622_s29 + $0x48] sm:$0xe]  ;;  %v1817_v28 = vrot.slane %v3982_v50, 1  ;;  %v2697_v50 = vld [vmem:[%s3622_s29 + $0x6c] sm:$0xe] }
  0x82   : > { %v2718_v32 = vcombine.low %v2694_v23, %v4037_v34 }
  0x83   : > { %2092 = vmatmul.mubr.bf16.gmra.mrb[44].mxu0 %v4025_v19  ;;  %v2690_v19 = vld [vmem:[%s3622_s29 + $0x18] sm:$0xe]  ;;  %1469 = vmatmul.mubr.bf16.gmra.mrb[44].mxu1 %v4002_v6  ;;  %v294_v6 = vld [vmem:[%s3622_s29 + $0x24] sm:$0xe]  ;;  %v1765_v45 = vsel %vm371_vm1, %v1760_v44, %v1764_v51 }
  0x84   : > { %2099 = vmatprep.mubr.bf16.mxu0 %v1741_v33  ;;  %3154 = vmatpush3.bf16.msra.mxu0 %v4078_v15  ;;  %v2714_v3 = vcombine.low %v2690_v19, %v3908_v52  ;;  %v506_v33 = vsel %vm500_vm0, %v504_v13, %v505_v41  ;;  %v2505_v36 = vcombine.low %v294_v6, %v3862_v20  ;;  %v513_v20 = vrot.slane %v2506_v17, 1 }
  0x85   : > { %3155 = vmatprep.subr.bf16.mxu0 %v4105_v26  ;;  %3125 = vmatprep.mubr.bf16.mxu1 %v503_v42  ;;  %v4151_v42 = vld [vmem:[%s3622_s29 + $0x74] ss:$0 sps:$4 sm:$0x11]   ;;  %v1767_v19 = vshrl.u32 %v4137_v60, 16  ;;  %v2716_v6 = vcombine.low %v2692_v24, %v3966_v35  ;;  %v2720_v35 = vcombine.low %v2696_v27, %v4088_v21 }
  0x86   : > { %v1810_v52 = vrot.slane %v2714_v3, 1  ;;  %v510_v54 = vrot.slane %v2505_v36, 1  ;;  %v1774_v3 = vshll.u32 %v4151_v42, 16  ;;  %v515_v49 = vsel %vm500_vm0, %v513_v20, %v514_v57 }
  0x87   : > { %v1829_v36 = vrot.slane %v4111_v53, 1  ;;  %v1832_v44 = vrot.slane %v4151_v42, 1 }
  0x88   : > { %3156 = vmatpush3.bf16.msra.mxu0 %v4105_v26  ;;  %v4140_v14 = vsel %vm500_vm0, %v1810_v52, %v1811_v4  ;;  %v297_v4 = vld [vmem:[%s3622_s29 + $0x48] sm:$0xe]  ;;  %v512_v29 = vsel %vm500_vm0, %v510_v54, %v511_v55  ;;  %v1776_v48 = vrot.slane %v1774_v3, 1  ;;  %v1822_v52 = vrot.slane %v2718_v32, 1 }
  0x89   : > { %v2508_v12 = vcombine.low %v297_v4, %v3955_v30 }
  0x8b   : > { %2100 = vmatmul.mubr.bf16.gmra.mrb[48].mxu0 %v4042_v25  ;;  %v1769_v25 = vshll.u32 %v4137_v60, 16  ;;  %3126 = vmatmul.mubr.bf16.vlgmr.msra.gmra.mrb[0].mxu1 %v506_v33  ;;  %v1828_v33 = vrot.slane %v2720_v35, 1 }
  0x8c   : > { %2107 = vmatprep.mubr.bf16.mxu0 %v1753_v56  ;;  %3181 = vmatpush3.bf16.msra.mxu1 %v3894_v46  ;;  %v2507_v46 = vcombine.low %v296_v62, %v3923_v5  ;;  %v519_v5 = vrot.slane %v2508_v12, 1  ;;  %v2695_v56 = vld [vmem:[%s3622_s29 + $0x54] sm:$0xe]  ;;  %s2475_s29 = sshll.u32 %s3476_s15, 3 }
  0x8d   : > { %3129 = vmatprep.mubr.bf16.mxu1 %v509_v37  ;;  %3174 = vmatprep.subr.bf16.mxu1 %v3974_v39  ;;  %v1771_v41 = vrot.slane %v1769_v25, 1  ;;  %v1830_v17 = vsel %vm500_vm0, %v1828_v33, %v1829_v36  ;;  %p243_p6 = scmp.lt.s32.totalorder %s2475_s29, 15 }
  0x8f   : > { %v1772_v13 = vor.u32 %v1771_v41, %v1767_v19  ;;  %s4451_s29 = smov (!%p243_p6, %s2475_s29), 15 }
  0x90   : > { %3182 = vmatpush3.bf16.msra.mxu1 %v3974_v39  ;;  %v516_v39 = vrot.slane %v2507_v46, 1  ;;  %s2476_s15 = sshll.u32 %s4451_s29, 1 }
  0x91   : > { %3175 = vmatprep.subr.bf16.mxu1 %v3993_v58  ;;  %v1777_v47 = vsel %vm371_vm1, %v1772_v13, %v1776_v48  ;;  %s4310_s26 = sadd.s32 %s2477_s25, %s2476_s15 }
  0x92   : > { %s2478_s16 = sshll.u32 %s4310_s26, 2  ;;  %s2482_s7 = sshll.u32 %s4310_s26, 3 }
  0x93   : > { %2108 = vmatmul.mubr.bf16.gmra.mrb[52].mxu0 %v4070_v7  ;;  %3130 = vmatmul.mubr.bf16.gmra.mrb[4].mxu1 %v512_v29  ;;  %v517_v7 = vrot.slane %v3929_v9, 1  ;;  %v2509_v9 = vcombine.low %v298_v38, %v3999_v0  ;;  %v1823_v0 = vrot.slane %v4045_v40, 1  ;;  %v1816_v40 = vrot.slane %v2716_v6, 1  ;;  %s249_s30 = scalar_lea.vmem %s4436_s3, %s2478_s16  ;;  %s4367_s10 = scalar_lea.vmem %s4437_s4, %s2482_s7 }
  0x94   : > { %2115 = vmatprep.mubr.bf16.mxu0 %v1765_v45  ;;  %3183 = vmatpush3.bf16.msra.mxu1 %v3993_v58  ;;  %v521_v58 = vsel %vm500_vm0, %v519_v5, %v520_v22 }
  0x95   : > { %3133 = vmatprep.mubr.bf16.mxu1 %v515_v49  ;;  %3176 = vmatprep.subr.bf16.mxu1 %v4021_v18  ;;  %v518_v30 = vsel %vm500_vm0, %v516_v39, %v517_v7 }
  0x98   : > { %3184 = vmatpush3.bf16.msra.mxu1 %v4021_v18  ;;  %v523_v18 = vrot.slane %v4005_v8, 1  ;;  %v2719_v8 = vcombine.low %v2695_v56, %v4058_v59  ;;  %v2717_v59 = vcombine.low %v2693_v11, %v4011_v10  ;;  %v2721_v10 = vcombine.low %v2697_v50, %v4121_v2 }
  0x99   : > { %3177 = vmatprep.subr.bf16.mxu1 %v4050_v43 }
  0x9a   : > { %v1819_v21 = vrot.slane %v2717_v59, 1  ;;  %v1831_v53 = vrot.slane %v2721_v10, 1 }
  0x9b   : > { %2116 = vmatmul.mubr.bf16.gmra.mrb[56].mxu0 %v4099_v31  ;;  %3134 = vmatmul.mubr.bf16.gmra.mrb[8].mxu1 %v518_v30  ;;  %v522_v31 = vrot.slane %v2509_v9, 1 }
  0x9c   : > { %2123 = vmatprep.mubr.bf16.mxu0 %v1777_v47  ;;  %3185 = vmatpush3.bf16.msra.mxu1 %v4050_v43  ;;  %v1824_v43 = vsel %vm500_vm0, %v1822_v52, %v1823_v0 }
  0x9d   : > { %3137 = vmatprep.mubr.bf16.mxu1 %v521_v58  ;;  %3178 = vmatprep.subr.bf16.mxu1 %v4063_v61  ;;  %v524_v34 = vsel %vm500_vm0, %v522_v31, %v523_v18 }
  0xa0   : > { %3186 = vmatpush3.bf16.msra.mxu1 %v4063_v61  ;;  %v1825_v61 = vrot.slane %v2719_v8, 1 }
  0xa1   : > { %3179 = vmatprep.subr.bf16.mxu1 %v4078_v15 }
  0xa3   : > { %2124 = vmatmul.mubr.bf16.gmra.mrb[60].mxu0 %v4137_v60  ;;  %3138 = vmatmul.mubr.bf16.gmra.mrb[12].mxu1 %v524_v34  ;;  %v1826_v60 = vrot.slane %v4082_v63, 1  ;;  %v1820_v63 = vrot.slane %v4016_v16, 1 }
  0xa4   : > { %3157 = vmatprep.mubr.bf16.mxu0 %v4140_v14  ;;  %3187 = vmatpush3.bf16.msra.mxu1 %v4078_v15  ;;  %v1818_v14 = vsel %vm500_vm0, %v1816_v40, %v1817_v28 }
  0xa5   : > { %3165 = vmatprep.mubr.bf16.mxu1 %v1824_v43  ;;  %3180 = vmatprep.subr.bf16.mxu1 %v4105_v26  ;;  %v1827_v15 = vsel %vm500_vm0, %v1825_v61, %v1826_v60  ;;  %v1821_v37 = vsel %vm500_vm0, %v1819_v21, %v1820_v63 }
  0xa8   : > { %3188 = vmatpush3.bf16.msra.mxu1 %v4105_v26  ;;  %v1833_v26 = vsel %vm500_vm0, %v1831_v53, %v1832_v44 }
  0xab   : > { %3158 = vmatmul.mubr.bf16.vlgmr.msra.gmra.mrb[64].mxu0 %v4144_v1  ;;  %3166 = vmatmul.mubr.bf16.vlgmr.msra.gmra.mrb[8].mxu1 %v1827_v15 }
  0xac   : > { %3161 = vmatprep.mubr.bf16.mxu0 %v1818_v14  ;;  %3169 = vmatprep.mubr.bf16.mxu1 %v1830_v17 }
  0xb3   : > { %3162 = vmatmul.mubr.bf16.gmra.mrb[68].mxu0 %v1821_v37  ;;  %3170 = vmatmul.mubr.bf16.gmra.mrb[12].mxu1 %v1833_v26 }
  0xfe   : > { %v2853_v1 = vpop.f32.mrb[0].mxu0 }
  0xff   : > { %v2854_v51 = vpop.f32.mrb[1].mxu0 }
 0x100   : > { %v2855_v25 = vadd.f32 %v2854_v51, %v2853_v1  ;;  %v2856_v54 = vpop.f32.mrb[2].mxu0 }
 0x101   : > { %v2857_v16 = vpop.f32.mrb[3].mxu0 }
 0x102   : > { %v2858_v55 = vadd.f32 %v2857_v16, %v2856_v54 }
 0x106   : > { %v2859_v2 = vpop.f32.mrb[4].mxu0 }
 0x107   : > { %v2860_v20 = vpop.f32.mrb[5].mxu0 }
 0x108   : > { %v2861_v57 = vadd.f32 %v2860_v20, %v2859_v2  ;;  %v2862_v45 = vpop.f32.mrb[6].mxu0 }
 0x109   : > { %v2863_v62 = vpop.f32.mrb[7].mxu0 }
 0x10a   : > { %v2864_v19 = vadd.f32 %v2863_v62, %v2862_v45 }
 0x10e   : > { %v2865_v41 = vpop.f32.mrb[8].mxu0 }
 0x10f   : > { %v2866_v3 = vpop.f32.mrb[9].mxu0 }
 0x110   : > { %v2867_v4 = vadd.f32 %v2866_v3, %v2865_v41  ;;  %v2868_v42 = vpop.f32.mrb[10].mxu0 }
 0x111   : > { %v2869_v29 = vpop.f32.mrb[11].mxu0 }
 0x112   : > { %v2870_v46 = vadd.f32 %v2869_v29, %v2868_v42 }
 0x116   : > { %v2871_v49 = vpop.f32.mrb[12].mxu0 }
 0x117   : > { %v2872_v12 = vpop.f32.mrb[13].mxu0 }
 0x118   : > { %v2873_v13 = vadd.f32 %v2872_v12, %v2871_v49  ;;  %v2874_v48 = vpop.f32.mrb[14].mxu0 }
 0x119   : > { %v2875_v39 = vpop.f32.mrb[15].mxu0 }
 0x11a   : > { %v2876_v7 = vadd.f32 %v2875_v39, %v2874_v48 }
 0x11e   : > { %v2877_v5 = vpop.f32.mrb[16].mxu0  ;;  %v2933_v30 = vpop.f32.mrb[16].mxu1 }
 0x11f   : > { %v2878_v22 = vpop.f32.mrb[17].mxu0  ;;  %v2934_v58 = vpop.f32.mrb[17].mxu1 }
 0x120   : > { %v4218_v47 = vadd.f32 %v2878_v22, %v2877_v5  ;;  %v2880_v38 = vpop.f32.mrb[18].mxu0  ;;  %v2935_v32 = vadd.f32 %v2934_v58, %v2933_v30  ;;  %v2936_v24 = vpop.f32.mrb[18].mxu1 }
 0x121   : > { %v2881_v23 = vpop.f32.mrb[19].mxu0  ;;  %v2937_v31 = vpop.f32.mrb[19].mxu1 }
 0x122   : > { %v4220_v9 = vadd.f32 %v2881_v23, %v2880_v38  ;;  %v2938_v18 = vadd.f32 %v2937_v31, %v2936_v24  ;;  %v4222_v0 = vadd.f32 %v2935_v32, %v2855_v25 }
 0x124   : > { %v4226_v34 = vadd.f32 %v2938_v18, %v2858_v55 }
 0x126   : > { %v2883_v52 = vpop.f32.mrb[20].mxu0  ;;  %v2939_v43 = vpop.f32.mrb[20].mxu1 }
 0x127   : > { %v2884_v56 = vpop.f32.mrb[21].mxu0  ;;  %v2940_v28 = vpop.f32.mrb[21].mxu1 }
 0x128   : > { %v4224_v6 = vadd.f32 %v2884_v56, %v2883_v52  ;;  %v2886_v27 = vpop.f32.mrb[22].mxu0  ;;  %v2941_v35 = vadd.f32 %v2940_v28, %v2939_v43  ;;  %v2942_v11 = vpop.f32.mrb[22].mxu1 }
 0x129   : > { %v2887_v8 = vpop.f32.mrb[23].mxu0  ;;  %v2943_v61 = vpop.f32.mrb[23].mxu1 }
 0x12a   : > { %v4228_v40 = vadd.f32 %v2887_v8, %v2886_v27  ;;  %v2944_v60 = vadd.f32 %v2943_v61, %v2942_v11  ;;  %v4230_v14 = vadd.f32 %v2941_v35, %v2861_v57 }
 0x12c   : > { %v4234_v15 = vadd.f32 %v2944_v60, %v2864_v19 }
 0x12e   : > { %v2889_v59 = vpop.f32.mrb[24].mxu0  ;;  %v2945_v63 = vpop.f32.mrb[24].mxu1 }
 0x12f   : > { %v2890_v33 = vpop.f32.mrb[25].mxu0  ;;  %v2946_v17 = vpop.f32.mrb[25].mxu1 }
 0x130   : > { %v4232_v36 = vadd.f32 %v2890_v33, %v2889_v59  ;;  %v2892_v50 = vpop.f32.mrb[26].mxu0  ;;  %v2947_v37 = vadd.f32 %v2946_v17, %v2945_v63  ;;  %v2948_v53 = vpop.f32.mrb[26].mxu1 }
 0x131   : > { %v2893_v21 = vpop.f32.mrb[27].mxu0  ;;  %v2949_v44 = vpop.f32.mrb[27].mxu1 }
 0x132   : > { %v4236_v10 = vadd.f32 %v2893_v21, %v2892_v50  ;;  %v2950_v26 = vadd.f32 %v2949_v44, %v2948_v53  ;;  %v4238_v51 = vadd.f32 %v2947_v37, %v2867_v4 }
 0x134   : > { %v4242_v55 = vadd.f32 %v2950_v26, %v2870_v46 }
 0x136   : > { %v2895_v1 = vpop.f32.mrb[28].mxu0  ;;  %v2951_v20 = vpop.f32.mrb[28].mxu1 }
 0x137   : > { %v2896_v25 = vpop.f32.mrb[29].mxu0  ;;  %v2952_v45 = vpop.f32.mrb[29].mxu1 }
 0x138   : > { %v4240_v54 = vadd.f32 %v2896_v25, %v2895_v1  ;;  %v2898_v16 = vpop.f32.mrb[30].mxu0  ;;  %v2953_v62 = vadd.f32 %v2952_v45, %v2951_v20  ;;  %v2954_v19 = vpop.f32.mrb[30].mxu1 }
 0x139   : > { %v2899_v2 = vpop.f32.mrb[31].mxu0  ;;  %v2955_v41 = vpop.f32.mrb[31].mxu1 }
 0x13a   : > { %v4244_v57 = vadd.f32 %v2899_v2, %v2898_v16  ;;  %v2956_v3 = vadd.f32 %v2955_v41, %v2954_v19  ;;  %v4246_v29 = vadd.f32 %v2953_v62, %v2873_v13 }
 0x13c   : > { %v4250_v48 = vadd.f32 %v2956_v3, %v2876_v7 }
 0x13e   : > { %v3013_v42 = vpop.f32.mrb[32].mxu0  ;;  %v2957_v39 = vpop.f32.mrb[32].mxu1 }
 0x13f   : > { %v3014_v4 = vpop.f32.mrb[33].mxu0  ;;  %v2958_v22 = vpop.f32.mrb[33].mxu1 }
 0x140   : > { %v4248_v49 = vadd.f32 %v3014_v4, %v3013_v42  ;;  %v3016_v12 = vpop.f32.mrb[34].mxu0  ;;  %v2959_v38 = vadd.f32 %v2958_v22, %v2957_v39  ;;  %v2960_v23 = vpop.f32.mrb[34].mxu1 }
 0x141   : > { %v3017_v46 = vpop.f32.mrb[35].mxu0  ;;  %v2961_v30 = vpop.f32.mrb[35].mxu1 }
 0x142   : > { %v4252_v5 = vadd.f32 %v3017_v46, %v3016_v12  ;;  %v3224_v58 = vadd.f32 %v2959_v38, %v4218_v47  ;;  %v2962_v32 = vadd.f32 %v2961_v30, %v2960_v23 }
 0x144   : > { %v3230_v31 = vadd.f32 %v2962_v32, %v4220_v9 }
 0x146   : > { %v3019_v24 = vpop.f32.mrb[36].mxu0  ;;  %v2963_v7 = vpop.f32.mrb[36].mxu1 }
 0x147   : > { %v3020_v13 = vpop.f32.mrb[37].mxu0  ;;  %v2964_v8 = vpop.f32.mrb[37].mxu1 }
 0x148   : > { %v3021_v18 = vadd.f32 %v3020_v13, %v3019_v24  ;;  %v3022_v52 = vpop.f32.mrb[38].mxu0  ;;  %v2965_v43 = vadd.f32 %v2964_v8, %v2963_v7  ;;  %v2966_v28 = vpop.f32.mrb[38].mxu1 }
 0x149   : > { %v3023_v56 = vpop.f32.mrb[39].mxu0  ;;  %v2967_v35 = vpop.f32.mrb[39].mxu1 }
 0x14a   : > { %v3024_v27 = vadd.f32 %v3023_v56, %v3022_v52  ;;  %v3221_v11 = vadd.f32 %v2965_v43, %v4224_v6  ;;  %v2968_v61 = vadd.f32 %v2967_v35, %v2966_v28 }
 0x14c   : > { %v3227_v47 = vadd.f32 %v2968_v61, %v4228_v40 }
 0x14e   : > { %v3025_v60 = vpop.f32.mrb[40].mxu0  ;;  %v2969_v21 = vpop.f32.mrb[40].mxu1 }
 0x14f   : > { %v3026_v59 = vpop.f32.mrb[41].mxu0  ;;  %v2970_v17 = vpop.f32.mrb[41].mxu1 }
 0x150   : > { %v4258_v33 = vadd.f32 %v3026_v59, %v3025_v60  ;;  %v3028_v50 = vpop.f32.mrb[42].mxu0  ;;  %v2971_v37 = vadd.f32 %v2970_v17, %v2969_v21  ;;  %v2972_v53 = vpop.f32.mrb[42].mxu1 }
 0x151   : > { %v3029_v9 = vpop.f32.mrb[43].mxu0  ;;  %v2973_v44 = vpop.f32.mrb[43].mxu1 }
 0x152   : > { %v4260_v63 = vadd.f32 %v3029_v9, %v3028_v50  ;;  %v4263_v26 = vadd.f32 %v2971_v37, %v4232_v36  ;;  %v2974_v6 = vadd.f32 %v2973_v44, %v2972_v53 }
 0x154   : > { %v4266_v16 = vadd.f32 %v2974_v6, %v4236_v10 }
 0x156   : > { %v3031_v1 = vpop.f32.mrb[44].mxu0  ;;  %v2975_v45 = vpop.f32.mrb[44].mxu1 }
 0x157   : > { %v3032_v25 = vpop.f32.mrb[45].mxu0  ;;  %v2976_v19 = vpop.f32.mrb[45].mxu1 }
 0x158   : > { %v3033_v40 = vadd.f32 %v3032_v25, %v3031_v1  ;;  %v3034_v2 = vpop.f32.mrb[46].mxu0  ;;  %v2977_v41 = vadd.f32 %v2976_v19, %v2975_v45  ;;  %v2978_v3 = vpop.f32.mrb[46].mxu1 }
 0x159   : > { %v3035_v20 = vpop.f32.mrb[47].mxu0  ;;  %v2979_v42 = vpop.f32.mrb[47].mxu1 }
 0x15a   : > { %v3036_v62 = vadd.f32 %v3035_v20, %v3034_v2  ;;  %v4269_v4 = vadd.f32 %v2977_v41, %v4240_v54  ;;  %v2980_v36 = vadd.f32 %v2979_v42, %v2978_v3  ;;  %v2799_v41 = vld [vmem:[%s249_s30] sm:$0xff]   ;;  %v4332_v42 = vld [vmem:[%s249_s30 + $0x18] sm:$0xff]  }
 0x15b   : > { %v4327_v3 = vld [vmem:[%s249_s30 + $0x20] sm:$0xff]  }
 0x15c   : > { %v4272_v39 = vadd.f32 %v2980_v36, %v4244_v57  ;;  %v4334_v36 = vld [vmem:[%s249_s30 + $0x38] sm:$0xff]  }
 0x15e   : > { %v3037_v12 = vpop.f32.mrb[48].mxu0  ;;  %v3127_v23 = vpop.f32.mrb[0].mxu1 }
 0x15f   : > { %v3038_v46 = vpop.f32.mrb[49].mxu0  ;;  %v3190_v24 = vadd.f32 %v4230_v14, %v3127_v23  ;;  %v1511_v13 = vpop.f32.mrb[1].mxu1  ;;  %v4343_v23 = vld [vmem:[%s249_s30 + $0x10] sm:$0xff]  }
 0x160   : > { %v3039_v10 = vadd.f32 %v3038_v46, %v3037_v12  ;;  %v3040_v22 = vpop.f32.mrb[50].mxu0  ;;  %v3194_v54 = vadd.f32 %v4222_v0, %v1511_v13  ;;  %v3128_v52 = vpop.f32.mrb[2].mxu1  ;;  %v4339_v46 = vld [vmem:[%s4435_s2] ss:$0 sm:$0xff] }
 0x161   : > { %v3041_v38 = vpop.f32.mrb[51].mxu0  ;;  %v3198_v7 = vadd.f32 %v4234_v15, %v3128_v52  ;;  %v1514_v57 = vpop.f32.mrb[3].mxu1  ;;  %v3191_v8 = vadd.f32 %v3190_v24, %v3021_v18  ;;  %v2801_v52 = vunpack.c.h.bf16 %v2799_v41 }
 0x162   : > { %v3042_v30 = vadd.f32 %v3041_v38, %v3040_v22  ;;  %v4274_v32 = vadd.f32 %v3224_v58, %v3039_v10  ;;  %v3202_v43 = vadd.f32 %v4226_v34, %v1514_v57  ;;  %v4284_v58 = vadd.f32 %v3194_v54, %v4248_v49 }
 0x163   : > { %v4286_v14 = vadd.f32 %v3198_v7, %v3024_v27  ;;  %v2800_v22 = vunpack.c.l.bf16 %v2799_v41  ;;  %v2816_v38 = vunpack.c.l.bf16 %v4327_v3 }
 0x164   : > { %v4279_v56 = vadd.f32 %v3230_v31, %v3042_v30  ;;  %v4289_v0 = vadd.f32 %v3202_v43, %v4252_v5  ;;  %v2817_v43 = vunpack.c.h.bf16 %v4327_v3 }
 0x166   : > { %v3043_v28 = vpop.f32.mrb[52].mxu0  ;;  %v3131_v15 = vpop.f32.mrb[4].mxu1 }
 0x167   : > { %v3044_v35 = vpop.f32.mrb[53].mxu0  ;;  %v3206_v34 = vadd.f32 %v4246_v29, %v3131_v15  ;;  %v1527_v50 = vpop.f32.mrb[5].mxu1 }
 0x168   : > { %v3045_v61 = vadd.f32 %v3044_v35, %v3043_v28  ;;  %v3046_v60 = vpop.f32.mrb[54].mxu0  ;;  %v3210_v49 = vadd.f32 %v4238_v51, %v1527_v50  ;;  %v3132_v9 = vpop.f32.mrb[6].mxu1  ;;  %v2812_v28 = vunpack.c.l.bf16 %v4332_v42  ;;  %v2828_v35 = vunpack.c.l.bf16 %v4334_v36 }
 0x169   : > { %v3047_v31 = vpop.f32.mrb[55].mxu0  ;;  %v3214_v21 = vadd.f32 %v4250_v48, %v3132_v9  ;;  %v1530_v17 = vpop.f32.mrb[7].mxu1  ;;  %v4298_v5 = vadd.f32 %v3206_v34, %v3033_v40  ;;  %v2813_v50 = vunpack.c.h.bf16 %v4332_v42 }
 0x16a   : > { %v3048_v59 = vadd.f32 %v3047_v31, %v3046_v60  ;;  %v4291_v18 = vadd.f32 %v3221_v11, %v3045_v61  ;;  %v3218_v37 = vadd.f32 %v4242_v55, %v1530_v17  ;;  %v4303_v11 = vadd.f32 %v3210_v49, %v4258_v33 }
 0x16b   : > { %v4305_v44 = vadd.f32 %v3214_v21, %v3036_v62  ;;  %v2830_v62 = vld [vmem:[%s249_s30 + $0x8] sm:$0xff]   ;;  %v2808_v31 = vunpack.c.l.bf16 %v4343_v23  ;;  %v2829_v49 = vunpack.c.h.bf16 %v4334_v36 }
 0x16c   : > { %v4295_v27 = vadd.f32 %v3227_v47, %v3048_v59  ;;  %v4308_v47 = vadd.f32 %v3218_v37, %v4260_v63  ;;  %v2805_v13 = vunpack.c.h.bf16 %v2830_v62  ;;  %v2809_v37 = vunpack.c.h.bf16 %v4343_v23 }
 0x16e   : > { %v3049_v53 = vpop.f32.mrb[56].mxu0 }
 0x16f   : > { %v3050_v29 = vpop.f32.mrb[57].mxu0 }
 0x170   : > { %v3051_v51 = vadd.f32 %v3050_v29, %v3049_v53  ;;  %v3052_v6 = vpop.f32.mrb[58].mxu0 }
 0x171   : > { %v3053_v48 = vpop.f32.mrb[59].mxu0 }
 0x172   : > { %v3054_v1 = vadd.f32 %v3053_v48, %v3052_v6  ;;  %v4313_v55 = vadd.f32 %v4263_v26, %v3051_v51  ;;  %v4325_v26 = vld [vmem:[%s249_s30 + $0x28] sm:$0xff]  }
 0x173   : > { %v2820_v10 = vunpack.c.l.bf16 %v4325_v26  ;;  %v2821_v54 = vunpack.c.h.bf16 %v4325_v26 }
 0x174   : > { %v4317_v33 = vadd.f32 %v4266_v16, %v3054_v1 }
 0x176   : > { %v3055_v25 = vpop.f32.mrb[60].mxu0 }
 0x177   : > { %v3056_v40 = vpop.f32.mrb[61].mxu0 }
 0x178   : > { %v3057_v63 = vadd.f32 %v3056_v40, %v3055_v25  ;;  %v3058_v2 = vpop.f32.mrb[62].mxu0 }
 0x179   : > { %v3059_v20 = vpop.f32.mrb[63].mxu0 }
 0x17a   : > { %v3060_v45 = vadd.f32 %v3059_v20, %v3058_v2  ;;  %v4323_v19 = vadd.f32 %v4269_v4, %v3057_v63  ;;  %v2804_v4 = vunpack.c.l.bf16 %v2830_v62 }
 0x17c   : > { %v4330_v16 = vadd.f32 %v4272_v39, %v3060_v45  ;;  %v4345_v39 = vld [vmem:[%s249_s30 + $0x30] sm:$0xff]  }
 0x17d   : > { %v2824_v15 = vunpack.c.l.bf16 %v4345_v39  ;;  %v2825_v6 = vunpack.c.h.bf16 %v4345_v39 }
 0x17e   : > { %v3159_v12 = vpop.f32.mrb[64].mxu0  ;;  %v3167_v59 = vpop.f32.mrb[8].mxu1 }
 0x17f   : > { %v3192_v30 = vadd.f32 %v3191_v8, %v3159_v12  ;;  %v2166_v24 = vpop.f32.mrb[65].mxu0  ;;  %v3223_v21 = vadd.f32 %v4291_v18, %v3167_v59  ;;  %v2198_v17 = vpop.f32.mrb[9].mxu1 }
 0x180   : > { %v3196_v7 = vadd.f32 %v4284_v58, %v2166_v24  ;;  %v3160_v57 = vpop.f32.mrb[66].mxu0  ;;  %v3168_v29 = vpop.f32.mrb[10].mxu1 }
 0x181   : > { %v2254_v61 = vadd.f32 %v3192_v30, %v4339_v46  ;;  %v3200_v60 = vadd.f32 %v4286_v14, %v3160_v57  ;;  %v2169_v8 = vpop.f32.mrb[67].mxu0  ;;  %v2262_v48 = vadd.f32 %v3223_v21, %v4339_v46  ;;  %v3229_v25 = vadd.f32 %v4295_v27, %v3168_v29  ;;  %v2201_v40 = vpop.f32.mrb[11].mxu1 }
 0x182   : > { %v2252_v58 = vadd.f32 %v3196_v7, %v4339_v46  ;;  %v3204_v34 = vadd.f32 %v4289_v0, %v2169_v8  ;;  %v3226_v0 = vadd.f32 %v4274_v32, %v2198_v17  ;;  %v3232_v32 = vadd.f32 %v4279_v56, %v2201_v40 }
 0x183   : > { %v2302_v9 = vadd.f32 %v2804_v4, %v2254_v61  ;;  %v2255_v14 = vadd.f32 %v3200_v60, %v4339_v46  ;;  %v2310_v62 = vadd.f32 %v2820_v10, %v2262_v48  ;;  %v2263_v41 = vadd.f32 %v3229_v25, %v4339_v46 }
 0x184   : > { %v2300_v53 = vadd.f32 %v2800_v22, %v2252_v58  ;;  %v2253_v51 = vadd.f32 %v3204_v34, %v4339_v46  ;;  %v2260_v2 = vadd.f32 %v3226_v0, %v4339_v46  ;;  %v2261_v4 = vadd.f32 %v3232_v32, %v4339_v46 }
 0x185   : > { %v2318_v18 = vmax.f32 %v2302_v9, 0.0  ;;  %v2303_v1 = vadd.f32 %v2805_v13, %v2255_v14  ;;  %v2326_v56 = vmax.f32 %v2310_v62, 0.0  ;;  %v2311_v30 = vadd.f32 %v2821_v54, %v2263_v41 }
 0x186   : > { %v2316_v63 = vmax.f32 %v2300_v53, 0.0  ;;  %v2301_v20 = vadd.f32 %v2801_v52, %v2253_v51  ;;  %v3163_v45 = vpop.f32.mrb[68].mxu0  ;;  %v2308_v27 = vadd.f32 %v2816_v38, %v2260_v2  ;;  %v2309_v52 = vadd.f32 %v2817_v43, %v2261_v4  ;;  %v3171_v38 = vpop.f32.mrb[12].mxu1 }
 0x187   : > { %2334 = vst [vmem:[%s4367_s10 + $0x10] sm:$0xff] %v2318_v18  ;;  %v2319_v26 = vmax.f32 %v2303_v1, 0.0  ;;  %v3208_v3 = vadd.f32 %v4298_v5, %v3163_v45  ;;  %v2182_v42 = vpop.f32.mrb[69].mxu0  ;;  %2342 = vst [vmem:[%s4367_s10 + $0x50] sm:$0xff] %v2326_v56  ;;  %v3235_v54 = vadd.f32 %v4323_v19, %v3171_v38  ;;  %v2214_v60 = vpop.f32.mrb[13].mxu1 }
 0x188   : > { %2332 = vst [vmem:[%s4367_s10] sm:$0xff] %v2316_v63  ;;  %v2317_v12 = vmax.f32 %v2301_v20, 0.0  ;;  %v3212_v22 = vadd.f32 %v4303_v11, %v2182_v42  ;;  %v3164_v23 = vpop.f32.mrb[70].mxu0  ;;  %v2324_v5 = vmax.f32 %v2308_v27, 0.0  ;;  %v2327_v11 = vmax.f32 %v2311_v30, 0.0  ;;  %v3172_v58 = vpop.f32.mrb[14].mxu1 }
 0x189   : > { %2335 = vst [vmem:[%s4367_s10 + $0x18] sm:$0xff] %v2319_v26  ;;  %v2258_v10 = vadd.f32 %v3208_v3, %v4339_v46  ;;  %v3216_v24 = vadd.f32 %v4305_v44, %v3164_v23  ;;  %v2185_v13 = vpop.f32.mrb[71].mxu0  ;;  %v2325_v44 = vmax.f32 %v2309_v52, 0.0  ;;  %v3238_v43 = vadd.f32 %v4313_v55, %v2214_v60  ;;  %v2217_v21 = vpop.f32.mrb[15].mxu1 }
 0x18a   : > { %2333 = vst [vmem:[%s4367_s10 + $0x8] sm:$0xff] %v2317_v12  ;;  %v2256_v7 = vadd.f32 %v3212_v22, %v4339_v46  ;;  %v3220_v57 = vadd.f32 %v4308_v47, %v2185_v13  ;;  %2340 = vst [vmem:[%s4367_s10 + $0x40] sm:$0xff] %v2324_v5  ;;  %v3241_v19 = vadd.f32 %v4330_v16, %v3172_v58 }
 0x18b   : > { %v2306_v61 = vadd.f32 %v2812_v28, %v2258_v10  ;;  %v2259_v8 = vadd.f32 %v3216_v24, %v4339_v46  ;;  %2343 = vst [vmem:[%s4367_s10 + $0x58] sm:$0xff] %v2327_v11  ;;  %v2266_v28 = vadd.f32 %v3235_v54, %v4339_v46  ;;  %2341 = vst [vmem:[%s4367_s10 + $0x48] sm:$0xff] %v2325_v44 }
 0x18c   : > { %v2304_v59 = vadd.f32 %v2808_v31, %v2256_v7  ;;  %v2257_v34 = vadd.f32 %v3220_v57, %v4339_v46  ;;  %v2264_v31 = vadd.f32 %v3238_v43, %v4339_v46  ;;  %v3244_v55 = vadd.f32 %v4317_v33, %v2217_v21 }
 0x18d   : > { %v2322_v47 = vmax.f32 %v2306_v61, 0.0  ;;  %v2307_v9 = vadd.f32 %v2813_v50, %v2259_v8  ;;  %v2314_v53 = vadd.f32 %v2828_v35, %v2266_v28  ;;  %v2267_v16 = vadd.f32 %v3241_v19, %v4339_v46 }
 0x18e   : > { %v2320_v17 = vmax.f32 %v2304_v59, 0.0  ;;  %v2305_v14 = vadd.f32 %v2809_v37, %v2257_v34  ;;  %v2312_v50 = vadd.f32 %v2824_v15, %v2264_v31  ;;  %v2265_v37 = vadd.f32 %v3244_v55, %v4339_v46 }
 0x18f   : > { %2338 = vst [vmem:[%s4367_s10 + $0x30] sm:$0xff] %v2322_v47  ;;  %v2323_v0 = vmax.f32 %v2307_v9, 0.0  ;;  %v2330_v51 = vmax.f32 %v2314_v53, 0.0  ;;  %v2315_v33 = vadd.f32 %v2829_v49, %v2267_v16 }
 0x190   : > { %2336 = vst [vmem:[%s4367_s10 + $0x20] sm:$0xff] %v2320_v17  ;;  %v2321_v29 = vmax.f32 %v2305_v14, 0.0  ;;  %v2328_v18 = vmax.f32 %v2312_v50, 0.0  ;;  %v2313_v35 = vadd.f32 %v2825_v6, %v2265_v37 }
 0x191   : > { %2339 = vst [vmem:[%s4367_s10 + $0x38] sm:$0xff] %v2323_v0  ;;  %2346 = vst [vmem:[%s4367_s10 + $0x70] sm:$0xff] %v2330_v51  ;;  %v2331_v48 = vmax.f32 %v2315_v33, 0.0 }
 0x192   : > { %2337 = vst [vmem:[%s4367_s10 + $0x28] sm:$0xff] %v2321_v29  ;;  %2344 = vst [vmem:[%s4367_s10 + $0x60] sm:$0xff] %v2328_v18  ;;  %v2329_v1 = vmax.f32 %v2313_v35, 0.0 }
 0x193   : > { %2347 = vst [vmem:[%s4367_s10 + $0x78] sm:$0xff] %v2331_v48 }
 0x194   : > { %2345 = vst [vmem:[%s4367_s10 + $0x68] sm:$0xff] %v2329_v1 }
 0x195 PF: > { %s14_s19 = sadd.s32 1, %s3492_s19   ;;  %s4438_s15 = smov %s3484_s17 }
 0x196   : > { %p11_p7 = scmp.ge.s32.totalorder %s14_s19, 6   ;;  %s4439_s16 = smov %s3488_s18 }
 0x197   : > { %s4440_s17 = smov %s4443_s20  ;;  %s4441_s18 = smov %s4447_s21 }
 0x198   :  { %13 = sbr.rel (!%p11_p7) target bundleno = 3 (0x3), region = 74 }

</bundles_post_ra>
